<compile_context>
chip_gen: v6e
topology: v6e:2x2x1
jax: 0.10.0
libtpu: 0.0.40
codegen_flags: <defaults>
</compile_context>

<pallas_src>
import functools

import jax
import jax.numpy as jnp
from jax import lax
from jax.experimental import pallas as pl
from jax.experimental.pallas import tpu as pltpu


# ----------------------------------------------------------------------------
# Fused kernel: channel attention -> 1x1 fusion conv -> spatial attention.
# Layout inside the kernel: channels on sublanes, flattened pixels on lanes.
# ----------------------------------------------------------------------------
def _fused_kernel(img_ref, cost_ref, w1i_ref, w1c_ref, w2_ref,
                  wfi_ref, wfc_ref, bf_ref, wsp_ref,
                  out_ref, pad_ref, *maybe_shift, W, hoist_dx):
    f32 = jnp.float32
    img = img_ref[0]              # (C, HW)
    cost = cost_ref[0]            # (D, HW)
    C, HW = img.shape
    D = cost.shape[0]
    Hc = w2_ref.shape[0]
    PAD = 3 * W + 3

    # --- Channel attention (tiny; kept entirely off the MXU) ---------------
    mean_img = jnp.mean(img, axis=1, keepdims=True)        # (C, 1) lane reduce
    mean_cost = jnp.mean(cost, axis=1, keepdims=True)      # (D, 1)
    # fc1 (no bias): broadcast-mult + sublane reduce -> lane-dense (1, Hc) row
    h_row = (jnp.sum(w1i_ref[...] * mean_img, axis=0, keepdims=True) +
             jnp.sum(w1c_ref[...] * mean_cost, axis=0, keepdims=True))
    h_row = jnp.maximum(h_row, 0.0)                         # (1, Hc)
    # tiny (1, Hc) -> (Hc, 1) flip via diagonal mask + lane reduce
    ii = lax.broadcasted_iota(jnp.int32, (Hc, Hc), 0)
    jj = lax.broadcasted_iota(jnp.int32, (Hc, Hc), 1)
    h_col = jnp.sum(jnp.where(ii == jj, h_row, 0.0), axis=1, keepdims=True)
    # fc2 (no bias): broadcast-mult + sublane reduce -> (1, D) attention row
    attn_row = jax.nn.sigmoid(
        jnp.sum(w2_ref[...] * h_col, axis=0, keepdims=True))            # (1, D)

    # --- 1x1 fusion conv; channel attention folded into the cost weights ---
    #     wfc @ diag(a) @ cost == (wfc * a_row) @ cost   (mathematically exact)
    fused = (jnp.dot(wfi_ref[...], img, preferred_element_type=f32) +
             jnp.dot(wfc_ref[...] * attn_row, cost,
                     preferred_element_type=f32) +
             bf_ref[...])                                                # (D, HW)

    # --- Spatial attention: channel-wise mean/max pooling (sublane reduces) -
    inv_cd = 1.0 / float(C + D)
    pmean = (jnp.sum(img, axis=0, keepdims=True) +
             jnp.sum(fused, axis=0, keepdims=True)) * inv_cd             # (1, HW)
    pmax = jnp.maximum(jnp.max(img, axis=0, keepdims=True),
                       jnp.max(fused, axis=0, keepdims=True))            # (1, HW)
    pooled = jnp.concatenate([pmean, pmax], axis=0)                      # (2, HW)

    # Piecewise fill of the padded scratch: zero the two pad regions (scratch
    # is not zero-initialized and persists across grid steps), store pooled.
    pad_ref[:, 0:PAD] = jnp.zeros((2, PAD), f32)
    pad_ref[:, PAD + HW:PAD + HW + PAD] = jnp.zeros((2, PAD), f32)
    pad_ref[:, PAD:PAD + HW] = pooled

    # --- 7x7 conv on the two pooled rows ------------------------------------
    # (2, HW) tap slices * (2, 1) weight columns -> 49 FMAs total; 7 per-dx
    # accumulators for ILP; one sublane-sum at the end.
    accs = [jnp.zeros((2, HW), f32) for _ in range(7)]
    if hoist_dx:
        # W % 128 == 0: hoist the lane-unaligned dx shift out of the dy loop.
        # The 49 dy taps then read at lane-aligned (static) offsets dy * W.
        shift_ref, = maybe_shift
        SW = HW + 6 * W
        for dx in range(7):
            shift_ref[2 * dx:2 * dx + 2, :] = pad_ref[:, dx:dx + SW]
        for dy in range(7):
            off = dy * W
            for dx in range(7):
                wcol = wsp_ref[:, dy * 7 + dx:dy * 7 + dx + 1]       # (2, 1)
                tap = shift_ref[2 * dx:2 * dx + 2, off:off + HW]     # (2, HW)
                accs[dx] = accs[dx] + tap * wcol
    else:
        for dy in range(7):
            base = dy * W
            for dx in range(7):
                wcol = wsp_ref[:, dy * 7 + dx:dy * 7 + dx + 1]       # (2, 1)
                tap = pad_ref[:, base + dx:base + dx + HW]           # (2, HW)
                accs[dx] = accs[dx] + tap * wcol

    # Column-validity masks generated in-kernel (no HBM mask stream).
    pos = lax.broadcasted_iota(jnp.int32, (1, HW), 1) % W
    logits2 = accs[3]                                      # dx == 3 always valid
    for dx in (0, 1, 2, 4, 5, 6):
        shift = dx - 3
        valid = (pos >= -shift) & (pos < W - shift)        # (1, HW) bool
        logits2 = logits2 + jnp.where(valid, accs[dx], 0.0)
    attn_s = jax.nn.sigmoid(jnp.sum(logits2, axis=0, keepdims=True))    # (1, HW)

    out_ref[0] = (fused * attn_s).astype(out_ref.dtype)    # sublane broadcast


# ----------------------------------------------------------------------------
# Wrapper (PyTorch-style NCHW in / NCHW out; only free reshapes, no transposes
# of the feature maps).
# ----------------------------------------------------------------------------
@jax.jit
def cost_volume_modulation(img_nchw, cost_nchw, params):
    w1, w2, wf, bf, wsp = params            # w1:(C+D,Hc) w2:(Hc,D) wf:(C+D,D)
    B, C, H, W = img_nchw.shape
    D = cost_nchw.shape[1]
    HW = H * W
    Hc = w1.shape[1]
    f32 = jnp.float32
    hoist_dx = (W % 128 == 0)

    img = img_nchw.reshape(B, C, HW).astype(f32)        # free reshape
    cost = cost_nchw.reshape(B, D, HW).astype(f32)      # free reshape

    # Weight preprocessing (once, outside the kernel).
    w1i = w1[:C].astype(f32)                  # (C, Hc) untransposed -> VPU fc1
    w1c = w1[C:].astype(f32)                  # (D, Hc)
    w2f = w2.astype(f32)                      # (Hc, D) untransposed -> VPU fc2
    wfi = jnp.transpose(wf[:C]).astype(f32)   # (D, C)
    wfc = jnp.transpose(wf[C:]).astype(f32)   # (D, D)
    bf2 = bf.reshape(D, 1).astype(f32)
    wsp2 = wsp.reshape(2, 49).astype(f32)     # (2, 7, 7) -> (2, 49)

    pad_w = HW + 6 * W + 6
    scratch = [pltpu.VMEM((2, pad_w), f32)]
    if hoist_dx:
        scratch.append(pltpu.VMEM((14, HW + 6 * W), f32))

    # Explicit VMEM budget (double-buffered I/O + weights + scratch) + headroom.
    resident_bytes = 4 * (2 * (C + 2 * D) * HW
                          + 2 * ((C + D) * Hc + Hc * D + D * (C + D) + D + 98)
                          + 2 * pad_w
                          + (14 * (HW + 6 * W) if hoist_dx else 0))
    vmem_limit = int(min(100 * 2**20, max(16 * 2**20, 2 * resident_bytes)))

    flops = int(B * (2 * HW * D * (C + D)          # fusion matmuls
                     + 2 * HW * 2 * 49             # 7x7 conv taps
                     + 4 * HW * D                  # pooling + final modulation
                     + 2 * (C + D) * Hc + 2 * Hc * D))
    transcendentals = int(B * (HW + D))
    bytes_accessed = int(4 * (B * HW * (C + 2 * D)
                              + (C + D) * (Hc + D) + Hc * D + D + 98))

    out = pl.pallas_call(
        functools.partial(_fused_kernel, W=W, hoist_dx=hoist_dx),
        grid=(B,),
        in_specs=[
            pl.BlockSpec((1, C, HW), lambda b: (b, 0, 0)),    # img
            pl.BlockSpec((1, D, HW), lambda b: (b, 0, 0)),    # cost
            pl.BlockSpec((C, Hc), lambda b: (0, 0)),          # w1 (img part)
            pl.BlockSpec((D, Hc), lambda b: (0, 0)),          # w1 (cost part)
            pl.BlockSpec((Hc, D), lambda b: (0, 0)),          # w2
            pl.BlockSpec((D, C), lambda b: (0, 0)),           # wf^T (img part)
            pl.BlockSpec((D, D), lambda b: (0, 0)),           # wf^T (cost part)
            pl.BlockSpec((D, 1), lambda b: (0, 0)),           # fusion bias
            pl.BlockSpec((2, 49), lambda b: (0, 0)),          # 7x7 weights
        ],
        out_specs=pl.BlockSpec((1, D, HW), lambda b: (b, 0, 0)),
        out_shape=jax.ShapeDtypeStruct((B, D, HW), f32),
        scratch_shapes=scratch,
        compiler_params=pltpu.CompilerParams(
            dimension_semantics=("parallel",),
            vmem_limit_bytes=vmem_limit),
        cost_estimate=pl.CostEstimate(
            flops=flops, transcendentals=transcendentals,
            bytes_accessed=bytes_accessed),
    )(img, cost, w1i, w1c, w2f, wfi, wfc, bf2, wsp2)

    return out.reshape(B, D, H, W)                      # free reshape to NCHW


# ----------------------------------------------------------------------------
# Pure-JAX reference (mirrors the PyTorch forward exactly)
# ----------------------------------------------------------------------------
def reference(img, cost, params):
    w1, w2, wf, bf, wsp = params
    # Channel attention.
    comb = jnp.concatenate([img, cost], axis=1)                  # (B, C+D, H, W)
    avg = jnp.mean(comb, axis=(2, 3))                            # (B, C+D)
    h = jnp.maximum(avg @ w1, 0.0)
    a = jax.nn.sigmoid(h @ w2)                                   # (B, D)
    mod = cost * a[:, :, None, None]
    # 1x1 fusion conv (with bias).
    comb2 = jnp.concatenate([img, mod], axis=1)
    fused = jnp.einsum("bchw,cd->bdhw", comb2, wf) + bf[None, :, None, None]
    # Spatial attention.
    comb3 = jnp.concatenate([img, fused], axis=1)
    pooled = jnp.stack([jnp.mean(comb3, axis=1), jnp.max(comb3, axis=1)], axis=1)
    attn = lax.conv_general_dilated(
        pooled, wsp[None], (1, 1), ((3, 3), (3, 3)),
        dimension_numbers=("NCHW", "OIHW", "NCHW"))
    attn = jax.nn.sigmoid(attn)                                  # (B, 1, H, W)
    return fused * attn


if __name__ == "__main__":
    B, C, D, H, W = 2, 64, 128, 16, 16       # img_channels=64, cost_channels=128
    reduction = 16
    Hc = (C + D) // reduction                 # hidden channels of fc1

    key = jax.random.PRNGKey(0)
    k_img, k_cost, k1, k2, k3, k4, k5 = jax.random.split(key, 7)

    img_features = jax.random.uniform(k_img, (B, C, H, W), jnp.float32)
    cost_volume = jax.random.uniform(k_cost, (B, D, H, W), jnp.float32)

    # Deterministic synthetic parameters (1x1 conv weights stored as (in, out)).
    w1 = jax.random.normal(k1, (C + D, Hc), jnp.float32) * 0.05   # fc1, no bias
    w2 = jax.random.normal(k2, (Hc, D), jnp.float32) * 0.05       # fc2, no bias
    wf = jax.random.normal(k3, (C + D, D), jnp.float32) * 0.05    # fusion conv W
    bf = jax.random.normal(k4, (D,), jnp.float32) * 0.05          # fusion conv b
    wsp = jax.random.normal(k5, (2, 7, 7), jnp.float32) * 0.05    # 7x7 spatial conv
    params = (w1, w2, wf, bf, wsp)

    out = cost_volume_modulation(img_features, cost_volume, params)
    out = jax.block_until_ready(out)

    ref = jax.block_until_ready(reference(img_features, cost_volume, params))
    assert out.shape == (B, D, H, W)
    assert jnp.allclose(out, ref, rtol=1e-3, atol=1e-3), \
        float(jnp.max(jnp.abs(out - ref)))

    print("KERNEL_OK")
</pallas_src>

<mosaic_0001>
module attributes {stable_mosaic.version = 11 : i64} {
  func.func @_fused_kernel(%arg0: i32, %arg1: memref<1x64x256xf32, #tpu.memory_space<vmem>>, %arg2: memref<1x128x256xf32, #tpu.memory_space<vmem>>, %arg3: memref<64x12xf32, #tpu.memory_space<vmem>>, %arg4: memref<128x12xf32, #tpu.memory_space<vmem>>, %arg5: memref<12x128xf32, #tpu.memory_space<vmem>>, %arg6: memref<128x64xf32, #tpu.memory_space<vmem>>, %arg7: memref<128x128xf32, #tpu.memory_space<vmem>>, %arg8: memref<128x1xf32, #tpu.memory_space<vmem>>, %arg9: memref<2x49xf32, #tpu.memory_space<vmem>>, %arg10: memref<1x128x256xf32, #tpu.memory_space<vmem>>, %arg11: memref<2x358xf32, #tpu.memory_space<vmem>>) attributes {dimension_semantics = [#tpu.dimension_semantics<parallel>], iteration_bounds = array<i64: 2>, scalar_prefetch = 0 : i64, scratch_operands = 1 : i64, tpu.core_type = #tpu.core_type<tc>, window_params = [{transform_indices = @transform_0, window_bounds = array<i64: 1, 64, 256>}, {transform_indices = @transform_1, window_bounds = array<i64: 1, 128, 256>}, {pipeline_mode = #tpu.pipeline_mode<synchronous>, transform_indices = @transform_2, window_bounds = array<i64: 64, 12>}, {pipeline_mode = #tpu.pipeline_mode<synchronous>, transform_indices = @transform_3, window_bounds = array<i64: 128, 12>}, {pipeline_mode = #tpu.pipeline_mode<synchronous>, transform_indices = @transform_4, window_bounds = array<i64: 12, 128>}, {pipeline_mode = #tpu.pipeline_mode<synchronous>, transform_indices = @transform_5, window_bounds = array<i64: 128, 64>}, {pipeline_mode = #tpu.pipeline_mode<synchronous>, transform_indices = @transform_6, window_bounds = array<i64: 128, 128>}, {pipeline_mode = #tpu.pipeline_mode<synchronous>, transform_indices = @transform_7, window_bounds = array<i64: 128, 1>}, {pipeline_mode = #tpu.pipeline_mode<synchronous>, transform_indices = @transform_8, window_bounds = array<i64: 2, 49>}, {transform_indices = @transform_9, window_bounds = array<i64: 1, 128, 256>}]} {
    %c0 = arith.constant 0 : index
    %c0_0 = arith.constant 0 : index
    %c0_1 = arith.constant 0 : index
    %0 = vector.load %arg1[%c0, %c0_0, %c0_1] : memref<1x64x256xf32, #tpu.memory_space<vmem>>, vector<1x64x256xf32>
    %1 = vector.shape_cast %0 : vector<1x64x256xf32> to vector<64x256xf32>
    %c0_2 = arith.constant 0 : index
    %c0_3 = arith.constant 0 : index
    %c0_4 = arith.constant 0 : index
    %2 = vector.load %arg2[%c0_2, %c0_3, %c0_4] : memref<1x128x256xf32, #tpu.memory_space<vmem>>, vector<1x128x256xf32>
    %3 = vector.shape_cast %2 : vector<1x128x256xf32> to vector<128x256xf32>
    %cst = arith.constant dense<0.000000e+00> : vector<64xf32>
    %4 = vector.multi_reduction <add>, %1, %cst [1] : vector<64x256xf32> to vector<64xf32>
    %5 = vector.shape_cast %4 : vector<64xf32> to vector<64x1xf32>
    %cst_5 = arith.constant 2.560000e+02 : f32
    %6 = vector.broadcast %cst_5 : f32 to vector<64x1xf32>
    %7 = arith.divf %5, %6 : vector<64x1xf32>
    %cst_6 = arith.constant dense<0.000000e+00> : vector<128xf32>
    %8 = vector.multi_reduction <add>, %3, %cst_6 [1] : vector<128x256xf32> to vector<128xf32>
    %9 = vector.shape_cast %8 : vector<128xf32> to vector<128x1xf32>
    %cst_7 = arith.constant 2.560000e+02 : f32
    %10 = vector.broadcast %cst_7 : f32 to vector<128x1xf32>
    %11 = arith.divf %9, %10 : vector<128x1xf32>
    %c0_8 = arith.constant 0 : index
    %c0_9 = arith.constant 0 : index
    %12 = vector.load %arg3[%c0_8, %c0_9] : memref<64x12xf32, #tpu.memory_space<vmem>>, vector<64x12xf32>
    %13 = vector.broadcast %7 : vector<64x1xf32> to vector<64x12xf32>
    %14 = arith.mulf %12, %13 : vector<64x12xf32>
    %cst_10 = arith.constant dense<0.000000e+00> : vector<12xf32>
    %15 = vector.multi_reduction <add>, %14, %cst_10 [0] : vector<64x12xf32> to vector<12xf32>
    %16 = vector.shape_cast %15 : vector<12xf32> to vector<1x12xf32>
    %c0_11 = arith.constant 0 : index
    %c0_12 = arith.constant 0 : index
    %17 = vector.load %arg4[%c0_11, %c0_12] : memref<128x12xf32, #tpu.memory_space<vmem>>, vector<128x12xf32>
    %18 = vector.broadcast %11 : vector<128x1xf32> to vector<128x12xf32>
    %19 = arith.mulf %17, %18 : vector<128x12xf32>
    %cst_13 = arith.constant dense<0.000000e+00> : vector<12xf32>
    %20 = vector.multi_reduction <add>, %19, %cst_13 [0] : vector<128x12xf32> to vector<12xf32>
    %21 = vector.shape_cast %20 : vector<12xf32> to vector<1x12xf32>
    %22 = arith.addf %16, %21 : vector<1x12xf32>
    %cst_14 = arith.constant 0.000000e+00 : f32
    %23 = vector.broadcast %cst_14 : f32 to vector<1x12xf32>
    %24 = arith.maximumf %22, %23 : vector<1x12xf32>
    %25 = tpu.iota {dimensions = array<i32: 0>} : vector<12x12xi32>
    %26 = tpu.iota {dimensions = array<i32: 1>} : vector<12x12xi32>
    %27 = arith.cmpi eq, %25, %26 : vector<12x12xi32>
    %cst_15 = arith.constant 0.000000e+00 : f32
    %28 = vector.shape_cast %24 : vector<1x12xf32> to vector<1x12xf32>
    %29 = vector.broadcast %28 : vector<1x12xf32> to vector<12x12xf32>
    %30 = vector.broadcast %cst_15 : f32 to vector<12x12xf32>
    %31 = arith.select %27, %29, %30 : vector<12x12xi1>, vector<12x12xf32>
    %cst_16 = arith.constant dense<0.000000e+00> : vector<12xf32>
    %32 = vector.multi_reduction <add>, %31, %cst_16 [1] : vector<12x12xf32> to vector<12xf32>
    %33 = vector.shape_cast %32 : vector<12xf32> to vector<12x1xf32>
    %c0_17 = arith.constant 0 : index
    %c0_18 = arith.constant 0 : index
    %34 = vector.load %arg5[%c0_17, %c0_18] : memref<12x128xf32, #tpu.memory_space<vmem>>, vector<12x128xf32>
    %35 = vector.broadcast %33 : vector<12x1xf32> to vector<12x128xf32>
    %36 = arith.mulf %34, %35 : vector<12x128xf32>
    %cst_19 = arith.constant dense<0.000000e+00> : vector<128xf32>
    %37 = vector.multi_reduction <add>, %36, %cst_19 [0] : vector<12x128xf32> to vector<128xf32>
    %38 = vector.shape_cast %37 : vector<128xf32> to vector<1x128xf32>
    %39 = arith.negf %38 : vector<1x128xf32>
    %40 = math.exp %39 : vector<1x128xf32>
    %cst_20 = arith.constant 1.000000e+00 : f32
    %41 = vector.broadcast %cst_20 : f32 to vector<1x128xf32>
    %42 = arith.addf %41, %40 : vector<1x128xf32>
    %43 = arith.divf %41, %42 : vector<1x128xf32>
    %c0_21 = arith.constant 0 : index
    %c0_22 = arith.constant 0 : index
    %44 = vector.load %arg6[%c0_21, %c0_22] : memref<128x64xf32, #tpu.memory_space<vmem>>, vector<128x64xf32>
    %cst_23 = arith.constant dense<0.000000e+00> : vector<128x256xf32>
    %45 = tpu.matmul %44, %1, %cst_23 {dimension_numbers = #tpu.dot_dimension_numbers<[1], [0], [0], [1], [0, 0, 1, 1], [], []>} : vector<128x64xf32>, vector<64x256xf32>, vector<128x256xf32> -> vector<128x256xf32>
    %c0_24 = arith.constant 0 : index
    %c0_25 = arith.constant 0 : index
    %46 = vector.load %arg7[%c0_24, %c0_25] : memref<128x128xf32, #tpu.memory_space<vmem>>, vector<128x128xf32>
    %47 = vector.broadcast %43 : vector<1x128xf32> to vector<128x128xf32>
    %48 = arith.mulf %46, %47 : vector<128x128xf32>
    %cst_26 = arith.constant dense<0.000000e+00> : vector<128x256xf32>
    %49 = tpu.matmul %48, %3, %cst_26 {dimension_numbers = #tpu.dot_dimension_numbers<[1], [0], [0], [1], [0, 0, 1, 1], [], []>} : vector<128x128xf32>, vector<128x256xf32>, vector<128x256xf32> -> vector<128x256xf32>
    %50 = arith.addf %45, %49 : vector<128x256xf32>
    %c0_27 = arith.constant 0 : index
    %c0_28 = arith.constant 0 : index
    %51 = vector.load %arg8[%c0_27, %c0_28] : memref<128x1xf32, #tpu.memory_space<vmem>>, vector<128x1xf32>
    %52 = vector.broadcast %51 : vector<128x1xf32> to vector<128x256xf32>
    %53 = arith.addf %50, %52 : vector<128x256xf32>
    %cst_29 = arith.constant dense<0.000000e+00> : vector<256xf32>
    %54 = vector.multi_reduction <add>, %1, %cst_29 [0] : vector<64x256xf32> to vector<256xf32>
    %55 = vector.shape_cast %54 : vector<256xf32> to vector<1x256xf32>
    %cst_30 = arith.constant dense<0.000000e+00> : vector<256xf32>
    %56 = vector.multi_reduction <add>, %53, %cst_30 [0] : vector<128x256xf32> to vector<256xf32>
    %57 = vector.shape_cast %56 : vector<256xf32> to vector<1x256xf32>
    %58 = arith.addf %55, %57 : vector<1x256xf32>
    %cst_31 = arith.constant 0.00520833349 : f32
    %59 = vector.broadcast %cst_31 : f32 to vector<1x256xf32>
    %60 = arith.mulf %58, %59 : vector<1x256xf32>
    %cst_32 = arith.constant dense<0xFF800000> : vector<256xf32>
    %61 = vector.multi_reduction <maximumf>, %1, %cst_32 [0] : vector<64x256xf32> to vector<256xf32>
    %62 = vector.shape_cast %61 : vector<256xf32> to vector<1x256xf32>
    %cst_33 = arith.constant dense<0xFF800000> : vector<256xf32>
    %63 = vector.multi_reduction <maximumf>, %53, %cst_33 [0] : vector<128x256xf32> to vector<256xf32>
    %64 = vector.shape_cast %63 : vector<256xf32> to vector<1x256xf32>
    %65 = arith.maximumf %62, %64 : vector<1x256xf32>
    %66 = tpu.concatenate %60, %65 in 0 : vector<1x256xf32>, vector<1x256xf32> -> vector<2x256xf32>
    %cst_34 = arith.constant 0.000000e+00 : f32
    %67 = vector.broadcast %cst_34 : f32 to vector<2x51xf32>
    %c0_35 = arith.constant 0 : index
    %c0_36 = arith.constant 0 : index
    %68 = vector.load %arg11[%c0_35, %c0_36] : memref<2x358xf32, #tpu.memory_space<vmem>>, vector<2x51xf32>
    tpu.vector_store %arg11[%c0_35, %c0_36], %67 {strides = array<i32>} : memref<2x358xf32, #tpu.memory_space<vmem>>, vector<2x51xf32>,
    %cst_37 = arith.constant 0.000000e+00 : f32
    %69 = vector.broadcast %cst_37 : f32 to vector<2x51xf32>
    %c0_38 = arith.constant 0 : index
    %c307 = arith.constant 307 : index
    %70 = vector.load %arg11[%c0_38, %c307] : memref<2x358xf32, #tpu.memory_space<vmem>>, vector<2x51xf32>
    tpu.vector_store %arg11[%c0_38, %c307], %69 {strides = array<i32>} : memref<2x358xf32, #tpu.memory_space<vmem>>, vector<2x51xf32>,
    %c0_39 = arith.constant 0 : index
    %c51 = arith.constant 51 : index
    %71 = vector.load %arg11[%c0_39, %c51] : memref<2x358xf32, #tpu.memory_space<vmem>>, vector<2x256xf32>
    tpu.vector_store %arg11[%c0_39, %c51], %66 {strides = array<i32>} : memref<2x358xf32, #tpu.memory_space<vmem>>, vector<2x256xf32>,
    %cst_40 = arith.constant 0.000000e+00 : f32
    %72 = vector.broadcast %cst_40 : f32 to vector<2x256xf32>
    %cst_41 = arith.constant 0.000000e+00 : f32
    %73 = vector.broadcast %cst_41 : f32 to vector<2x256xf32>
    %cst_42 = arith.constant 0.000000e+00 : f32
    %74 = vector.broadcast %cst_42 : f32 to vector<2x256xf32>
    %cst_43 = arith.constant 0.000000e+00 : f32
    %75 = vector.broadcast %cst_43 : f32 to vector<2x256xf32>
    %cst_44 = arith.constant 0.000000e+00 : f32
    %76 = vector.broadcast %cst_44 : f32 to vector<2x256xf32>
    %cst_45 = arith.constant 0.000000e+00 : f32
    %77 = vector.broadcast %cst_45 : f32 to vector<2x256xf32>
    %cst_46 = arith.constant 0.000000e+00 : f32
    %78 = vector.broadcast %cst_46 : f32 to vector<2x256xf32>
    %c0_47 = arith.constant 0 : index
    %c0_48 = arith.constant 0 : index
    %79 = vector.load %arg9[%c0_47, %c0_48] : memref<2x49xf32, #tpu.memory_space<vmem>>, vector<2x1xf32>
    %c0_49 = arith.constant 0 : index
    %c0_50 = arith.constant 0 : index
    %80 = vector.load %arg11[%c0_49, %c0_50] : memref<2x358xf32, #tpu.memory_space<vmem>>, vector<2x256xf32>
    %81 = vector.broadcast %79 : vector<2x1xf32> to vector<2x256xf32>
    %82 = arith.mulf %80, %81 : vector<2x256xf32>
    %83 = arith.addf %72, %82 : vector<2x256xf32>
    %c0_51 = arith.constant 0 : index
    %c1 = arith.constant 1 : index
    %84 = vector.load %arg9[%c0_51, %c1] : memref<2x49xf32, #tpu.memory_space<vmem>>, vector<2x1xf32>
    %c0_52 = arith.constant 0 : index
    %c1_53 = arith.constant 1 : index
    %85 = vector.load %arg11[%c0_52, %c1_53] : memref<2x358xf32, #tpu.memory_space<vmem>>, vector<2x256xf32>
    %86 = vector.broadcast %84 : vector<2x1xf32> to vector<2x256xf32>
    %87 = arith.mulf %85, %86 : vector<2x256xf32>
    %88 = arith.addf %73, %87 : vector<2x256xf32>
    %c0_54 = arith.constant 0 : index
    %c2 = arith.constant 2 : index
    %89 = vector.load %arg9[%c0_54, %c2] : memref<2x49xf32, #tpu.memory_space<vmem>>, vector<2x1xf32>
    %c0_55 = arith.constant 0 : index
    %c2_56 = arith.constant 2 : index
    %90 = vector.load %arg11[%c0_55, %c2_56] : memref<2x358xf32, #tpu.memory_space<vmem>>, vector<2x256xf32>
    %91 = vector.broadcast %89 : vector<2x1xf32> to vector<2x256xf32>
    %92 = arith.mulf %90, %91 : vector<2x256xf32>
    %93 = arith.addf %74, %92 : vector<2x256xf32>
    %c0_57 = arith.constant 0 : index
    %c3 = arith.constant 3 : index
    %94 = vector.load %arg9[%c0_57, %c3] : memref<2x49xf32, #tpu.memory_space<vmem>>, vector<2x1xf32>
    %c0_58 = arith.constant 0 : index
    %c3_59 = arith.constant 3 : index
    %95 = vector.load %arg11[%c0_58, %c3_59] : memref<2x358xf32, #tpu.memory_space<vmem>>, vector<2x256xf32>
    %96 = vector.broadcast %94 : vector<2x1xf32> to vector<2x256xf32>
    %97 = arith.mulf %95, %96 : vector<2x256xf32>
    %98 = arith.addf %75, %97 : vector<2x256xf32>
    %c0_60 = arith.constant 0 : index
    %c4 = arith.constant 4 : index
    %99 = vector.load %arg9[%c0_60, %c4] : memref<2x49xf32, #tpu.memory_space<vmem>>, vector<2x1xf32>
    %c0_61 = arith.constant 0 : index
    %c4_62 = arith.constant 4 : index
    %100 = vector.load %arg11[%c0_61, %c4_62] : memref<2x358xf32, #tpu.memory_space<vmem>>, vector<2x256xf32>
    %101 = vector.broadcast %99 : vector<2x1xf32> to vector<2x256xf32>
    %102 = arith.mulf %100, %101 : vector<2x256xf32>
    %103 = arith.addf %76, %102 : vector<2x256xf32>
    %c0_63 = arith.constant 0 : index
    %c5 = arith.constant 5 : index
    %104 = vector.load %arg9[%c0_63, %c5] : memref<2x49xf32, #tpu.memory_space<vmem>>, vector<2x1xf32>
    %c0_64 = arith.constant 0 : index
    %c5_65 = arith.constant 5 : index
    %105 = vector.load %arg11[%c0_64, %c5_65] : memref<2x358xf32, #tpu.memory_space<vmem>>, vector<2x256xf32>
    %106 = vector.broadcast %104 : vector<2x1xf32> to vector<2x256xf32>
    %107 = arith.mulf %105, %106 : vector<2x256xf32>
    %108 = arith.addf %77, %107 : vector<2x256xf32>
    %c0_66 = arith.constant 0 : index
    %c6 = arith.constant 6 : index
    %109 = vector.load %arg9[%c0_66, %c6] : memref<2x49xf32, #tpu.memory_space<vmem>>, vector<2x1xf32>
    %c0_67 = arith.constant 0 : index
    %c6_68 = arith.constant 6 : index
    %110 = vector.load %arg11[%c0_67, %c6_68] : memref<2x358xf32, #tpu.memory_space<vmem>>, vector<2x256xf32>
    %111 = vector.broadcast %109 : vector<2x1xf32> to vector<2x256xf32>
    %112 = arith.mulf %110, %111 : vector<2x256xf32>
    %113 = arith.addf %78, %112 : vector<2x256xf32>
    %c0_69 = arith.constant 0 : index
    %c7 = arith.constant 7 : index
    %114 = vector.load %arg9[%c0_69, %c7] : memref<2x49xf32, #tpu.memory_space<vmem>>, vector<2x1xf32>
    %c0_70 = arith.constant 0 : index
    %c16 = arith.constant 16 : index
    %115 = vector.load %arg11[%c0_70, %c16] : memref<2x358xf32, #tpu.memory_space<vmem>>, vector<2x256xf32>
    %116 = vector.broadcast %114 : vector<2x1xf32> to vector<2x256xf32>
    %117 = arith.mulf %115, %116 : vector<2x256xf32>
    %118 = arith.addf %83, %117 : vector<2x256xf32>
    %c0_71 = arith.constant 0 : index
    %c8 = arith.constant 8 : index
    %119 = vector.load %arg9[%c0_71, %c8] : memref<2x49xf32, #tpu.memory_space<vmem>>, vector<2x1xf32>
    %c0_72 = arith.constant 0 : index
    %c17 = arith.constant 17 : index
    %120 = vector.load %arg11[%c0_72, %c17] : memref<2x358xf32, #tpu.memory_space<vmem>>, vector<2x256xf32>
    %121 = vector.broadcast %119 : vector<2x1xf32> to vector<2x256xf32>
    %122 = arith.mulf %120, %121 : vector<2x256xf32>
    %123 = arith.addf %88, %122 : vector<2x256xf32>
    %c0_73 = arith.constant 0 : index
    %c9 = arith.constant 9 : index
    %124 = vector.load %arg9[%c0_73, %c9] : memref<2x49xf32, #tpu.memory_space<vmem>>, vector<2x1xf32>
    %c0_74 = arith.constant 0 : index
    %c18 = arith.constant 18 : index
    %125 = vector.load %arg11[%c0_74, %c18] : memref<2x358xf32, #tpu.memory_space<vmem>>, vector<2x256xf32>
    %126 = vector.broadcast %124 : vector<2x1xf32> to vector<2x256xf32>
    %127 = arith.mulf %125, %126 : vector<2x256xf32>
    %128 = arith.addf %93, %127 : vector<2x256xf32>
    %c0_75 = arith.constant 0 : index
    %c10 = arith.constant 10 : index
    %129 = vector.load %arg9[%c0_75, %c10] : memref<2x49xf32, #tpu.memory_space<vmem>>, vector<2x1xf32>
    %c0_76 = arith.constant 0 : index
    %c19 = arith.constant 19 : index
    %130 = vector.load %arg11[%c0_76, %c19] : memref<2x358xf32, #tpu.memory_space<vmem>>, vector<2x256xf32>
    %131 = vector.broadcast %129 : vector<2x1xf32> to vector<2x256xf32>
    %132 = arith.mulf %130, %131 : vector<2x256xf32>
    %133 = arith.addf %98, %132 : vector<2x256xf32>
    %c0_77 = arith.constant 0 : index
    %c11 = arith.constant 11 : index
    %134 = vector.load %arg9[%c0_77, %c11] : memref<2x49xf32, #tpu.memory_space<vmem>>, vector<2x1xf32>
    %c0_78 = arith.constant 0 : index
    %c20 = arith.constant 20 : index
    %135 = vector.load %arg11[%c0_78, %c20] : memref<2x358xf32, #tpu.memory_space<vmem>>, vector<2x256xf32>
    %136 = vector.broadcast %134 : vector<2x1xf32> to vector<2x256xf32>
    %137 = arith.mulf %135, %136 : vector<2x256xf32>
    %138 = arith.addf %103, %137 : vector<2x256xf32>
    %c0_79 = arith.constant 0 : index
    %c12 = arith.constant 12 : index
    %139 = vector.load %arg9[%c0_79, %c12] : memref<2x49xf32, #tpu.memory_space<vmem>>, vector<2x1xf32>
    %c0_80 = arith.constant 0 : index
    %c21 = arith.constant 21 : index
    %140 = vector.load %arg11[%c0_80, %c21] : memref<2x358xf32, #tpu.memory_space<vmem>>, vector<2x256xf32>
    %141 = vector.broadcast %139 : vector<2x1xf32> to vector<2x256xf32>
    %142 = arith.mulf %140, %141 : vector<2x256xf32>
    %143 = arith.addf %108, %142 : vector<2x256xf32>
    %c0_81 = arith.constant 0 : index
    %c13 = arith.constant 13 : index
    %144 = vector.load %arg9[%c0_81, %c13] : memref<2x49xf32, #tpu.memory_space<vmem>>, vector<2x1xf32>
    %c0_82 = arith.constant 0 : index
    %c22 = arith.constant 22 : index
    %145 = vector.load %arg11[%c0_82, %c22] : memref<2x358xf32, #tpu.memory_space<vmem>>, vector<2x256xf32>
    %146 = vector.broadcast %144 : vector<2x1xf32> to vector<2x256xf32>
    %147 = arith.mulf %145, %146 : vector<2x256xf32>
    %148 = arith.addf %113, %147 : vector<2x256xf32>
    %c0_83 = arith.constant 0 : index
    %c14 = arith.constant 14 : index
    %149 = vector.load %arg9[%c0_83, %c14] : memref<2x49xf32, #tpu.memory_space<vmem>>, vector<2x1xf32>
    %c0_84 = arith.constant 0 : index
    %c32 = arith.constant 32 : index
    %150 = vector.load %arg11[%c0_84, %c32] : memref<2x358xf32, #tpu.memory_space<vmem>>, vector<2x256xf32>
    %151 = vector.broadcast %149 : vector<2x1xf32> to vector<2x256xf32>
    %152 = arith.mulf %150, %151 : vector<2x256xf32>
    %153 = arith.addf %118, %152 : vector<2x256xf32>
    %c0_85 = arith.constant 0 : index
    %c15 = arith.constant 15 : index
    %154 = vector.load %arg9[%c0_85, %c15] : memref<2x49xf32, #tpu.memory_space<vmem>>, vector<2x1xf32>
    %c0_86 = arith.constant 0 : index
    %c33 = arith.constant 33 : index
    %155 = vector.load %arg11[%c0_86, %c33] : memref<2x358xf32, #tpu.memory_space<vmem>>, vector<2x256xf32>
    %156 = vector.broadcast %154 : vector<2x1xf32> to vector<2x256xf32>
    %157 = arith.mulf %155, %156 : vector<2x256xf32>
    %158 = arith.addf %123, %157 : vector<2x256xf32>
    %c0_87 = arith.constant 0 : index
    %c16_88 = arith.constant 16 : index
    %159 = vector.load %arg9[%c0_87, %c16_88] : memref<2x49xf32, #tpu.memory_space<vmem>>, vector<2x1xf32>
    %c0_89 = arith.constant 0 : index
    %c34 = arith.constant 34 : index
    %160 = vector.load %arg11[%c0_89, %c34] : memref<2x358xf32, #tpu.memory_space<vmem>>, vector<2x256xf32>
    %161 = vector.broadcast %159 : vector<2x1xf32> to vector<2x256xf32>
    %162 = arith.mulf %160, %161 : vector<2x256xf32>
    %163 = arith.addf %128, %162 : vector<2x256xf32>
    %c0_90 = arith.constant 0 : index
    %c17_91 = arith.constant 17 : index
    %164 = vector.load %arg9[%c0_90, %c17_91] : memref<2x49xf32, #tpu.memory_space<vmem>>, vector<2x1xf32>
    %c0_92 = arith.constant 0 : index
    %c35 = arith.constant 35 : index
    %165 = vector.load %arg11[%c0_92, %c35] : memref<2x358xf32, #tpu.memory_space<vmem>>, vector<2x256xf32>
    %166 = vector.broadcast %164 : vector<2x1xf32> to vector<2x256xf32>
    %167 = arith.mulf %165, %166 : vector<2x256xf32>
    %168 = arith.addf %133, %167 : vector<2x256xf32>
    %c0_93 = arith.constant 0 : index
    %c18_94 = arith.constant 18 : index
    %169 = vector.load %arg9[%c0_93, %c18_94] : memref<2x49xf32, #tpu.memory_space<vmem>>, vector<2x1xf32>
    %c0_95 = arith.constant 0 : index
    %c36 = arith.constant 36 : index
    %170 = vector.load %arg11[%c0_95, %c36] : memref<2x358xf32, #tpu.memory_space<vmem>>, vector<2x256xf32>
    %171 = vector.broadcast %169 : vector<2x1xf32> to vector<2x256xf32>
    %172 = arith.mulf %170, %171 : vector<2x256xf32>
    %173 = arith.addf %138, %172 : vector<2x256xf32>
    %c0_96 = arith.constant 0 : index
    %c19_97 = arith.constant 19 : index
    %174 = vector.load %arg9[%c0_96, %c19_97] : memref<2x49xf32, #tpu.memory_space<vmem>>, vector<2x1xf32>
    %c0_98 = arith.constant 0 : index
    %c37 = arith.constant 37 : index
    %175 = vector.load %arg11[%c0_98, %c37] : memref<2x358xf32, #tpu.memory_space<vmem>>, vector<2x256xf32>
    %176 = vector.broadcast %174 : vector<2x1xf32> to vector<2x256xf32>
    %177 = arith.mulf %175, %176 : vector<2x256xf32>
    %178 = arith.addf %143, %177 : vector<2x256xf32>
    %c0_99 = arith.constant 0 : index
    %c20_100 = arith.constant 20 : index
    %179 = vector.load %arg9[%c0_99, %c20_100] : memref<2x49xf32, #tpu.memory_space<vmem>>, vector<2x1xf32>
    %c0_101 = arith.constant 0 : index
    %c38 = arith.constant 38 : index
    %180 = vector.load %arg11[%c0_101, %c38] : memref<2x358xf32, #tpu.memory_space<vmem>>, vector<2x256xf32>
    %181 = vector.broadcast %179 : vector<2x1xf32> to vector<2x256xf32>
    %182 = arith.mulf %180, %181 : vector<2x256xf32>
    %183 = arith.addf %148, %182 : vector<2x256xf32>
    %c0_102 = arith.constant 0 : index
    %c21_103 = arith.constant 21 : index
    %184 = vector.load %arg9[%c0_102, %c21_103] : memref<2x49xf32, #tpu.memory_space<vmem>>, vector<2x1xf32>
    %c0_104 = arith.constant 0 : index
    %c48 = arith.constant 48 : index
    %185 = vector.load %arg11[%c0_104, %c48] : memref<2x358xf32, #tpu.memory_space<vmem>>, vector<2x256xf32>
    %186 = vector.broadcast %184 : vector<2x1xf32> to vector<2x256xf32>
    %187 = arith.mulf %185, %186 : vector<2x256xf32>
    %188 = arith.addf %153, %187 : vector<2x256xf32>
    %c0_105 = arith.constant 0 : index
    %c22_106 = arith.constant 22 : index
    %189 = vector.load %arg9[%c0_105, %c22_106] : memref<2x49xf32, #tpu.memory_space<vmem>>, vector<2x1xf32>
    %c0_107 = arith.constant 0 : index
    %c49 = arith.constant 49 : index
    %190 = vector.load %arg11[%c0_107, %c49] : memref<2x358xf32, #tpu.memory_space<vmem>>, vector<2x256xf32>
    %191 = vector.broadcast %189 : vector<2x1xf32> to vector<2x256xf32>
    %192 = arith.mulf %190, %191 : vector<2x256xf32>
    %193 = arith.addf %158, %192 : vector<2x256xf32>
    %c0_108 = arith.constant 0 : index
    %c23 = arith.constant 23 : index
    %194 = vector.load %arg9[%c0_108, %c23] : memref<2x49xf32, #tpu.memory_space<vmem>>, vector<2x1xf32>
    %c0_109 = arith.constant 0 : index
    %c50 = arith.constant 50 : index
    %195 = vector.load %arg11[%c0_109, %c50] : memref<2x358xf32, #tpu.memory_space<vmem>>, vector<2x256xf32>
    %196 = vector.broadcast %194 : vector<2x1xf32> to vector<2x256xf32>
    %197 = arith.mulf %195, %196 : vector<2x256xf32>
    %198 = arith.addf %163, %197 : vector<2x256xf32>
    %c0_110 = arith.constant 0 : index
    %c24 = arith.constant 24 : index
    %199 = vector.load %arg9[%c0_110, %c24] : memref<2x49xf32, #tpu.memory_space<vmem>>, vector<2x1xf32>
    %c0_111 = arith.constant 0 : index
    %c51_112 = arith.constant 51 : index
    %200 = vector.load %arg11[%c0_111, %c51_112] : memref<2x358xf32, #tpu.memory_space<vmem>>, vector<2x256xf32>
    %201 = vector.broadcast %199 : vector<2x1xf32> to vector<2x256xf32>
    %202 = arith.mulf %200, %201 : vector<2x256xf32>
    %203 = arith.addf %168, %202 : vector<2x256xf32>
    %c0_113 = arith.constant 0 : index
    %c25 = arith.constant 25 : index
    %204 = vector.load %arg9[%c0_113, %c25] : memref<2x49xf32, #tpu.memory_space<vmem>>, vector<2x1xf32>
    %c0_114 = arith.constant 0 : index
    %c52 = arith.constant 52 : index
    %205 = vector.load %arg11[%c0_114, %c52] : memref<2x358xf32, #tpu.memory_space<vmem>>, vector<2x256xf32>
    %206 = vector.broadcast %204 : vector<2x1xf32> to vector<2x256xf32>
    %207 = arith.mulf %205, %206 : vector<2x256xf32>
    %208 = arith.addf %173, %207 : vector<2x256xf32>
    %c0_115 = arith.constant 0 : index
    %c26 = arith.constant 26 : index
    %209 = vector.load %arg9[%c0_115, %c26] : memref<2x49xf32, #tpu.memory_space<vmem>>, vector<2x1xf32>
    %c0_116 = arith.constant 0 : index
    %c53 = arith.constant 53 : index
    %210 = vector.load %arg11[%c0_116, %c53] : memref<2x358xf32, #tpu.memory_space<vmem>>, vector<2x256xf32>
    %211 = vector.broadcast %209 : vector<2x1xf32> to vector<2x256xf32>
    %212 = arith.mulf %210, %211 : vector<2x256xf32>
    %213 = arith.addf %178, %212 : vector<2x256xf32>
    %c0_117 = arith.constant 0 : index
    %c27 = arith.constant 27 : index
    %214 = vector.load %arg9[%c0_117, %c27] : memref<2x49xf32, #tpu.memory_space<vmem>>, vector<2x1xf32>
    %c0_118 = arith.constant 0 : index
    %c54 = arith.constant 54 : index
    %215 = vector.load %arg11[%c0_118, %c54] : memref<2x358xf32, #tpu.memory_space<vmem>>, vector<2x256xf32>
    %216 = vector.broadcast %214 : vector<2x1xf32> to vector<2x256xf32>
    %217 = arith.mulf %215, %216 : vector<2x256xf32>
    %218 = arith.addf %183, %217 : vector<2x256xf32>
    %c0_119 = arith.constant 0 : index
    %c28 = arith.constant 28 : index
    %219 = vector.load %arg9[%c0_119, %c28] : memref<2x49xf32, #tpu.memory_space<vmem>>, vector<2x1xf32>
    %c0_120 = arith.constant 0 : index
    %c64 = arith.constant 64 : index
    %220 = vector.load %arg11[%c0_120, %c64] : memref<2x358xf32, #tpu.memory_space<vmem>>, vector<2x256xf32>
    %221 = vector.broadcast %219 : vector<2x1xf32> to vector<2x256xf32>
    %222 = arith.mulf %220, %221 : vector<2x256xf32>
    %223 = arith.addf %188, %222 : vector<2x256xf32>
    %c0_121 = arith.constant 0 : index
    %c29 = arith.constant 29 : index
    %224 = vector.load %arg9[%c0_121, %c29] : memref<2x49xf32, #tpu.memory_space<vmem>>, vector<2x1xf32>
    %c0_122 = arith.constant 0 : index
    %c65 = arith.constant 65 : index
    %225 = vector.load %arg11[%c0_122, %c65] : memref<2x358xf32, #tpu.memory_space<vmem>>, vector<2x256xf32>
    %226 = vector.broadcast %224 : vector<2x1xf32> to vector<2x256xf32>
    %227 = arith.mulf %225, %226 : vector<2x256xf32>
    %228 = arith.addf %193, %227 : vector<2x256xf32>
    %c0_123 = arith.constant 0 : index
    %c30 = arith.constant 30 : index
    %229 = vector.load %arg9[%c0_123, %c30] : memref<2x49xf32, #tpu.memory_space<vmem>>, vector<2x1xf32>
    %c0_124 = arith.constant 0 : index
    %c66 = arith.constant 66 : index
    %230 = vector.load %arg11[%c0_124, %c66] : memref<2x358xf32, #tpu.memory_space<vmem>>, vector<2x256xf32>
    %231 = vector.broadcast %229 : vector<2x1xf32> to vector<2x256xf32>
    %232 = arith.mulf %230, %231 : vector<2x256xf32>
    %233 = arith.addf %198, %232 : vector<2x256xf32>
    %c0_125 = arith.constant 0 : index
    %c31 = arith.constant 31 : index
    %234 = vector.load %arg9[%c0_125, %c31] : memref<2x49xf32, #tpu.memory_space<vmem>>, vector<2x1xf32>
    %c0_126 = arith.constant 0 : index
    %c67 = arith.constant 67 : index
    %235 = vector.load %arg11[%c0_126, %c67] : memref<2x358xf32, #tpu.memory_space<vmem>>, vector<2x256xf32>
    %236 = vector.broadcast %234 : vector<2x1xf32> to vector<2x256xf32>
    %237 = arith.mulf %235, %236 : vector<2x256xf32>
    %238 = arith.addf %203, %237 : vector<2x256xf32>
    %c0_127 = arith.constant 0 : index
    %c32_128 = arith.constant 32 : index
    %239 = vector.load %arg9[%c0_127, %c32_128] : memref<2x49xf32, #tpu.memory_space<vmem>>, vector<2x1xf32>
    %c0_129 = arith.constant 0 : index
    %c68 = arith.constant 68 : index
    %240 = vector.load %arg11[%c0_129, %c68] : memref<2x358xf32, #tpu.memory_space<vmem>>, vector<2x256xf32>
    %241 = vector.broadcast %239 : vector<2x1xf32> to vector<2x256xf32>
    %242 = arith.mulf %240, %241 : vector<2x256xf32>
    %243 = arith.addf %208, %242 : vector<2x256xf32>
    %c0_130 = arith.constant 0 : index
    %c33_131 = arith.constant 33 : index
    %244 = vector.load %arg9[%c0_130, %c33_131] : memref<2x49xf32, #tpu.memory_space<vmem>>, vector<2x1xf32>
    %c0_132 = arith.constant 0 : index
    %c69 = arith.constant 69 : index
    %245 = vector.load %arg11[%c0_132, %c69] : memref<2x358xf32, #tpu.memory_space<vmem>>, vector<2x256xf32>
    %246 = vector.broadcast %244 : vector<2x1xf32> to vector<2x256xf32>
    %247 = arith.mulf %245, %246 : vector<2x256xf32>
    %248 = arith.addf %213, %247 : vector<2x256xf32>
    %c0_133 = arith.constant 0 : index
    %c34_134 = arith.constant 34 : index
    %249 = vector.load %arg9[%c0_133, %c34_134] : memref<2x49xf32, #tpu.memory_space<vmem>>, vector<2x1xf32>
    %c0_135 = arith.constant 0 : index
    %c70 = arith.constant 70 : index
    %250 = vector.load %arg11[%c0_135, %c70] : memref<2x358xf32, #tpu.memory_space<vmem>>, vector<2x256xf32>
    %251 = vector.broadcast %249 : vector<2x1xf32> to vector<2x256xf32>
    %252 = arith.mulf %250, %251 : vector<2x256xf32>
    %253 = arith.addf %218, %252 : vector<2x256xf32>
    %c0_136 = arith.constant 0 : index
    %c35_137 = arith.constant 35 : index
    %254 = vector.load %arg9[%c0_136, %c35_137] : memref<2x49xf32, #tpu.memory_space<vmem>>, vector<2x1xf32>
    %c0_138 = arith.constant 0 : index
    %c80 = arith.constant 80 : index
    %255 = vector.load %arg11[%c0_138, %c80] : memref<2x358xf32, #tpu.memory_space<vmem>>, vector<2x256xf32>
    %256 = vector.broadcast %254 : vector<2x1xf32> to vector<2x256xf32>
    %257 = arith.mulf %255, %256 : vector<2x256xf32>
    %258 = arith.addf %223, %257 : vector<2x256xf32>
    %c0_139 = arith.constant 0 : index
    %c36_140 = arith.constant 36 : index
    %259 = vector.load %arg9[%c0_139, %c36_140] : memref<2x49xf32, #tpu.memory_space<vmem>>, vector<2x1xf32>
    %c0_141 = arith.constant 0 : index
    %c81 = arith.constant 81 : index
    %260 = vector.load %arg11[%c0_141, %c81] : memref<2x358xf32, #tpu.memory_space<vmem>>, vector<2x256xf32>
    %261 = vector.broadcast %259 : vector<2x1xf32> to vector<2x256xf32>
    %262 = arith.mulf %260, %261 : vector<2x256xf32>
    %263 = arith.addf %228, %262 : vector<2x256xf32>
    %c0_142 = arith.constant 0 : index
    %c37_143 = arith.constant 37 : index
    %264 = vector.load %arg9[%c0_142, %c37_143] : memref<2x49xf32, #tpu.memory_space<vmem>>, vector<2x1xf32>
    %c0_144 = arith.constant 0 : index
    %c82 = arith.constant 82 : index
    %265 = vector.load %arg11[%c0_144, %c82] : memref<2x358xf32, #tpu.memory_space<vmem>>, vector<2x256xf32>
    %266 = vector.broadcast %264 : vector<2x1xf32> to vector<2x256xf32>
    %267 = arith.mulf %265, %266 : vector<2x256xf32>
    %268 = arith.addf %233, %267 : vector<2x256xf32>
    %c0_145 = arith.constant 0 : index
    %c38_146 = arith.constant 38 : index
    %269 = vector.load %arg9[%c0_145, %c38_146] : memref<2x49xf32, #tpu.memory_space<vmem>>, vector<2x1xf32>
    %c0_147 = arith.constant 0 : index
    %c83 = arith.constant 83 : index
    %270 = vector.load %arg11[%c0_147, %c83] : memref<2x358xf32, #tpu.memory_space<vmem>>, vector<2x256xf32>
    %271 = vector.broadcast %269 : vector<2x1xf32> to vector<2x256xf32>
    %272 = arith.mulf %270, %271 : vector<2x256xf32>
    %273 = arith.addf %238, %272 : vector<2x256xf32>
    %c0_148 = arith.constant 0 : index
    %c39 = arith.constant 39 : index
    %274 = vector.load %arg9[%c0_148, %c39] : memref<2x49xf32, #tpu.memory_space<vmem>>, vector<2x1xf32>
    %c0_149 = arith.constant 0 : index
    %c84 = arith.constant 84 : index
    %275 = vector.load %arg11[%c0_149, %c84] : memref<2x358xf32, #tpu.memory_space<vmem>>, vector<2x256xf32>
    %276 = vector.broadcast %274 : vector<2x1xf32> to vector<2x256xf32>
    %277 = arith.mulf %275, %276 : vector<2x256xf32>
    %278 = arith.addf %243, %277 : vector<2x256xf32>
    %c0_150 = arith.constant 0 : index
    %c40 = arith.constant 40 : index
    %279 = vector.load %arg9[%c0_150, %c40] : memref<2x49xf32, #tpu.memory_space<vmem>>, vector<2x1xf32>
    %c0_151 = arith.constant 0 : index
    %c85 = arith.constant 85 : index
    %280 = vector.load %arg11[%c0_151, %c85] : memref<2x358xf32, #tpu.memory_space<vmem>>, vector<2x256xf32>
    %281 = vector.broadcast %279 : vector<2x1xf32> to vector<2x256xf32>
    %282 = arith.mulf %280, %281 : vector<2x256xf32>
    %283 = arith.addf %248, %282 : vector<2x256xf32>
    %c0_152 = arith.constant 0 : index
    %c41 = arith.constant 41 : index
    %284 = vector.load %arg9[%c0_152, %c41] : memref<2x49xf32, #tpu.memory_space<vmem>>, vector<2x1xf32>
    %c0_153 = arith.constant 0 : index
    %c86 = arith.constant 86 : index
    %285 = vector.load %arg11[%c0_153, %c86] : memref<2x358xf32, #tpu.memory_space<vmem>>, vector<2x256xf32>
    %286 = vector.broadcast %284 : vector<2x1xf32> to vector<2x256xf32>
    %287 = arith.mulf %285, %286 : vector<2x256xf32>
    %288 = arith.addf %253, %287 : vector<2x256xf32>
    %c0_154 = arith.constant 0 : index
    %c42 = arith.constant 42 : index
    %289 = vector.load %arg9[%c0_154, %c42] : memref<2x49xf32, #tpu.memory_space<vmem>>, vector<2x1xf32>
    %c0_155 = arith.constant 0 : index
    %c96 = arith.constant 96 : index
    %290 = vector.load %arg11[%c0_155, %c96] : memref<2x358xf32, #tpu.memory_space<vmem>>, vector<2x256xf32>
    %291 = vector.broadcast %289 : vector<2x1xf32> to vector<2x256xf32>
    %292 = arith.mulf %290, %291 : vector<2x256xf32>
    %293 = arith.addf %258, %292 : vector<2x256xf32>
    %c0_156 = arith.constant 0 : index
    %c43 = arith.constant 43 : index
    %294 = vector.load %arg9[%c0_156, %c43] : memref<2x49xf32, #tpu.memory_space<vmem>>, vector<2x1xf32>
    %c0_157 = arith.constant 0 : index
    %c97 = arith.constant 97 : index
    %295 = vector.load %arg11[%c0_157, %c97] : memref<2x358xf32, #tpu.memory_space<vmem>>, vector<2x256xf32>
    %296 = vector.broadcast %294 : vector<2x1xf32> to vector<2x256xf32>
    %297 = arith.mulf %295, %296 : vector<2x256xf32>
    %298 = arith.addf %263, %297 : vector<2x256xf32>
    %c0_158 = arith.constant 0 : index
    %c44 = arith.constant 44 : index
    %299 = vector.load %arg9[%c0_158, %c44] : memref<2x49xf32, #tpu.memory_space<vmem>>, vector<2x1xf32>
    %c0_159 = arith.constant 0 : index
    %c98 = arith.constant 98 : index
    %300 = vector.load %arg11[%c0_159, %c98] : memref<2x358xf32, #tpu.memory_space<vmem>>, vector<2x256xf32>
    %301 = vector.broadcast %299 : vector<2x1xf32> to vector<2x256xf32>
    %302 = arith.mulf %300, %301 : vector<2x256xf32>
    %303 = arith.addf %268, %302 : vector<2x256xf32>
    %c0_160 = arith.constant 0 : index
    %c45 = arith.constant 45 : index
    %304 = vector.load %arg9[%c0_160, %c45] : memref<2x49xf32, #tpu.memory_space<vmem>>, vector<2x1xf32>
    %c0_161 = arith.constant 0 : index
    %c99 = arith.constant 99 : index
    %305 = vector.load %arg11[%c0_161, %c99] : memref<2x358xf32, #tpu.memory_space<vmem>>, vector<2x256xf32>
    %306 = vector.broadcast %304 : vector<2x1xf32> to vector<2x256xf32>
    %307 = arith.mulf %305, %306 : vector<2x256xf32>
    %308 = arith.addf %273, %307 : vector<2x256xf32>
    %c0_162 = arith.constant 0 : index
    %c46 = arith.constant 46 : index
    %309 = vector.load %arg9[%c0_162, %c46] : memref<2x49xf32, #tpu.memory_space<vmem>>, vector<2x1xf32>
    %c0_163 = arith.constant 0 : index
    %c100 = arith.constant 100 : index
    %310 = vector.load %arg11[%c0_163, %c100] : memref<2x358xf32, #tpu.memory_space<vmem>>, vector<2x256xf32>
    %311 = vector.broadcast %309 : vector<2x1xf32> to vector<2x256xf32>
    %312 = arith.mulf %310, %311 : vector<2x256xf32>
    %313 = arith.addf %278, %312 : vector<2x256xf32>
    %c0_164 = arith.constant 0 : index
    %c47 = arith.constant 47 : index
    %314 = vector.load %arg9[%c0_164, %c47] : memref<2x49xf32, #tpu.memory_space<vmem>>, vector<2x1xf32>
    %c0_165 = arith.constant 0 : index
    %c101 = arith.constant 101 : index
    %315 = vector.load %arg11[%c0_165, %c101] : memref<2x358xf32, #tpu.memory_space<vmem>>, vector<2x256xf32>
    %316 = vector.broadcast %314 : vector<2x1xf32> to vector<2x256xf32>
    %317 = arith.mulf %315, %316 : vector<2x256xf32>
    %318 = arith.addf %283, %317 : vector<2x256xf32>
    %c0_166 = arith.constant 0 : index
    %c48_167 = arith.constant 48 : index
    %319 = vector.load %arg9[%c0_166, %c48_167] : memref<2x49xf32, #tpu.memory_space<vmem>>, vector<2x1xf32>
    %c0_168 = arith.constant 0 : index
    %c102 = arith.constant 102 : index
    %320 = vector.load %arg11[%c0_168, %c102] : memref<2x358xf32, #tpu.memory_space<vmem>>, vector<2x256xf32>
    %321 = vector.broadcast %319 : vector<2x1xf32> to vector<2x256xf32>
    %322 = arith.mulf %320, %321 : vector<2x256xf32>
    %323 = arith.addf %288, %322 : vector<2x256xf32>
    %324 = tpu.iota {dimensions = array<i32: 1>} : vector<1x256xi32>
    %c16_i32 = arith.constant 16 : i32
    %c0_i32 = arith.constant 0 : i32
    %325 = arith.cmpi eq, %c16_i32, %c0_i32 : i32
    %c1_i32 = arith.constant 1 : i32
    %326 = arith.select %325, %c1_i32, %c16_i32 : i32
    %327 = vector.broadcast %326 : i32 to vector<1x256xi32>
    %328 = arith.remsi %324, %327 : vector<1x256xi32>
    %c0_i32_169 = arith.constant 0 : i32
    %329 = vector.broadcast %c0_i32_169 : i32 to vector<1x256xi32>
    %330 = arith.cmpi ne, %328, %329 : vector<1x256xi32>
    %c0_i32_170 = arith.constant 0 : i32
    %331 = vector.broadcast %c0_i32_170 : i32 to vector<1x256xi32>
    %332 = arith.cmpi slt, %328, %331 : vector<1x256xi32>
    %c0_i32_171 = arith.constant 0 : i32
    %333 = arith.cmpi slt, %326, %c0_i32_171 : i32
    %334 = vector.broadcast %333 : i1 to vector<1x256xi1>
    %335 = vector.broadcast %334 : vector<1x256xi1> to vector<1x256xi1>
    %336 = arith.xori %332, %335 : vector<1x256xi1>
    %337 = arith.andi %336, %330 : vector<1x256xi1>
    %338 = vector.broadcast %326 : i32 to vector<1x256xi32>
    %339 = arith.addi %328, %338 : vector<1x256xi32>
    %340 = arith.select %337, %339, %328 : vector<1x256xi1>, vector<1x256xi32>
    %c3_i32 = arith.constant 3 : i32
    %341 = vector.broadcast %c3_i32 : i32 to vector<1x256xi32>
    %342 = arith.cmpi sge, %340, %341 : vector<1x256xi32>
    %c19_i32 = arith.constant 19 : i32
    %343 = vector.broadcast %c19_i32 : i32 to vector<1x256xi32>
    %344 = arith.cmpi slt, %340, %343 : vector<1x256xi32>
    %345 = arith.andi %342, %344 : vector<1x256xi1>
    %cst_172 = arith.constant 0.000000e+00 : f32
    %346 = vector.shape_cast %345 : vector<1x256xi1> to vector<1x256xi1>
    %347 = vector.broadcast %346 : vector<1x256xi1> to vector<2x256xi1>
    %348 = vector.broadcast %cst_172 : f32 to vector<2x256xf32>
    %349 = arith.select %347, %293, %348 : vector<2x256xi1>, vector<2x256xf32>
    %350 = arith.addf %308, %349 : vector<2x256xf32>
    %c2_i32 = arith.constant 2 : i32
    %351 = vector.broadcast %c2_i32 : i32 to vector<1x256xi32>
    %352 = arith.cmpi sge, %340, %351 : vector<1x256xi32>
    %c18_i32 = arith.constant 18 : i32
    %353 = vector.broadcast %c18_i32 : i32 to vector<1x256xi32>
    %354 = arith.cmpi slt, %340, %353 : vector<1x256xi32>
    %355 = arith.andi %352, %354 : vector<1x256xi1>
    %cst_173 = arith.constant 0.000000e+00 : f32
    %356 = vector.shape_cast %355 : vector<1x256xi1> to vector<1x256xi1>
    %357 = vector.broadcast %356 : vector<1x256xi1> to vector<2x256xi1>
    %358 = vector.broadcast %cst_173 : f32 to vector<2x256xf32>
    %359 = arith.select %357, %298, %358 : vector<2x256xi1>, vector<2x256xf32>
    %360 = arith.addf %350, %359 : vector<2x256xf32>
    %c1_i32_174 = arith.constant 1 : i32
    %361 = vector.broadcast %c1_i32_174 : i32 to vector<1x256xi32>
    %362 = arith.cmpi sge, %340, %361 : vector<1x256xi32>
    %c17_i32 = arith.constant 17 : i32
    %363 = vector.broadcast %c17_i32 : i32 to vector<1x256xi32>
    %364 = arith.cmpi slt, %340, %363 : vector<1x256xi32>
    %365 = arith.andi %362, %364 : vector<1x256xi1>
    %cst_175 = arith.constant 0.000000e+00 : f32
    %366 = vector.shape_cast %365 : vector<1x256xi1> to vector<1x256xi1>
    %367 = vector.broadcast %366 : vector<1x256xi1> to vector<2x256xi1>
    %368 = vector.broadcast %cst_175 : f32 to vector<2x256xf32>
    %369 = arith.select %367, %303, %368 : vector<2x256xi1>, vector<2x256xf32>
    %370 = arith.addf %360, %369 : vector<2x256xf32>
    %c-1_i32 = arith.constant -1 : i32
    %371 = vector.broadcast %c-1_i32 : i32 to vector<1x256xi32>
    %372 = arith.cmpi sge, %340, %371 : vector<1x256xi32>
    %c15_i32 = arith.constant 15 : i32
    %373 = vector.broadcast %c15_i32 : i32 to vector<1x256xi32>
    %374 = arith.cmpi slt, %340, %373 : vector<1x256xi32>
    %375 = arith.andi %372, %374 : vector<1x256xi1>
    %cst_176 = arith.constant 0.000000e+00 : f32
    %376 = vector.shape_cast %375 : vector<1x256xi1> to vector<1x256xi1>
    %377 = vector.broadcast %376 : vector<1x256xi1> to vector<2x256xi1>
    %378 = vector.broadcast %cst_176 : f32 to vector<2x256xf32>
    %379 = arith.select %377, %313, %378 : vector<2x256xi1>, vector<2x256xf32>
    %380 = arith.addf %370, %379 : vector<2x256xf32>
    %c-2_i32 = arith.constant -2 : i32
    %381 = vector.broadcast %c-2_i32 : i32 to vector<1x256xi32>
    %382 = arith.cmpi sge, %340, %381 : vector<1x256xi32>
    %c14_i32 = arith.constant 14 : i32
    %383 = vector.broadcast %c14_i32 : i32 to vector<1x256xi32>
    %384 = arith.cmpi slt, %340, %383 : vector<1x256xi32>
    %385 = arith.andi %382, %384 : vector<1x256xi1>
    %cst_177 = arith.constant 0.000000e+00 : f32
    %386 = vector.shape_cast %385 : vector<1x256xi1> to vector<1x256xi1>
    %387 = vector.broadcast %386 : vector<1x256xi1> to vector<2x256xi1>
    %388 = vector.broadcast %cst_177 : f32 to vector<2x256xf32>
    %389 = arith.select %387, %318, %388 : vector<2x256xi1>, vector<2x256xf32>
    %390 = arith.addf %380, %389 : vector<2x256xf32>
    %c-3_i32 = arith.constant -3 : i32
    %391 = vector.broadcast %c-3_i32 : i32 to vector<1x256xi32>
    %392 = arith.cmpi sge, %340, %391 : vector<1x256xi32>
    %c13_i32 = arith.constant 13 : i32
    %393 = vector.broadcast %c13_i32 : i32 to vector<1x256xi32>
    %394 = arith.cmpi slt, %340, %393 : vector<1x256xi32>
    %395 = arith.andi %392, %394 : vector<1x256xi1>
    %cst_178 = arith.constant 0.000000e+00 : f32
    %396 = vector.shape_cast %395 : vector<1x256xi1> to vector<1x256xi1>
    %397 = vector.broadcast %396 : vector<1x256xi1> to vector<2x256xi1>
    %398 = vector.broadcast %cst_178 : f32 to vector<2x256xf32>
    %399 = arith.select %397, %323, %398 : vector<2x256xi1>, vector<2x256xf32>
    %400 = arith.addf %390, %399 : vector<2x256xf32>
    %cst_179 = arith.constant dense<0.000000e+00> : vector<256xf32>
    %401 = vector.multi_reduction <add>, %400, %cst_179 [0] : vector<2x256xf32> to vector<256xf32>
    %402 = vector.shape_cast %401 : vector<256xf32> to vector<1x256xf32>
    %403 = arith.negf %402 : vector<1x256xf32>
    %404 = math.exp %403 : vector<1x256xf32>
    %cst_180 = arith.constant 1.000000e+00 : f32
    %405 = vector.broadcast %cst_180 : f32 to vector<1x256xf32>
    %406 = arith.addf %405, %404 : vector<1x256xf32>
    %407 = arith.divf %405, %406 : vector<1x256xf32>
    %408 = vector.broadcast %407 : vector<1x256xf32> to vector<128x256xf32>
    %409 = arith.mulf %53, %408 : vector<128x256xf32>
    %c0_181 = arith.constant 0 : index
    %c0_182 = arith.constant 0 : index
    %c0_183 = arith.constant 0 : index
    %410 = vector.load %arg10[%c0_181, %c0_182, %c0_183] : memref<1x128x256xf32, #tpu.memory_space<vmem>>, vector<1x128x256xf32>
    %411 = vector.shape_cast %410 : vector<1x128x256xf32> to vector<128x256xf32>
    %412 = vector.shape_cast %409 : vector<128x256xf32> to vector<1x128x256xf32>
    tpu.vector_store %arg10[%c0_181, %c0_182, %c0_183], %412 {strides = array<i32>} : memref<1x128x256xf32, #tpu.memory_space<vmem>>, vector<1x128x256xf32>,
    return
  }
  func.func @transform_0(%arg0: i32) -> (i32, i32, i32) {
    %c0_i32 = arith.constant 0 : i32
    %c0_i32_0 = arith.constant 0 : i32
    %c0_i32_1 = arith.constant 0 : i32
    return %arg0, %c0_i32, %c0_i32_0 : i32, i32, i32
  }
  func.func @transform_1(%arg0: i32) -> (i32, i32, i32) {
    %c0_i32 = arith.constant 0 : i32
    %c0_i32_0 = arith.constant 0 : i32
    %c0_i32_1 = arith.constant 0 : i32
    return %arg0, %c0_i32, %c0_i32_0 : i32, i32, i32
  }
  func.func @transform_2(%arg0: i32) -> (i32, i32) {
    %c0_i32 = arith.constant 0 : i32
    %c0_i32_0 = arith.constant 0 : i32
    %c0_i32_1 = arith.constant 0 : i32
    return %c0_i32, %c0_i32_0 : i32, i32
  }
  func.func @transform_3(%arg0: i32) -> (i32, i32) {
    %c0_i32 = arith.constant 0 : i32
    %c0_i32_0 = arith.constant 0 : i32
    %c0_i32_1 = arith.constant 0 : i32
    return %c0_i32, %c0_i32_0 : i32, i32
  }
  func.func @transform_4(%arg0: i32) -> (i32, i32) {
    %c0_i32 = arith.constant 0 : i32
    %c0_i32_0 = arith.constant 0 : i32
    %c0_i32_1 = arith.constant 0 : i32
    return %c0_i32, %c0_i32_0 : i32, i32
  }
  func.func @transform_5(%arg0: i32) -> (i32, i32) {
    %c0_i32 = arith.constant 0 : i32
    %c0_i32_0 = arith.constant 0 : i32
    %c0_i32_1 = arith.constant 0 : i32
    return %c0_i32, %c0_i32_0 : i32, i32
  }
  func.func @transform_6(%arg0: i32) -> (i32, i32) {
    %c0_i32 = arith.constant 0 : i32
    %c0_i32_0 = arith.constant 0 : i32
    %c0_i32_1 = arith.constant 0 : i32
    return %c0_i32, %c0_i32_0 : i32, i32
  }
  func.func @transform_7(%arg0: i32) -> (i32, i32) {
    %c0_i32 = arith.constant 0 : i32
    %c0_i32_0 = arith.constant 0 : i32
    %c0_i32_1 = arith.constant 0 : i32
    return %c0_i32, %c0_i32_0 : i32, i32
  }
  func.func @transform_8(%arg0: i32) -> (i32, i32) {
    %c0_i32 = arith.constant 0 : i32
    %c0_i32_0 = arith.constant 0 : i32
    %c0_i32_1 = arith.constant 0 : i32
    return %c0_i32, %c0_i32_0 : i32, i32
  }
  func.func @transform_9(%arg0: i32) -> (i32, i32, i32) {
    %c0_i32 = arith.constant 0 : i32
    %c0_i32_0 = arith.constant 0 : i32
    %c0_i32_1 = arith.constant 0 : i32
    return %arg0, %c0_i32, %c0_i32_0 : i32, i32, i32
  }
}

</mosaic_0001>

<bundles_post_ra>
// kernel: cost_volume_modulation.1
= control target key start
LH: loop header
LB: loop body
LE: loop exit
PB: predicated region body
PF: predicated region fallthrough
CT: control target
= control target key end

     0   :  { %s3113_s30 = smov 0   ;;  %s4403_s0 = inlined_call_operand.vmem [shape: f32[2,64,256], index: 0, kind: input, shape index: {}]   ;;  %s4404_s1 = inlined_call_operand.vmem [shape: f32[2,128,256], index: 1, kind: input, shape index: {}]   ;;  %s4405_s2 = inlined_call_operand.vmem [shape: f32[64,12], index: 2, kind: input, shape index: {}]   ;;  %s4406_s3 = inlined_call_operand.vmem [shape: f32[128,12], index: 3, kind: input, shape index: {}]   ;;  %s4407_s4 = inlined_call_operand.vmem [shape: f32[12,128], index: 4, kind: input, shape index: {}]   ;;  %s4408_s5 = inlined_call_operand.vmem [shape: f32[128,64], index: 5, kind: input, shape index: {}]   ;;  %s4409_s6 = inlined_call_operand.vmem [shape: f32[128,128], index: 6, kind: input, shape index: {}]   ;;  %s4410_s7 = inlined_call_operand.vmem [shape: f32[128,1], index: 7, kind: input, shape index: {}]   ;;  %s4411_s8 = inlined_call_operand.vmem [shape: f32[2,49], index: 8, kind: input, shape index: {}]   ;;  %s4412_s9 = inlined_call_operand.vmem [shape: f32[2,128,256], index: 9, kind: output, shape index: {}]  }
   0x1 LB: > { %s2810_s10 = sadd.s32 4294967295, %s2995_s30   ;;  %p2814_p0 = scmp.ge.s32.totalorder %s2995_s30, 1  ;;  %s2995_s30 = sphi %s3113_s30, %s19_s30  }
   0x2   : > { %p297_p1 = scmp.lt.s32.totalorder %s2995_s30, 3 }
   0x4   : > { %p298_p2 = pnand %p2814_p0, %p297_p1 }
   0x6   : > { %301 = sbr.rel (%p298_p2) target bundleno = 1449 (0x5a9), region = 56 }
   0xb   : > { %p338_p3 = scmp.lt.s32.totalorder %s2810_s10, 1  ;;  %vm514_vm0 = vcmask 97280   ;;  %vm619_vm3 = vcmask 93184   ;;  %vm851_vm4 = vcmask 523264   ;;  %vm627_vm5 = vcmask 1043456   ;;  %s3035_s25 = smov 51  }
   0xc   : > { %vm1334_vm6 = vcmask 410624   ;;  %vm1336_vm7 = vcmask 828824   ;;  %vm1331_vm8 = vcmask 1040384   ;;  %vm1354_vm9 = vcmask 1041816   ;;  %s3044_s26 = smov 112   ;;  %s3045_s27 = smov 96  }
   0xd   : > { %s4456_s10 = smov (!%p338_p3, %s2810_s10), 1  ;;  %vm1355_vm10 = vcmask 1043458   ;;  %vm1357_vm12 = vcmask 414724   ;;  %vm1351_vm13 = vcmask 416768   ;;  %s3046_s28 = smov 80   ;;  %vm1471_vm15 = vcmask 916480  }
   0xe   : > { %s2844_s11 = sshll.u32 %s4456_s10, 8  ;;  %s2843_s15 = sshll.u32 %s4456_s10, 7  ;;  %vm1356_vm11 = vmor %vm1355_vm10, %vm1354_vm9  ;;  %vm2412_vm10 = vcmask 1031168  }
   0xf   : > { %s3129_s14 = scalar_lea.vmem %s4404_s1, %s2844_s11  ;;  %s3165_s18 = scalar_lea.vmem %s4403_s0, %s2843_s15  ;;  %vm1358_vm14 = vmor %vm1357_vm12, %vm1356_vm11 }
  0x10   : > { %v3132_v0 = vld [vmem:[%s3129_s14 + $0x20] sm:$0xff]  ;;  %v3135_v1 = vld [vmem:[%s3129_s14 + $0x28] sm:$0xff]  ;;  %v3147_v5 = vld [vmem:[%s3129_s14 + $0x30] sm:$0xff]  ;;  %s3047_s29 = smov 64   ;;  %s3048_s12 = smov 48  }
  0x11   : > { %v3138_v2 = vld [vmem:[%s3129_s14] sm:$0xff]  ;;  %v440_v3 = vadd.f32 %v3135_v1, %v3132_v0  ;;  %v3144_v4 = vld [vmem:[%s3129_s14 + $0x8] sm:$0xff]  ;;  %v3150_v6 = vld [vmem:[%s3129_s14 + $0x38] sm:$0xff]  ;;  %s3049_s13 = smov 32   ;;  %s3056_s16 = smov 127  }
  0x12   : > { %v434_v7 = vadd.f32 %v3144_v4, %v3138_v2  ;;  %v3155_v8 = vld [vmem:[%s3129_s14 + $0x10] sm:$0xff]  ;;  %v3158_v9 = vld [vmem:[%s3129_s14 + $0x18] sm:$0xff]  ;;  %v443_v10 = vadd.f32 %v3150_v6, %v3147_v5  ;;  %v3176_v14 = vld [vmem:[%s3129_s14 + $0x40] sm:$0xff]  ;;  %s3057_s17 = smov 126   ;;  %s3059_s19 = smov 123  }
  0x13   : > { %441 = vadd.xlane.f32.xlu1 %v440_v3  ;;  %v437_v11 = vadd.f32 %v3158_v9, %v3155_v8  ;;  %v3170_v12 = vld [vmem:[%s3129_s14 + $0x50] sm:$0xff]  ;;  %v3173_v13 = vld [vmem:[%s3129_s14 + $0x58] sm:$0xff]  ;;  %v3179_v15 = vld [vmem:[%s3129_s14 + $0x48] sm:$0xff]  ;;  %s3060_s20 = smov 122   ;;  %s3061_s21 = smov 3  }
  0x14   : > { %435 = vadd.xlane.f32.xlu0 %v434_v7  ;;  %v3182_v16 = vld [vmem:[%s3165_s18] sm:$0xff]  ;;  %v3185_v17 = vld [vmem:[%s3165_s18 + $0x10] sm:$0xff]  ;;  %v449_v18 = vadd.f32 %v3173_v13, %v3170_v12  ;;  %v3193_v20 = vld [vmem:[%s3165_s18 + $0x8] sm:$0xff]  ;;  %v446_v23 = vadd.f32 %v3179_v15, %v3176_v14  ;;  %s3062_s22 = smov 125  }
  0x15   : > { %v3190_v19 = vld [vmem:[%s3129_s14 + $0x70] sm:$0xff]  ;;  %v3196_v21 = vld [vmem:[%s3165_s18 + $0x18] sm:$0xff]  ;;  %v1189_v22 = vadd.f32 %v3185_v17, %v3182_v16  ;;  %v3208_v26 = vld [vmem:[%s3165_s18 + $0x20] sm:$0xff]  ;;  %v401_v58 = vadd.f32 %v3193_v20, %v3182_v16 }
  0x16   : > { %v3203_v24 = vld [vmem:[%s3129_s14 + $0x78] sm:$0xff]  ;;  %v1202_v25 = vadd.f32 %v3196_v21, %v3193_v20  ;;  %v3211_v27 = vld [vmem:[%s3165_s18 + $0x28] sm:$0xff]  ;;  %v3214_v28 = vld [vmem:[%s3129_s14 + $0x60] sm:$0xff]  ;;  %v1261_v31 = vmax.f32 %v3182_v16, %v3208_v26 }
  0x17   : > { %444 = vadd.xlane.f32.xlu1 %v443_v10  ;;  %v3217_v29 = vld [vmem:[%s3129_s14 + $0x68] sm:$0xff]  ;;  %v1190_v30 = vadd.f32 %v1189_v22, %v3208_v26  ;;  %v1274_v32 = vmax.f32 %v3193_v20, %v3211_v27  ;;  %v3225_v33 = vld [vmem:[%s3165_s18 + $0x30] sm:$0xff]  ;;  %v3229_v35 = vld [vmem:[%s3165_s18 + $0x38] sm:$0xff]  ;;  %v455_v38 = vadd.f32 %v3203_v24, %v3190_v19 }
  0x18   : > { %438 = vadd.xlane.f32.xlu0 %v437_v11  ;;  %v1203_v34 = vadd.f32 %v1202_v25, %v3211_v27  ;;  %v1262_v36 = vmax.f32 %v3185_v17, %v3225_v33  ;;  %v3234_v37 = vld [vmem:[%s3165_s18 + $0x40] sm:$0xff]  ;;  %v1275_v39 = vmax.f32 %v3196_v21, %v3229_v35  ;;  %v3242_v41 = vld [vmem:[%s3165_s18 + $0x48] sm:$0xff]  ;;  %v452_v43 = vadd.f32 %v3217_v29, %v3214_v28  ;;  %v3250_v46 = vld [vmem:[%s3165_s18 + $0x50] sm:$0xff] }
  0x19   : > { %v1191_v40 = vadd.f32 %v1190_v30, %v3225_v33  ;;  %v1263_v42 = vmax.f32 %v1261_v31, %v3234_v37  ;;  %v1276_v45 = vmax.f32 %v1274_v32, %v3242_v41  ;;  %v3253_v47 = vld [vmem:[%s3165_s18 + $0x58] sm:$0xff]  ;;  %v3256_v48 = vld [vmem:[%s3129_s14 + $0x80] sm:$0xff]  ;;  %v3259_v49 = vld [vmem:[%s3129_s14 + $0x88] sm:$0xff] }
  0x1a   : > { %v1204_v44 = vadd.f32 %v1203_v34, %v3229_v35  ;;  %v1264_v51 = vmax.f32 %v1262_v36, %v3250_v46  ;;  %v1277_v52 = vmax.f32 %v1275_v39, %v3253_v47  ;;  %v3265_v53 = vld [vmem:[%s3165_s18 + $0x60] sm:$0xff]  ;;  %v3269_v55 = vld [vmem:[%s3165_s18 + $0x68] sm:$0xff]  ;;  %v3273_v57 = vld [vmem:[%s3165_s18 + $0x70] sm:$0xff]  ;;  %v458_v63 = vadd.f32 %v3259_v49, %v3256_v48 }
  0x1b   : > { %450 = vadd.xlane.f32.xlu1 %v449_v18  ;;  %v1192_v50 = vadd.f32 %v1191_v40, %v3234_v37  ;;  %v1265_v56 = vmax.f32 %v1263_v42, %v3265_v53  ;;  %v1278_v60 = vmax.f32 %v1276_v45, %v3269_v55  ;;  %v3280_v61 = vld [vmem:[%s3165_s18 + $0x78] sm:$0xff]  ;;  %v387_v3 = vld [vmem:[%s3129_s14 + $0x90] sm:$0xff]  ;;  %v3302_v31 = vld [vmem:[%s3129_s14 + $0xe8] sm:$0xff]  ;;  %v404_v39 = vadd.f32 %v3196_v21, %v3185_v17  ;;  %s3058_s18 = smov 124  }
  0x1c   : > { %447 = vadd.xlane.f32.xlu0 %v446_v23  ;;  %v1205_v54 = vadd.f32 %v1204_v44, %v3242_v41  ;;  %v1266_v62 = vmax.f32 %v1264_v51, %v3273_v57  ;;  %v388_v7 = vld [vmem:[%s3129_s14 + $0x98] sm:$0xff]  ;;  %v1279_v11 = vmax.f32 %v1277_v52, %v3280_v61  ;;  %v3296_v25 = vld [vmem:[%s3129_s14 + $0xf0] sm:$0xff]  ;;  %916 = vmatprep.subr.mxu1 %v3280_v61  ;;  %v397_v36 = vld [vmem:[%s3129_s14 + $0xe0] sm:$0xff] }
  0x1d   : > { %v1193_v59 = vadd.f32 %v1192_v50, %v3250_v46  ;;  %v3290_v18 = vld [vmem:[%s3129_s14 + $0xf8] sm:$0xff]  ;;  %917 = vmatpush1.msra.mxu1 %v3273_v57  ;;  %v461_v34 = vadd.f32 %v388_v7, %v387_v3  ;;  %v389_v40 = vld [vmem:[%s3129_s14 + $0xa0] sm:$0xff]  ;;  %v390_v42 = vld [vmem:[%s3129_s14 + $0xa8] sm:$0xff] }
  0x1e   : > { %v1206_v10 = vadd.f32 %v1205_v54, %v3253_v47  ;;  %v3293_v23 = vmax.f32 %v1265_v56, %v1266_v62  ;;  %690 = vmatprep.subr.mxu0 %v3290_v18  ;;  %v3304_v32 = vmax.f32 %v1278_v60, %v1279_v11  ;;  %v395_v45 = vld [vmem:[%s3129_s14 + $0xd0] sm:$0xff]  ;;  %918 = vmatprep.subr.mxu1 %v3269_v55  ;;  %v394_v50 = vld [vmem:[%s3129_s14 + $0xc8] sm:$0xff]  ;;  %v393_v52 = vld [vmem:[%s3129_s14 + $0xc0] sm:$0xff] }
  0x1f   : > { %456 = vadd.xlane.f32.xlu1 %v455_v38  ;;  %v1194_v22 = vadd.f32 %v1193_v59, %v3265_v53  ;;  %691 = vmatpush1.msra.mxu0 %v3296_v25  ;;  %v464_v51 = vadd.f32 %v390_v42, %v389_v40  ;;  %v407_v54 = vadd.f32 %v3211_v27, %v3208_v26  ;;  %v391_v56 = vld [vmem:[%s3129_s14 + $0xb0] sm:$0xff] }
  0x20   : > { %453 = vadd.xlane.f32.xlu0 %v452_v43  ;;  %v1207_v30 = vadd.f32 %v1206_v10, %v3269_v55  ;;  %692 = vmatprep.subr.mxu0 %v3302_v31  ;;  %v396_v43 = vld [vmem:[%s3129_s14 + $0xd8] sm:$0xff]  ;;  %v410_v60 = vadd.f32 %v3229_v35, %v3225_v33  ;;  %v470_v62 = vadd.f32 %v394_v50, %v393_v52  ;;  %v541_v10 = vld [vmem:[%s4406_s3 + $0x28] sm:$0xff] }
  0x21   : > { %v3310_v38 = vadd.f32 %v1194_v22, %v3273_v57  ;;  %693 = vmatpush1.msra.mxu0 %v397_v36  ;;  %919 = vmatpush1.msra.mxu1 %v3265_v53 }
  0x22   : > { %v3319_v44 = vadd.f32 %v1207_v30, %v3280_v61  ;;  %694 = vmatprep.subr.mxu0 %v396_v43  ;;  %920 = vmatprep.subr.mxu1 %v3253_v47 }
  0x23   : > { %402 = vadd.xlane.f32.xlu1 %v401_v58  ;;  %695 = vmatpush1.msra.mxu0 %v395_v45  ;;  %v392_v58 = vld [vmem:[%s3129_s14 + $0xb8] sm:$0xff] }
  0x24   : > { %459 = vadd.xlane.f32.xlu0 %v458_v63  ;;  %696 = vmatprep.subr.mxu0 %v394_v50  ;;  %v467_v59 = vadd.f32 %v392_v58, %v391_v56  ;;  %v413_v63 = vadd.f32 %v3242_v41, %v3234_v37  ;;  %v543_v50 = vld [vmem:[%s4406_s3 + $0x38] sm:$0xff] }
  0x25   : > { %697 = vmatpush1.msra.mxu0 %v393_v52  ;;  %921 = vmatpush1.msra.mxu1 %v3250_v46 }
  0x26   : > { %698 = vmatprep.subr.mxu0 %v392_v58  ;;  %922 = vmatprep.subr.mxu1 %v3242_v41 }
  0x27   : > { %462 = vadd.xlane.f32.xlu1 %v461_v34  ;;  %699 = vmatpush1.msra.mxu0 %v391_v56 }
  0x28   : > { %405 = vadd.xlane.f32.xlu0 %v404_v39  ;;  %700 = vmatprep.subr.mxu0 %v390_v42 }
  0x29   : > { %701 = vmatpush1.msra.mxu0 %v389_v40  ;;  %923 = vmatpush1.msra.mxu1 %v3234_v37  ;;  %v540_v37 = vld [vmem:[%s4406_s3 + $0x20] sm:$0xff] }
  0x2a   : > { %702 = vmatprep.subr.mxu0 %v388_v7  ;;  %924 = vmatprep.subr.mxu1 %v3229_v35 }
  0x2b   : > { %465 = vadd.xlane.f32.xlu1 %v464_v51  ;;  %703 = vmatpush1.msra.mxu0 %v387_v3  ;;  %v473_v3 = vadd.f32 %v396_v43, %v395_v45 }
  0x2c   : > { %408 = vadd.xlane.f32.xlu0 %v407_v54  ;;  %704 = vmatprep.subr.mxu0 %v3259_v49  ;;  %v416_v49 = vadd.f32 %v3253_v47, %v3250_v46 }
  0x2d   : > { %705 = vmatpush1.msra.mxu0 %v3256_v48  ;;  %925 = vmatpush1.msra.mxu1 %v3225_v33 }
  0x2e   : > { %706 = vmatprep.subr.mxu0 %v3203_v24  ;;  %926 = vmatprep.subr.mxu1 %v3211_v27  ;;  %v419_v24 = vadd.f32 %v3269_v55, %v3265_v53 }
  0x2f   : > { %468 = vadd.xlane.f32.xlu1 %v467_v59  ;;  %707 = vmatpush1.msra.mxu0 %v3190_v19  ;;  %v476_v19 = vadd.f32 %v3302_v31, %v397_v36  ;;  %v542_v36 = vld [vmem:[%s4406_s3 + $0x30] sm:$0xff] }
  0x30   : > { %411 = vadd.xlane.f32.xlu0 %v410_v60  ;;  %708 = vmatprep.subr.mxu0 %v3217_v29 }
  0x31   : > { %709 = vmatpush1.msra.mxu0 %v3214_v28  ;;  %927 = vmatpush1.msra.mxu1 %v3208_v26 }
  0x32   : > { %710 = vmatprep.subr.mxu0 %v3173_v13  ;;  %928 = vmatprep.subr.mxu1 %v3196_v21  ;;  %v422_v13 = vadd.f32 %v3280_v61, %v3273_v57 }
  0x33   : > { %471 = vadd.xlane.f32.xlu1 %v470_v62  ;;  %711 = vmatpush1.msra.mxu0 %v3170_v12  ;;  %v479_v12 = vadd.f32 %v3290_v18, %v3296_v25  ;;  %v544_v62 = vld [vmem:[%s4406_s3 + $0x40] sm:$0xff] }
  0x34   : > { %414 = vadd.xlane.f32.xlu0 %v413_v63  ;;  %712 = vmatprep.subr.mxu0 %v3179_v15 }
  0x35   : > { %713 = vmatpush1.msra.mxu0 %v3176_v14  ;;  %929 = vmatpush1.msra.mxu1 %v3185_v17 }
  0x36   : > { %714 = vmatprep.subr.mxu0 %v3150_v6  ;;  %930 = vmatprep.subr.mxu1 %v3193_v20  ;;  %v539_v20 = vld [vmem:[%s4406_s3 + $0x18] sm:$0xff] }
  0x37   : > { %474 = vadd.xlane.f32.xlu1 %v473_v3  ;;  %715 = vmatpush1.msra.mxu0 %v3147_v5 }
  0x38   : > { %417 = vadd.xlane.f32.xlu0 %v416_v49  ;;  %716 = vmatprep.subr.mxu0 %v3135_v1  ;;  %v545_v49 = vld [vmem:[%s4406_s3 + $0x48] sm:$0xff] }
  0x39   : > { %717 = vmatpush1.msra.mxu0 %v3132_v0  ;;  %931 = vmatpush1.msra.mxu1 %v3182_v16  ;;  %v536_v0 = vld [vmem:[%s4406_s3] sm:$0xff] }
  0x3a   : > { %718 = vmatprep.subr.mxu0 %v3158_v9 }
  0x3b   : > { %477 = vadd.xlane.f32.xlu1 %v476_v19  ;;  %719 = vmatpush1.msra.mxu0 %v3155_v8  ;;  %v538_v8 = vld [vmem:[%s4406_s3 + $0x10] sm:$0xff] }
  0x3c   : > { %420 = vadd.xlane.f32.xlu0 %v419_v24  ;;  %720 = vmatprep.subr.mxu0 %v3144_v4  ;;  %v537_v4 = vld [vmem:[%s4406_s3 + $0x8] sm:$0xff] }
  0x3d   : > { %721 = vmatpush1.msra.mxu0 %v3138_v2 }
  0x3f   : > { %480 = vadd.xlane.f32.xlu1 %v479_v12 }
  0x40   : > { %423 = vadd.xlane.f32.xlu0 %v422_v13 }
  0x9c   : > { %v442_v1 = vpop.xlane.xlu1 %441 }
  0x9d   : > { %v436_v5 = vpop.xlane.xlu0 %435  ;;  %v484_v9 = vmul.f32 0.00390625, %v442_v1  ;;  %v499_v1 = vld [vmem:[%s4405_s2 + $0x8] sm:$0xff] }
  0x9e   : > { %v482_v6 = vmul.f32 0.00390625, %v436_v5 }
  0x9f   : > { %v554_v21 = vmul.f32 %v538_v8, %v484_v9  ;;  %v498_v9 = vld [vmem:[%s4405_s2] sm:$0xff]  ;;  %v546_v8 = vld [vmem:[%s4406_s3 + $0x50] sm:$0xff] }
  0xa0   : > { %v445_v14 = vpop.xlane.xlu1 %444  ;;  %v552_v16 = vmul.f32 %v536_v0, %v482_v6 }
  0xa1   : > { %v439_v15 = vpop.xlane.xlu0 %438  ;;  %v485_v2 = vmul.f32 0.00390625, %v445_v14  ;;  %v571_v47 = vsel %vm514_vm0, %v554_v21, 0.0 }
  0xa2   : > { %v483_v17 = vmul.f32 0.00390625, %v439_v15  ;;  %v568_v29 = vsel %vm514_vm0, %v552_v16, 0.0  ;;  %v500_v15 = vld [vmem:[%s4405_s2 + $0x10] sm:$0xff] }
  0xa3   : > { %v555_v33 = vmul.f32 %v539_v20, %v485_v2  ;;  %v547_v20 = vld [vmem:[%s4406_s3 + $0x58] sm:$0xff] }
  0xa4   : > { %v553_v26 = vmul.f32 %v537_v4, %v483_v17  ;;  %v451_v27 = vpop.xlane.xlu1 %450 }
  0xa5   : > { %v448_v28 = vpop.xlane.xlu0 %447  ;;  %v487_v55 = vmul.f32 0.00390625, %v451_v27  ;;  %v573_v7 = vsel %vm514_vm0, %v555_v33, 0.0 }
  0xa6   : > { %v569_v35 = vsel %vm514_vm0, %v553_v26, 0.0  ;;  %v486_v41 = vmul.f32 0.00390625, %v448_v28 }
  0xa7   : > { %v570_v46 = vadd.f32 %v569_v35, %v568_v29  ;;  %v557_v22 = vmul.f32 %v541_v10, %v487_v55  ;;  %v501_v29 = vld [vmem:[%s4405_s2 + $0x18] sm:$0xff]  ;;  %v502_v55 = vld [vmem:[%s4405_s2 + $0x20] sm:$0xff] }
  0xa8   : > { %v457_v48 = vpop.xlane.xlu1 %456  ;;  %v556_v57 = vmul.f32 %v540_v37, %v486_v41 }
  0xa9   : > { %v572_v53 = vadd.f32 %v571_v47, %v570_v46  ;;  %v454_v61 = vpop.xlane.xlu0 %453  ;;  %v577_v40 = vsel %vm514_vm0, %v557_v22, 0.0  ;;  %v489_v42 = vmul.f32 0.00390625, %v457_v48  ;;  %v548_v47 = vld [vmem:[%s4406_s3 + $0x60] sm:$0xff] }
  0xaa   : > { %v575_v25 = vsel %vm514_vm0, %v556_v57, 0.0  ;;  %v488_v30 = vmul.f32 0.00390625, %v454_v61 }
  0xab   : > { %v574_v11 = vadd.f32 %v573_v7, %v572_v53  ;;  %v559_v54 = vmul.f32 %v543_v50, %v489_v42  ;;  %v549_v7 = vld [vmem:[%s4406_s3 + $0x68] sm:$0xff] }
  0xac   : > { %v403_v18 = vpop.xlane.xlu1 %402  ;;  %v558_v43 = vmul.f32 %v542_v36, %v488_v30 }
  0xad   : > { %v460_v31 = vpop.xlane.xlu0 %459  ;;  %v576_v34 = vadd.f32 %v575_v25, %v574_v11  ;;  %v581_v24 = vsel %vm514_vm0, %v559_v54, 0.0  ;;  %v426_v13 = vmul.f32 0.00390625, %v403_v18  ;;  %v503_v25 = vld [vmem:[%s4405_s2 + $0x28] sm:$0xff]  ;;  %v550_v54 = vld [vmem:[%s4406_s3 + $0x70] sm:$0xff] }
  0xae   : > { %v579_v56 = vsel %vm514_vm0, %v558_v43, 0.0  ;;  %v490_v58 = vmul.f32 0.00390625, %v460_v31 }
  0xaf   : > { %v578_v51 = vadd.f32 %v577_v40, %v576_v34  ;;  %v506_v27 = vmul.f32 %v498_v9, %v426_v13 }
  0xb0   : > { %v463_v39 = vpop.xlane.xlu1 %462  ;;  %v560_v12 = vmul.f32 %v544_v62, %v490_v58 }
  0xb1   : > { %v406_v45 = vpop.xlane.xlu0 %405  ;;  %v580_v60 = vadd.f32 %v579_v56, %v578_v51  ;;  %v491_v63 = vmul.f32 0.00390625, %v463_v39  ;;  %v515_v11 = vsel %vm514_vm0, %v506_v27, 0.0 }
  0xb2   : > { %v427_v3 = vmul.f32 0.00390625, %v406_v45  ;;  %v583_v26 = vsel %vm514_vm0, %v560_v12, 0.0 }
  0xb3   : > { %v582_v0 = vadd.f32 %v581_v24, %v580_v60  ;;  %v561_v4 = vmul.f32 %v545_v49, %v491_v63  ;;  %v504_v60 = vld [vmem:[%s4405_s2 + $0x30] sm:$0xff] }
  0xb4   : > { %v466_v52 = vpop.xlane.xlu1 %465  ;;  %v507_v2 = vmul.f32 %v499_v1, %v427_v3 }
  0xb5   : > { %v409_v59 = vpop.xlane.xlu0 %408  ;;  %v492_v5 = vmul.f32 0.00390625, %v466_v52  ;;  %v584_v37 = vadd.f32 %v583_v26, %v582_v0  ;;  %v585_v48 = vsel %vm514_vm0, %v561_v4, 0.0  ;;  %v551_v0 = vld [vmem:[%s4406_s3 + $0x78] sm:$0xff] }
  0xb6   : > { %v428_v14 = vmul.f32 0.00390625, %v409_v59  ;;  %v516_v57 = vsel %vm514_vm0, %v507_v2, 0.0  ;;  %v505_v4 = vld [vmem:[%s4405_s2 + $0x38] sm:$0xff] }
  0xb7   : > { %v562_v28 = vmul.f32 %v546_v8, %v492_v5  ;;  %v586_v34 = vadd.f32 %v585_v48, %v584_v37  ;;  %v517_v42 = vadd.f32 %v516_v57, %v515_v11 }
  0xb8   : > { %v469_v19 = vpop.xlane.xlu1 %468  ;;  %v508_v41 = vmul.f32 %v500_v15, %v428_v14 }
  0xb9   : > { %v412_v6 = vpop.xlane.xlu0 %411  ;;  %v493_v16 = vmul.f32 0.00390625, %v469_v19  ;;  %v587_v18 = vsel %vm514_vm0, %v562_v28, 0.0 }
  0xba   : > { %v429_v17 = vmul.f32 0.00390625, %v412_v6  ;;  %v518_v36 = vsel %vm514_vm0, %v508_v41, 0.0  ;;  %v588_v50 = vadd.f32 %v587_v18, %v586_v34 }
  0xbb   : > { %v563_v53 = vmul.f32 %v547_v20, %v493_v16  ;;  %v519_v58 = vadd.f32 %v518_v36, %v517_v42 }
  0xbc   : > { %v472_v21 = vpop.xlane.xlu1 %471  ;;  %v509_v61 = vmul.f32 %v501_v29, %v429_v17 }
  0xbd   : > { %v415_v33 = vpop.xlane.xlu0 %414  ;;  %v494_v35 = vmul.f32 0.00390625, %v472_v21  ;;  %v589_v43 = vsel %vm514_vm0, %v563_v53, 0.0  ;;  %v607_v53 = vlaneseq }
  0xbe   : > { %v430_v46 = vmul.f32 0.00390625, %v415_v33  ;;  %v520_v51 = vsel %vm514_vm0, %v509_v61, 0.0  ;;  %v590_v3 = vadd.f32 %v589_v43, %v588_v50  ;;  %v642_v50 = vld [vmem:[%s4408_s5] sm:$0xff] }
  0xbf   : > { %v564_v22 = vmul.f32 %v548_v47, %v494_v35  ;;  %v521_v24 = vadd.f32 %v520_v51, %v519_v58  ;;  %v2997_v51 = vmov 0.0   ;;  %v646_v58 = vld [vmem:[%s4408_s5 + $0x20] sm:$0xff] }
  0xc0   : > { %v475_v10 = vpop.xlane.xlu1 %474  ;;  %v510_v39 = vmul.f32 %v502_v55, %v430_v46  ;;  %964 = vmatprep.mubr.f32.mxu1 %v2997_v51  ;;  %754 = vmatprep.mubr.f32.mxu0 %v2997_v51  ;;  %1335 = vst.msk [vmem:[#allocation2] sm:$0x3] %vm1334_vm6, %v2997_v51 }
  0xc1   : > { %v418_v30 = vpop.xlane.xlu0 %417  ;;  %v495_v31 = vmul.f32 0.00390625, %v475_v10  ;;  %v591_v59 = vsel %vm514_vm0, %v564_v22, 0.0  ;;  %v3469_v10 = vshrl.u32 %v607_v53, 7  ;;  %2822 = vmatmul.mubr.msk.f32.vlgmr.msra.gmra.mxu1 %vm851_vm4, %v642_v50  ;;  %1337 = vst.msk [vmem:[#allocation2 + $0x4] sm:$0x3] %vm1336_vm7, %v2997_v51  ;;  %vm2356_vm7 = vcmask 1039360  }
  0xc2   : > { %v431_v40 = vmul.f32 0.00390625, %v418_v30  ;;  %v522_v49 = vsel %vm514_vm0, %v510_v39, 0.0  ;;  %v592_v1 = vadd.f32 %v591_v59, %v590_v3  ;;  %970 = vmatprep.mubr.f32.mxu1 %v2997_v51  ;;  %v647_v59 = vld [vmem:[%s4408_s5 + $0x28] sm:$0xff] }
  0xc3   : > { %v565_v45 = vmul.f32 %v549_v7, %v495_v31  ;;  %v523_v14 = vadd.f32 %v522_v49, %v521_v24  ;;  %v609_v30 = vadd.s32 8, %v3469_v10  ;;  %v3472_v31 = vand.u32 127, %v607_v53  ;;  %v651_v3 = vld [vmem:[%s4408_s5 + $0x48] sm:$0xff]  ;;  %v652_v49 = vld [vmem:[%s4408_s5 + $0x50] sm:$0xff]  ;;  %v654_v24 = vld [vmem:[%s4408_s5 + $0x60] sm:$0xff] }
  0xc4   : > { %v511_v52 = vmul.f32 %v503_v25, %v431_v40  ;;  %v478_v56 = vpop.xlane.xlu1 %477  ;;  %v1073_v53 = vld [vmem:[%s4410_s7 + $0x60] sm:$0xff] }
  0xc5   : > { %v421_v62 = vpop.xlane.xlu0 %420  ;;  %v496_v63 = vmul.f32 0.00390625, %v478_v56  ;;  %v593_v12 = vsel %vm514_vm0, %v565_v45, 0.0  ;;  %4429 = vst [vmem:[#allocation3_spill] sm:$0xff] %v3472_v31  ;;  %vm613_vm1 = vcmp.eq.s32.totalorder %v609_v30, %v3472_v31  ;;  %vm612_vm2 = vcmp.eq.s32.totalorder %v3469_v10, %v3472_v31  ;;  %v645_v56 = vld [vmem:[%s4408_s5 + $0x18] sm:$0xff] }
  0xc6   : > { %v432_v19 = vmul.f32 0.00390625, %v421_v62  ;;  %v524_v5 = vsel %vm514_vm0, %v511_v52, 0.0  ;;  %v594_v2 = vadd.f32 %v593_v12, %v592_v1  ;;  %v643_v52 = vld [vmem:[%s4408_s5 + $0x8] sm:$0xff]  ;;  %v649_v62 = vld [vmem:[%s4408_s5 + $0x38] sm:$0xff]  ;;  %v4414_v1 = vmov 0  }
  0xc7   : > { %v566_v13 = vmul.f32 %v550_v54, %v496_v63  ;;  %v525_v21 = vadd.f32 %v524_v5, %v523_v14  ;;  %2823 = vmatmul.mubr.msk.f32.gmra.mxu1 %vm851_vm4, %v643_v52  ;;  %v644_v54 = vld [vmem:[%s4408_s5 + $0x10] sm:$0xff]  ;;  %v650_v63 = vld [vmem:[%s4408_s5 + $0x40] sm:$0xff]  ;;  %v655_v12 = vld [vmem:[%s4408_s5 + $0x68] sm:$0xff]  ;;  %2921 = vset.pattern.permute.xlu1 %v4414_v1  ;;  %v2999_v30 = vmov 9  }
  0xc8   : > { %v512_v6 = vmul.f32 %v504_v60, %v432_v19  ;;  %v481_v9 = vpop.xlane.xlu1 %480  ;;  %976 = vmatprep.mubr.f32.mxu1 %v2997_v51  ;;  %v648_v60 = vld [vmem:[%s4408_s5 + $0x30] sm:$0xff]  ;;  %v653_v19 = vld [vmem:[%s4408_s5 + $0x58] sm:$0xff]  ;;  %2920 = vset.pattern.permute.xlu0 %v4414_v1  ;;  %v1065_v14 = vld [vmem:[%s4410_s7 + $0x20] sm:$0xff] }
  0xc9   : > { %v595_v8 = vsel %vm514_vm0, %v566_v13, 0.0  ;;  %v424_v15 = vpop.xlane.xlu0 %423  ;;  %v497_v16 = vmul.f32 0.00390625, %v481_v9  ;;  %v1062_v13 = vld [vmem:[%s4410_s7 + $0x8] sm:$0xff]  ;;  %v656_v5 = vld [vmem:[%s4408_s5 + $0x70] sm:$0xff]  ;;  %v1064_v9 = vld [vmem:[%s4410_s7 + $0x18] sm:$0xff] }
  0xca   : > { %v526_v17 = vsel %vm514_vm0, %v512_v6, 0.0  ;;  %v433_v20 = vmul.f32 0.00390625, %v424_v15  ;;  %v596_v27 = vadd.f32 %v595_v8, %v594_v2  ;;  %v1063_v6 = vld [vmem:[%s4410_s7 + $0x10] sm:$0xff]  ;;  %v1061_v8 = vld [vmem:[%s4410_s7] sm:$0xff]  ;;  %v1070_v15 = vld [vmem:[%s4410_s7 + $0x48] sm:$0xff] }
  0xcb   : > { %v567_v26 = vmul.f32 %v551_v0, %v497_v16  ;;  %v527_v29 = vadd.f32 %v526_v17, %v525_v21  ;;  %2824 = vmatmul.mubr.msk.f32.gmra.mxu1 %vm851_vm4, %v644_v54  ;;  %v657_v0 = vld [vmem:[%s4408_s5 + $0x78] sm:$0xff]  ;;  %v1067_v2 = vld [vmem:[%s4410_s7 + $0x30] sm:$0xff]  ;;  %v1074_v17 = vld [vmem:[%s4410_s7 + $0x68] sm:$0xff] }
  0xcc   : > { %v513_v28 = vmul.f32 %v505_v4, %v433_v20  ;;  %982 = vmatprep.mubr.f32.mxu1 %v2997_v51  ;;  %v1066_v4 = vld [vmem:[%s4410_s7 + $0x28] sm:$0xff]  ;;  %v1072_v16 = vld [vmem:[%s4410_s7 + $0x58] sm:$0xff] }
  0xcd   : > { %v597_v33 = vsel %vm514_vm0, %v567_v26, 0.0  ;;  %v1068_v20 = vld [vmem:[%s4410_s7 + $0x38] sm:$0xff]  ;;  %v624_v21 = vld [vmem:[%s4407_s4 + $0x8] sm:$0xf]  ;;  %v623_v26 = vld [vmem:[%s4407_s4] sm:$0xff] }
  0xce   : > { %v528_v35 = vsel %vm514_vm0, %v513_v28, 0.0  ;;  %v598_v37 = vadd.f32 %v597_v33, %v596_v27  ;;  %v1076_v27 = vld [vmem:[%s4410_s7 + $0x78] sm:$0xff]  ;;  %v1069_v28 = vld [vmem:[%s4410_s7 + $0x40] sm:$0xff]  ;;  %v659_v52 = vld [vmem:[%s4409_s6 + $0x8] sm:$0xff] }
  0xcf   : > { %v529_v41 = vadd.f32 %v528_v35, %v527_v29  ;;  %2825 = vmatmul.mubr.msk.f32.gmra.mxu1 %vm851_vm4, %v645_v56  ;;  %v660_v56 = vld [vmem:[%s4409_s6 + $0x10] sm:$0xff] }
  0xd0   : > { %v599_v46 = vrot.slane %v598_v37, 4  ;;  %988 = vmatprep.mubr.f32.mxu1 %v2997_v51 }
  0xd1   : > { %v530_v47 = vrot.slane %v529_v41, 4 }
  0xd2   : > { %v600_v48 = vadd.f32 %v599_v46, %v598_v37  ;;  %v1071_v46 = vld [vmem:[%s4410_s7 + $0x50] sm:$0xff] }
  0xd3   : > { %v531_v55 = vadd.f32 %v530_v47, %v529_v41  ;;  %2826 = vmatmul.mubr.msk.f32.gmra.mxu1 %vm851_vm4, %v646_v58 }
  0xd4   : > { %v601_v57 = vrot.slane %v600_v48, 2  ;;  %994 = vmatprep.mubr.f32.mxu1 %v2997_v51 }
  0xd5   : > { %v532_v61 = vrot.slane %v531_v55, 2 }
  0xd6   : > { %v602_v7 = vadd.f32 %v601_v57, %v600_v48 }
  0xd7   : > { %v533_v11 = vadd.f32 %v532_v61, %v531_v55  ;;  %2827 = vmatmul.mubr.msk.f32.gmra.mxu1 %vm851_vm4, %v647_v59  ;;  %v1075_v61 = vld [vmem:[%s4410_s7 + $0x70] sm:$0xff]  ;;  %v661_v59 = vld [vmem:[%s4409_s6 + $0x18] sm:$0xff] }
  0xd8   : > { %v603_v18 = vrot.slane %v602_v7, 1  ;;  %1000 = vmatprep.mubr.f32.mxu1 %v2997_v51 }
  0xd9   : > { %v534_v22 = vrot.slane %v533_v11, 1 }
  0xda   : > { %v604_v25 = vadd.f32 %v603_v18, %v602_v7 }
  0xdb   : > { %v535_v34 = vadd.f32 %v534_v22, %v533_v11  ;;  %2828 = vmatmul.mubr.msk.f32.gmra.mxu1 %vm851_vm4, %v648_v60  ;;  %v3618_v22 = vld [vmem:[%s4411_s8] sm:$0x3] }
  0xdc   : > { %1006 = vmatprep.mubr.f32.mxu1 %v2997_v51  ;;  %4430 = vst [vmem:[#allocation4_spill] sm:$0xff] %v3618_v22 }
  0xdd   : > { %v605_v36 = vadd.f32 %v604_v25, %v535_v34  ;;  %v3000_v34 = vmov 15  }
  0xdf   : > { %v606_v39 = vmax.f32 %v605_v36, 0.0  ;;  %2829 = vmatmul.mubr.msk.f32.gmra.mxu1 %vm851_vm4, %v649_v62  ;;  %v3001_v36 = vmov 16   ;;  %v662_v62 = vld [vmem:[%s4409_s6 + $0x20] sm:$0xff] }
  0xe0   : > { %1012 = vmatprep.mubr.f32.mxu1 %v2997_v51 }
  0xe1   : > { %v615_v40 = vsel %vm613_vm1, %v606_v39, 0.0  ;;  %v614_v42 = vsel %vm612_vm2, %v606_v39, 0.0  ;;  %vm1739_vm1 = vcmask 654336   ;;  %vm2006_vm2 = vcmask 392192  }
  0xe2   : > { %v620_v43 = vsel %vm619_vm3, %v615_v40, 0.0  ;;  %v616_v45 = vsel %vm514_vm0, %v614_v42, 0.0  ;;  %v3002_v40 = vmov 22   ;;  %vm1605_vm0 = vcmask 785408  }
  0xe3   : > { %621 = vadd.xlane.f32.xlu0 %v620_v43  ;;  %617 = vadd.xlane.f32.xlu1 %v616_v45  ;;  %v658_v43 = vld [vmem:[%s4409_s6] sm:$0xff]  ;;  %vm2140_vm3 = vcmask 261120  }
  0xe4   : > { %2830 = vmatmul.mubr.msk.f32.gmra.mxu1 %vm851_vm4, %v650_v63 }
  0xe5   : > { %1018 = vmatprep.mubr.f32.mxu1 %v2997_v51 }
  0xe8   : > { %2831 = vmatmul.mubr.msk.f32.gmra.mxu1 %vm851_vm4, %v651_v3  ;;  %v663_v3 = vld [vmem:[%s4409_s6 + $0x28] sm:$0xff] }
  0xe9   : > { %1024 = vmatprep.mubr.f32.mxu1 %v2997_v51 }
  0xec   : > { %2832 = vmatmul.mubr.msk.f32.gmra.mxu1 %vm851_vm4, %v652_v49 }
  0xed   : > { %1030 = vmatprep.mubr.f32.mxu1 %v2997_v51 }
  0xf0   : > { %2833 = vmatmul.mubr.msk.f32.gmra.mxu1 %vm851_vm4, %v653_v19  ;;  %v664_v19 = vld [vmem:[%s4409_s6 + $0x30] sm:$0xff] }
  0xf1   : > { %1036 = vmatprep.mubr.f32.mxu1 %v2997_v51 }
  0xf4   : > { %2834 = vmatmul.mubr.msk.f32.gmra.mxu1 %vm851_vm4, %v654_v24  ;;  %1084 = vperm.xlu1 %2921, %v1062_v13  }
  0xf5   : > { %1042 = vmatprep.mubr.f32.mxu1 %v2997_v51 }
  0xf8   : > { %2835 = vmatmul.mubr.msk.f32.gmra.mxu1 %vm851_vm4, %v655_v12  ;;  %1089 = vperm.xlu1 %2921, %v1063_v6   ;;  %v665_v12 = vld [vmem:[%s4409_s6 + $0x38] sm:$0xff] }
  0xf9   : > { %1048 = vmatprep.mubr.f32.mxu1 %v2997_v51  ;;  %1079 = vperm.xlu0 %2920, %v1061_v8  }
  0xfc   : > { %2836 = vmatmul.mubr.msk.f32.gmra.mxu1 %vm851_vm4, %v656_v5  ;;  %1094 = vperm.xlu1 %2921, %v1064_v9   ;;  %v666_v5 = vld [vmem:[%s4409_s6 + $0x40] sm:$0xff] }
  0xfd   : > { %1054 = vmatprep.mubr.f32.mxu1 %v2997_v51  ;;  %1124 = vperm.xlu0 %2920, %v1070_v15  }
 0x100   : > { %2837 = vmatmul.mubr.msk.f32.gmra.mxu1 %vm851_vm4, %v657_v0  ;;  %1099 = vperm.xlu1 %2921, %v1065_v14   ;;  %v667_v0 = vld [vmem:[%s4409_s6 + $0x48] sm:$0xff]  ;;  %v668_v14 = vld [vmem:[%s4409_s6 + $0x50] sm:$0xff] }
 0x101   : > { %1134 = vperm.xlu0 %2920, %v1072_v16   ;;  %v670_v16 = vld [vmem:[%s4409_s6 + $0x60] sm:$0xff] }
 0x104   : > { %1104 = vperm.xlu1 %2921, %v1066_v4   ;;  %v669_v4 = vld [vmem:[%s4409_s6 + $0x58] sm:$0xff] }
 0x105   : > { %1144 = vperm.xlu0 %2920, %v1074_v17   ;;  %v671_v17 = vld [vmem:[%s4409_s6 + $0x68] sm:$0xff] }
 0x108   : > { %1109 = vperm.xlu1 %2921, %v1067_v2  }
 0x109   : > { %1154 = vperm.xlu0 %2920, %v1076_v27   ;;  %v673_v27 = vld [vmem:[%s4409_s6 + $0x78] sm:$0xff] }
 0x10c   : > { %1114 = vperm.xlu1 %2921, %v1068_v20  }
 0x110   : > { %1119 = vperm.xlu1 %2921, %v1069_v28  }
 0x114   : > { %1129 = vperm.xlu1 %2921, %v1071_v46   ;;  %v3008_v46 = vmov 8  }
 0x115   : > { %2922 = vset.pattern.permute.xlu0 %v3008_v46 }
 0x116   : > { %1476 = vperm.xlu0 %2922, %v3618_v22  }
 0x118   : > { %1139 = vperm.xlu1 %2921, %v1073_v53   ;;  %v3011_v53 = vmov 26  }
 0x11c   : > { %1149 = vperm.xlu1 %2921, %v1075_v61   ;;  %v3014_v61 = vmov 29  }
 0x120   : > { %2923 = vset.pattern.permute.xlu1 %v2999_v30  ;;  %v3019_v30 = vmov 39  }
 0x121   : > { %1495 = vperm.xlu1 %2923, %v3618_v22  }
 0x125   : > { %2924 = vset.pattern.permute.xlu1 %v3000_v34  ;;  %v3020_v34 = vmov 37  }
 0x126   : > { %1610 = vperm.xlu1 %2924, %v3618_v22  }
 0x12a   : > { %2926 = vset.pattern.permute.xlu1 %v3001_v36  ;;  %v3021_v36 = vmov 44  }
 0x12b   : > { %1629 = vperm.xlu1 %2926, %v3618_v22  }
 0x12f   : > { %2927 = vset.pattern.permute.xlu1 %v3002_v40  ;;  %v3023_v40 = vmov 40  }
 0x130   : > { %1744 = vperm.xlu1 %2927, %v3618_v22  }
 0x16c   : > { %v622_v29 = vpop.xlane.xlu0 %621  ;;  %v618_v33 = vpop.xlane.xlu1 %617 }
 0x16d   : > { %v626_v35 = vmul.f32 %v624_v21, %v622_v29  ;;  %v625_v37 = vmul.f32 %v623_v26, %v618_v33  ;;  %v672_v21 = vld [vmem:[%s4409_s6 + $0x70] sm:$0xff]  ;;  %v3003_v29 = vmov 18   ;;  %v3004_v33 = vmov 23  }
 0x16e   : > { %2929 = vset.pattern.permute.xlu1 %v3003_v29 }
 0x16f   : > { %v628_v41 = vsel %vm627_vm5, %v626_v35, 0.0  ;;  %1667 = vperm.xlu1 %2929, %v3618_v22   ;;  %v3005_v35 = vmov 13  }
 0x170   : > { %v629_v47 = vadd.f32 %v628_v41, %v625_v37  ;;  %v3006_v37 = vmov 19   ;;  %v3007_v41 = vmov 30  }
 0x172   : > { %v630_v48 = vrot.slane %v629_v47, 4 }
 0x173   : > { %2930 = vset.pattern.permute.xlu1 %v3004_v33 }
 0x174   : > { %v631_v55 = vadd.f32 %v630_v48, %v629_v47  ;;  %1763 = vperm.xlu1 %2930, %v3618_v22   ;;  %v3009_v47 = vmov 36   ;;  %v3010_v48 = vmov 11  }
 0x175   : > { %2925 = vset.pattern.permute.xlu0 %v3010_v48 }
 0x176   : > { %v632_v57 = vrot.slane %v631_v55, 2  ;;  %1533 = vperm.xlu0 %2925, %v3618_v22  }
 0x178   : > { %v633_v7 = vadd.f32 %v632_v57, %v631_v55  ;;  %2932 = vset.pattern.permute.xlu1 %v3005_v35  ;;  %v3012_v55 = vmov 12   ;;  %v3013_v57 = vmov 32  }
 0x179   : > { %1571 = vperm.xlu1 %2932, %v3618_v22  }
 0x17a   : > { %v634_v11 = vrot.slane %v633_v7, 1  ;;  %2928 = vset.pattern.permute.xlu0 %v3012_v55 }
 0x17b   : > { %1552 = vperm.xlu0 %2928, %v3618_v22  }
 0x17c   : > { %v635_v18 = vadd.f32 %v634_v11, %v633_v7  ;;  %v3015_v7 = vmov 43   ;;  %v3016_v11 = vmov 25  }
 0x17d   : > { %2933 = vset.pattern.permute.xlu1 %v3006_v37 }
 0x17e   : > { %v2821_v25 = vmul.f32 -1.442695, %v635_v18  ;;  %1686 = vperm.xlu1 %2933, %v3618_v22   ;;  %v3017_v18 = vmov 27  }
 0x17f   : > { %2931 = vset.pattern.permute.xlu0 %v3014_v61 }
 0x180   : > { %2972 = vpow2.f32 %v2821_v25  ;;  %1877 = vperm.xlu0 %2931, %v3618_v22   ;;  %v3018_v25 = vmov 20  }
 0x182   : > { %2935 = vset.pattern.permute.xlu1 %v3007_v41 }
 0x183   : > { %1896 = vperm.xlu1 %2935, %v3618_v22  }
 0x184   : > { %2934 = vset.pattern.permute.xlu0 %v3016_v11 }
 0x185   : > { %1801 = vperm.xlu0 %2934, %v3618_v22  }
 0x187   : > { %2936 = vset.pattern.permute.xlu1 %v3009_v47 }
 0x188   : > { %2011 = vperm.xlu1 %2936, %v3618_v22  }
 0x189   : > { %2937 = vset.pattern.permute.xlu0 %v3018_v25 }
 0x18a   : > { %1705 = vperm.xlu0 %2937, %v3618_v22  }
 0x18c   : > { %2938 = vset.pattern.permute.xlu1 %v3011_v53 }
 0x18d   : > { %v2973_v39 = vpop.eup %2972  ;;  %1820 = vperm.xlu1 %2938, %v3618_v22  }
 0x18e   : > { %v639_v42 = vadd.f32 1.0, %v2973_v39  ;;  %2940 = vset.pattern.permute.xlu0 %v3020_v34  ;;  %v3022_v39 = vmov 33  }
 0x18f   : > { %2030 = vperm.xlu0 %2940, %v3618_v22  }
 0x190   : > { %2974 = vrcp.f32 %v639_v42  ;;  %v3708_v42 = vpop.f32.mrf.mxu1 }
 0x191   : > { %2939 = vset.pattern.permute.xlu1 %v3013_v57 }
 0x192   : > { %1934 = vperm.xlu1 %2939, %v3618_v22  }
 0x193   : > { %2943 = vset.pattern.permute.xlu0 %v3022_v39 }
 0x194   : > { %1953 = vperm.xlu0 %2943, %v3618_v22  }
 0x196   : > { %2941 = vset.pattern.permute.xlu1 %v3015_v7 }
 0x197   : > { %2145 = vperm.xlu1 %2941, %v3618_v22  }
 0x19b   : > { %2942 = vset.pattern.permute.xlu1 %v3017_v18 }
 0x19c   : > { %1839 = vperm.xlu1 %2942, %v3618_v22  }
 0x19d   : > { %v2975_v45 = vpop.eup %2974 }
 0x19e   : > { %v674_v50 = vmul.f32 %v2975_v45, %v658_v43  ;;  %v675_v54 = vmul.f32 %v2975_v45, %v659_v52  ;;  %v676_v58 = vmul.f32 %v2975_v45, %v660_v56  ;;  %v677_v60 = vmul.f32 %v2975_v45, %v661_v59 }
 0x19f   : > { %v678_v63 = vmul.f32 %v2975_v45, %v662_v62  ;;  %v679_v49 = vmul.f32 %v2975_v45, %v663_v3  ;;  %v680_v24 = vmul.f32 %v2975_v45, %v664_v19  ;;  %v681_v13 = vmul.f32 %v2975_v45, %v665_v12 }
 0x1a0   : > { %755 = vmatmul.mubr.f32.vlgmr.msra.gmra.mxu0 %v674_v50  ;;  %v682_v6 = vmul.f32 %v2975_v45, %v666_v5  ;;  %v683_v9 = vmul.f32 %v2975_v45, %v667_v0  ;;  %v684_v8 = vmul.f32 %v2975_v45, %v668_v14  ;;  %v685_v15 = vmul.f32 %v2975_v45, %v669_v4  ;;  %v3711_v50 = vpop.f32.mrf.mxu1 }
 0x1a1   : > { %760 = vmatprep.mubr.f32.mxu0 %v2997_v51  ;;  %v686_v2 = vmul.f32 %v2975_v45, %v670_v16  ;;  %v687_v20 = vmul.f32 %v2975_v45, %v671_v17  ;;  %v688_v26 = vmul.f32 %v2975_v45, %v672_v21  ;;  %v689_v28 = vmul.f32 %v2975_v45, %v673_v27 }
 0x1a2   : > { %2944 = vset.pattern.permute.xlu1 %v3019_v30  ;;  %v3024_v43 = vmov 34   ;;  %v3025_v45 = vmov 46   ;;  %v3026_v52 = vmov 41   ;;  %v3027_v56 = vmov 47  }
 0x1a3   : > { %2068 = vperm.xlu1 %2944, %v3618_v22   ;;  %2946 = vset.pattern.permute.xlu0 %v3024_v43  ;;  %v3033_v12 = vmov 6  }
 0x1a4   : > { %761 = vmatmul.mubr.f32.gmra.mxu0 %v675_v54  ;;  %1972 = vperm.xlu0 %2946, %v3618_v22   ;;  %v3715_v54 = vpop.f32.mrf.mxu1 }
 0x1a5   : > { %766 = vmatprep.mubr.f32.mxu0 %v2997_v51 }
 0x1a6   : > { %v974_v59 = vpop.f32.mrf.mxu1 }
 0x1a7   : > { %2945 = vset.pattern.permute.xlu1 %v3021_v36 }
 0x1a8   : > { %767 = vmatmul.mubr.f32.gmra.mxu0 %v676_v58  ;;  %2164 = vperm.xlu1 %2945, %v3618_v22   ;;  %v3028_v58 = vmov 7   ;;  %v978_v62 = vpop.f32.mrf.mxu1 }
 0x1a9   : > { %772 = vmatprep.mubr.f32.mxu0 %v2997_v51  ;;  %2949 = vset.pattern.permute.xlu0 %v3026_v52 }
 0x1aa   : > { %2106 = vperm.xlu0 %2949, %v3618_v22   ;;  %v980_v3 = vpop.f32.mrf.mxu1 }
 0x1ac   : > { %773 = vmatmul.mubr.f32.gmra.mxu0 %v677_v60  ;;  %2947 = vset.pattern.permute.xlu1 %v3023_v40  ;;  %v4413_v60 = vmov 48   ;;  %v984_v19 = vpop.f32.mrf.mxu1 }
 0x1ad   : > { %778 = vmatprep.mubr.f32.mxu0 %v2997_v51  ;;  %2087 = vperm.xlu1 %2947, %v3618_v22  }
 0x1ae   : > { %2952 = vset.pattern.permute.xlu0 %v3028_v58  ;;  %v1080_v58 = vpop.permute.xlu0 %1079 }
 0x1af   : > { %1456 = vperm.xlu0 %2952, %v3618_v22  }
 0x1b0   : > { %779 = vmatmul.mubr.f32.gmra.mxu0 %v678_v63  ;;  %v3030_v63 = vmov 21  }
 0x1b1   : > { %784 = vmatprep.mubr.f32.mxu0 %v2997_v51  ;;  %2948 = vset.pattern.permute.xlu1 %v3025_v45 }
 0x1b2   : > { %2202 = vperm.xlu1 %2948, %v3618_v22  }
 0x1b3   : > { %2955 = vset.pattern.permute.xlu0 %v3030_v63 }
 0x1b4   : > { %785 = vmatmul.mubr.f32.gmra.mxu0 %v679_v49  ;;  %1724 = vperm.xlu0 %2955, %v3618_v22   ;;  %v3031_v49 = vmov 4  }
 0x1b5   : > { %790 = vmatprep.mubr.f32.mxu0 %v2997_v51 }
 0x1b6   : > { %2950 = vset.pattern.permute.xlu1 %v3027_v56 }
 0x1b7   : > { %2221 = vperm.xlu1 %2950, %v3618_v22  }
 0x1b8   : > { %791 = vmatmul.mubr.f32.gmra.mxu0 %v680_v24  ;;  %2958 = vset.pattern.permute.xlu0 %v3031_v49  ;;  %v3032_v24 = vmov 14  }
 0x1b9   : > { %796 = vmatprep.mubr.f32.mxu0 %v2997_v51  ;;  %1417 = vperm.xlu0 %2958, %v3618_v22  }
 0x1bb   : > { %2951 = vset.pattern.permute.xlu1 %v4413_v60 }
 0x1bc   : > { %797 = vmatmul.mubr.f32.gmra.mxu0 %v681_v13  ;;  %2240 = vperm.xlu1 %2951, %v3618_v22   ;;  %v986_v13 = vpop.f32.mrf.mxu1 }
 0x1bd   : > { %802 = vmatprep.mubr.f32.mxu0 %v2997_v51  ;;  %2962 = vset.pattern.permute.xlu0 %v3033_v12 }
 0x1be   : > { %1443 = vperm.xlu0 %2962, %v3618_v22   ;;  %v990_v5 = vpop.f32.mrf.mxu1 }
 0x1c0   : > { %803 = vmatmul.mubr.f32.gmra.mxu0 %v682_v6  ;;  %2953 = vset.pattern.permute.xlu1 %v3032_v24  ;;  %v992_v6 = vpop.f32.mrf.mxu1 }
 0x1c1   : > { %808 = vmatprep.mubr.f32.mxu0 %v2997_v51 }
 0x1c2   : > { %v3724_v0 = vpop.f32.mrf.mxu1 }
 0x1c4   : > { %809 = vmatmul.mubr.f32.gmra.mxu0 %v683_v9  ;;  %v3726_v9 = vpop.f32.mrf.mxu1 }
 0x1c5   : > { %814 = vmatprep.mubr.f32.mxu0 %v2997_v51 }
 0x1c6   : > { %v3728_v14 = vpop.f32.mrf.mxu1 }
 0x1c8   : > { %815 = vmatmul.mubr.f32.gmra.mxu0 %v684_v8  ;;  %v3730_v8 = vpop.f32.mrf.mxu1 }
 0x1c9   : > { %820 = vmatprep.mubr.f32.mxu0 %v2997_v51 }
 0x1ca   : > { %v3732_v4 = vpop.f32.mrf.mxu1 }
 0x1cc   : > { %821 = vmatmul.mubr.f32.gmra.mxu0 %v685_v15  ;;  %v1085_v15 = vpop.permute.xlu1 %1084  ;;  %v3736_v16 = vpop.f32.mrf.mxu1 }
 0x1cd   : > { %826 = vmatprep.mubr.f32.mxu0 %v2997_v51 }
 0x1d0   : > { %827 = vmatmul.mubr.f32.gmra.mxu0 %v686_v2  ;;  %v1090_v21 = vpop.permute.xlu1 %1089 }
 0x1d1   : > { %832 = vmatprep.mubr.f32.mxu0 %v2997_v51 }
 0x1d4   : > { %833 = vmatmul.mubr.f32.gmra.mxu0 %v687_v20  ;;  %v3738_v20 = vpop.f32.mrf.mxu1  ;;  %v1095_v33 = vpop.permute.xlu1 %1094 }
 0x1d5   : > { %838 = vmatprep.mubr.f32.mxu0 %v2997_v51 }
 0x1d8   : > { %839 = vmatmul.mubr.f32.gmra.mxu0 %v688_v26 }
 0x1d9   : > { %844 = vmatprep.mubr.f32.mxu0 %v2997_v51  ;;  %v1100_v51 = vpop.permute.xlu1 %1099 }
 0x1dc   : > { %845 = vmatmul.mubr.f32.gmra.mxu0 %v689_v28  ;;  %v3740_v28 = vpop.f32.mrf.mxu1 }
 0x1dd   : > { %v1105_v61 = vpop.permute.xlu1 %1104 }
 0x1de   : > { %v3742_v37 = vpop.f32.mrf.mxu1 }
 0x1e0   : > { %v3744_v47 = vpop.f32.mrf.mxu1 }
 0x1e1   : > { %v1110_v34 = vpop.permute.xlu1 %1109 }
 0x1e2   : > { %v3746_v55 = vpop.f32.mrf.mxu1 }
 0x1e4   : > { %v3748_v11 = vpop.f32.mrf.mxu1 }
 0x1e5   : > { %v1115_v60 = vpop.permute.xlu1 %1114 }
 0x1e6   : > { %v3750_v30 = vpop.f32.mrf.mxu1 }
 0x1e8   : > { %v3753_v45 = vpop.f32.mrf.mxu1 }
 0x260   : > { %v756_v2 = vpop.f32.mrf.mxu0 }
 0x261   : > { %v967_v52 = vadd.f32 %v3708_v42, %v756_v2 }
 0x262   : > { %v758_v17 = vpop.f32.mrf.mxu0 }
 0x263   : > { %v969_v63 = vadd.f32 %v3711_v50, %v758_v17  ;;  %v1268_v17 = vrot.slane %v3293_v23, 4 }
 0x264   : > { %v762_v26 = vpop.f32.mrf.mxu0 }
 0x265   : > { %v973_v39 = vadd.f32 %v3715_v54, %v762_v26  ;;  %v3763_v26 = vadd.f32 %v1080_v58, %v967_v52  ;;  %v3799_v52 = vmax.f32 %v3293_v23, %v1268_v17 }
 0x266   : > { %v764_v27 = vpop.f32.mrf.mxu0 }
 0x267   : > { %v975_v40 = vadd.f32 %v974_v59, %v764_v27  ;;  %v3757_v12 = vadd.f32 %v1085_v15, %v973_v39  ;;  %v3761_v59 = vpop.f32.mrf.mxu1 }
 0x268   : > { %v768_v29 = vpop.f32.mrf.mxu0 }
 0x269   : > { %v979_v56 = vadd.f32 %v978_v62, %v768_v29  ;;  %v3759_v31 = vadd.f32 %v1085_v15, %v975_v40  ;;  %v3767_v62 = vadd.f32 %v1080_v58, %v969_v63  ;;  %v1125_v63 = vpop.permute.xlu0 %1124 }
 0x26a   : > { %v770_v35 = vpop.f32.mrf.mxu0 }
 0x26b   : > { %v981_v49 = vadd.f32 %v980_v3, %v770_v35  ;;  %v3765_v27 = vadd.f32 %v1090_v21, %v979_v56  ;;  %v1236_v29 = vadd.f32 %v3759_v31, %v3767_v62 }
 0x26c   : > { %v774_v41 = vpop.f32.mrf.mxu0 }
 0x26d   : > { %v985_v1 = vadd.f32 %v984_v19, %v774_v41  ;;  %v3769_v50 = vadd.f32 %v1090_v21, %v981_v49  ;;  %v1215_v19 = vadd.f32 %v3757_v12, %v3763_v26  ;;  %v3782_v41 = vpop.f32.mrf.mxu1 }
 0x26e   : > { %v776_v46 = vpop.f32.mrf.mxu0 }
 0x26f   : > { %v987_v22 = vadd.f32 %v986_v13, %v776_v46  ;;  %v3773_v15 = vadd.f32 %v1095_v33, %v985_v1  ;;  %v1120_v46 = vpop.permute.xlu1 %1119 }
 0x270   : > { %v780_v48 = vpop.f32.mrf.mxu0 }
 0x271   : > { %v991_v42 = vadd.f32 %v990_v5, %v780_v48  ;;  %v3779_v35 = vadd.f32 %v1095_v33, %v987_v22 }
 0x272   : > { %v782_v53 = vpop.f32.mrf.mxu0 }
 0x273   : > { %v993_v3 = vadd.f32 %v992_v6, %v782_v53  ;;  %v1216_v6 = vadd.f32 %v1215_v19, %v3765_v27  ;;  %v3785_v48 = vadd.f32 %v1100_v51, %v991_v42  ;;  %v1237_v53 = vadd.f32 %v1236_v29, %v3769_v50 }
 0x274   : > { %v786_v57 = vpop.f32.mrf.mxu0 }
 0x275   : > { %v997_v13 = vadd.f32 %v3724_v0, %v786_v57  ;;  %v1196_v0 = vrot.slane %v3310_v38, 4  ;;  %v3790_v57 = vadd.f32 %v1100_v51, %v993_v3  ;;  %v1130_v3 = vpop.permute.xlu1 %1129 }
 0x276   : > { %v788_v7 = vpop.f32.mrf.mxu0 }
 0x277   : > { %v999_v5 = vadd.f32 %v3726_v9, %v788_v7  ;;  %v1281_v9 = vrot.slane %v3304_v32, 4  ;;  %v1217_v7 = vadd.f32 %v1216_v6, %v3773_v15  ;;  %v3795_v39 = vadd.f32 %v1105_v61, %v997_v13 }
 0x278   : > { %v792_v18 = vpop.f32.mrf.mxu0  ;;  %v3811_v23 = vadd.f32 %v1196_v0, %v3310_v38  ;;  %v1270_v38 = vrot.slane %v3799_v52, 2 }
 0x279   : > { %v1003_v1 = vadd.f32 %v3728_v14, %v792_v18  ;;  %v1238_v14 = vadd.f32 %v1237_v53, %v3779_v35  ;;  %v3802_v18 = vadd.f32 %v1105_v61, %v999_v5  ;;  %v1218_v58 = vadd.f32 %v1217_v7, %v3785_v48 }
 0x27a   : > { %v794_v25 = vpop.f32.mrf.mxu0  ;;  %v3818_v42 = vmax.f32 %v3304_v32, %v1281_v9 }
 0x27b   : > { %v1005_v22 = vadd.f32 %v3730_v8, %v794_v25  ;;  %v1044_v8 = vpop.f32.mrf.mxu1  ;;  %v1209_v25 = vrot.slane %v3319_v44, 4  ;;  %v3807_v49 = vadd.f32 %v1110_v34, %v1003_v1  ;;  %v1219_v19 = vadd.f32 %v1218_v58, %v3795_v39 }
 0x27c   : > { %v798_v36 = vpop.f32.mrf.mxu0 }
 0x27d   : > { %v1009_v40 = vadd.f32 %v3732_v4, %v798_v36  ;;  %v1239_v36 = vadd.f32 %v1238_v14, %v3790_v57  ;;  %v3814_v61 = vadd.f32 %v1110_v34, %v1005_v22  ;;  %v3830_v32 = vadd.f32 %v1209_v25, %v3319_v44  ;;  %v1135_v44 = vpop.permute.xlu0 %1134  ;;  %v1140_v14 = vpop.permute.xlu1 %1139 }
 0x27e   : > { %v800_v43 = vpop.f32.mrf.mxu0  ;;  %v1220_v29 = vadd.f32 %v1219_v19, %v3807_v49  ;;  %v1309_v25 = vmax.f32 %v3759_v31, %v3779_v35 }
 0x27f   : > { %v1011_v51 = vadd.f32 %v3736_v16, %v800_v43  ;;  %4431 = vst [vmem:[#allocation5_spill] sm:$0xff] %v3814_v61  ;;  %v3821_v13 = vadd.f32 %v1115_v60, %v1009_v40  ;;  %v1288_v40 = vmax.f32 %v3757_v12, %v3773_v15 }
 0x280   : > { %v804_v24 = vpop.f32.mrf.mxu0 }
 0x281   : > { %v1015_v4 = vadd.f32 %v3738_v20, %v804_v24  ;;  %v1240_v24 = vadd.f32 %v1239_v36, %v3802_v18  ;;  %v3826_v17 = vadd.f32 %v1115_v60, %v1011_v51  ;;  %v1221_v0 = vadd.f32 %v1220_v29, %v3821_v13 }
 0x282   : > { %v806_v54 = vpop.f32.mrf.mxu0 }
 0x283   : > { %v1017_v16 = vadd.f32 %v3740_v28, %v806_v54  ;;  %4432 = vst [vmem:[#allocation6_spill] sm:$0xff] %v3826_v17  ;;  %v1046_v54 = vpop.f32.mrf.mxu1  ;;  %v3833_v5 = vadd.f32 %v1120_v46, %v1015_v4 }
 0x284   : > { %v810_v2 = vpop.f32.mrf.mxu0 }
 0x285   : > { %v1021_v20 = vadd.f32 %v3742_v37, %v810_v2  ;;  %v1198_v37 = vrot.slane %v3811_v23, 2  ;;  %v1241_v2 = vadd.f32 %v1240_v24, %v3814_v61  ;;  %v3838_v1 = vadd.f32 %v1120_v46, %v1017_v16  ;;  %v1050_v7 = vpop.f32.mrf.mxu1 }
 0x286   : > { %v812_v21 = vpop.f32.mrf.mxu0  ;;  %v1222_v51 = vadd.f32 %v1221_v0, %v3833_v5 }
 0x287   : > { %v1023_v34 = vadd.f32 %v3744_v47, %v812_v21  ;;  %4433 = vst [vmem:[#allocation7_spill] sm:$0xff] %v3838_v1  ;;  %v1287_v21 = vmax.f32 %v3763_v26, %v3765_v27  ;;  %v3844_v53 = vadd.f32 %v1125_v63, %v1021_v20  ;;  %v1052_v29 = vpop.f32.mrf.mxu1 }
 0x288   : > { %v816_v33 = vpop.f32.mrf.mxu0 }
 0x289   : > { %v1027_v6 = vadd.f32 %v3746_v55, %v816_v33  ;;  %v1308_v55 = vmax.f32 %v3767_v62, %v3769_v50  ;;  %v1242_v33 = vadd.f32 %v1241_v2, %v3826_v17  ;;  %v3850_v46 = vadd.f32 %v1125_v63, %v1023_v34 }
 0x28a   : > { %v818_v56 = vpop.f32.mrf.mxu0  ;;  %v1289_v58 = vmax.f32 %v1287_v21, %v3785_v48  ;;  %v1223_v36 = vadd.f32 %v1222_v51, %v3844_v53 }
 0x28b   : > { %v1029_v60 = vadd.f32 %v3748_v11, %v818_v56  ;;  %4434 = vst [vmem:[#allocation8_spill] sm:$0xff] %v3850_v46  ;;  %v3856_v56 = vadd.f32 %v1130_v3, %v1027_v6  ;;  %v1243_v63 = vadd.f32 %v1242_v33, %v3838_v1  ;;  %v1310_v20 = vmax.f32 %v1308_v55, %v3790_v57  ;;  %v1145_v6 = vpop.permute.xlu0 %1144 }
 0x28c   : > { %v822_v43 = vpop.f32.mrf.mxu0 }
 0x28d   : > { %v1033_v22 = vadd.f32 %v3750_v30, %v822_v43  ;;  %v1244_v24 = vadd.f32 %v1243_v63, %v3850_v46  ;;  %v1224_v2 = vadd.f32 %v1223_v36, %v3856_v56 }
 0x28e   : > { %v824_v28 = vpop.f32.mrf.mxu0 }
 0x28f   : > { %v1035_v11 = vadd.f32 %v3753_v45, %v824_v28  ;;  %v3863_v45 = vadd.f32 %v1130_v3, %v1029_v60  ;;  %v3866_v16 = vadd.f32 %v1135_v44, %v1033_v22  ;;  %v1311_v3 = vmax.f32 %v1309_v25, %v3802_v18  ;;  %v1150_v22 = vpop.permute.xlu1 %1149 }
 0x290   : > { %v828_v47 = vpop.f32.mrf.mxu0 }
 0x291   : > { %v1039_v30 = vadd.f32 %v3761_v59, %v828_v47  ;;  %4435 = vst [vmem:[#allocation9_spill] sm:$0xff] %v3863_v45  ;;  %v1290_v59 = vmax.f32 %v1288_v40, %v3795_v39  ;;  %v3872_v34 = vadd.f32 %v1135_v44, %v1035_v11  ;;  %v1245_v0 = vadd.f32 %v1244_v24, %v3863_v45  ;;  %v1155_v24 = vpop.permute.xlu0 %1154 }
 0x292   : > { %v830_v9 = vpop.f32.mrf.mxu0  ;;  %v1225_v55 = vadd.f32 %v1224_v2, %v3866_v16  ;;  %v1313_v40 = vmax.f32 %v1311_v3, %v3826_v17 }
 0x293   : > { %v1041_v43 = vadd.f32 %v3782_v41, %v830_v9  ;;  %4436 = vst [vmem:[#allocation10_spill] sm:$0xff] %v3872_v34  ;;  %v3876_v60 = vadd.f32 %v1140_v14, %v1039_v30  ;;  %v1291_v41 = vmax.f32 %v1289_v58, %v3807_v49  ;;  %v1292_v21 = vmax.f32 %v1290_v59, %v3821_v13  ;;  %v1056_v58 = vpop.f32.mrf.mxu1 }
 0x294   : > { %v834_v4 = vpop.f32.mrf.mxu0  ;;  %v1246_v30 = vadd.f32 %v1245_v0, %v3872_v34 }
 0x295   : > { %v1045_v19 = vadd.f32 %v1044_v8, %v834_v4  ;;  %v1312_v8 = vmax.f32 %v1310_v20, %v3814_v61  ;;  %v3883_v33 = vadd.f32 %v1140_v14, %v1041_v43  ;;  %v1294_v51 = vmax.f32 %v1292_v21, %v3844_v53  ;;  %v1058_v21 = vpop.f32.mrf.mxu1 }
 0x296   : > { %v836_v28 = vpop.f32.mrf.mxu0  ;;  %v1226_v63 = vadd.f32 %v1225_v55, %v3876_v60 }
 0x297   : > { %v1047_v47 = vadd.f32 %v1046_v54, %v836_v28  ;;  %4437 = vst [vmem:[#allocation11_spill] sm:$0xff] %v3883_v33  ;;  %v3885_v11 = vadd.f32 %v1145_v6, %v1045_v19  ;;  %v1293_v54 = vmax.f32 %v1291_v41, %v3833_v5  ;;  %v1314_v43 = vmax.f32 %v1312_v8, %v3838_v1 }
 0x298   : > { %v840_v44 = vpop.f32.mrf.mxu0  ;;  %v1296_v20 = vmax.f32 %v1294_v51, %v3866_v16  ;;  %v1247_v28 = vadd.f32 %v1246_v30, %v3883_v33 }
 0x299   : > { %v1051_v9 = vadd.f32 %v1050_v7, %v840_v44  ;;  %v3892_v4 = vadd.f32 %v1145_v6, %v1047_v47  ;;  %v1315_v7 = vmax.f32 %v1313_v40, %v3850_v46  ;;  %v1295_v19 = vmax.f32 %v1293_v54, %v3856_v56 }
 0x29a   : > { %v842_v25 = vpop.f32.mrf.mxu0  ;;  %v1227_v3 = vadd.f32 %v1226_v63, %v3885_v11  ;;  %v1316_v47 = vmax.f32 %v1314_v43, %v3863_v45  ;;  %v1298_v8 = vmax.f32 %v1296_v20, %v3885_v11  ;;  %v1199_v43 = vadd.f32 %v1198_v37, %v3811_v23 }
 0x29b   : > { %4438 = vst [vmem:[#allocation12_spill] sm:$0xff] %v3892_v4  ;;  %v3894_v36 = vadd.f32 %v1150_v22, %v1051_v9  ;;  %v1053_v14 = vadd.f32 %v1052_v29, %v842_v25  ;;  %v1317_v29 = vmax.f32 %v1315_v7, %v3872_v34  ;;  %v1297_v41 = vmax.f32 %v1295_v19, %v3876_v60 }
 0x29c   : > { %v846_v59 = vpop.f32.mrf.mxu0  ;;  %v1248_v44 = vadd.f32 %v1247_v28, %v3892_v4  ;;  %v1318_v54 = vmax.f32 %v1316_v47, %v3883_v33  ;;  %v1283_v7 = vrot.slane %v3818_v42, 2  ;;  %v1200_v37 = vrot.slane %v1199_v43, 1 }
 0x29d   : > { %v3902_v2 = vadd.f32 %v1150_v22, %v1053_v14  ;;  %v1057_v6 = vadd.f32 %v1056_v58, %v846_v59  ;;  %v1228_v55 = vadd.f32 %v1227_v3, %v3894_v36  ;;  %v1211_v22 = vrot.slane %v3830_v32, 2 }
 0x29e   : > { %v848_v0 = vpop.f32.mrf.mxu0  ;;  %v1319_v51 = vmax.f32 %v1317_v29, %v3892_v4  ;;  %v1299_v30 = vmax.f32 %v1297_v41, %v3894_v36 }
 0x29f   : > { %4439 = vst [vmem:[#allocation13_spill] sm:$0xff] %v3902_v2  ;;  %v3910_v9 = vadd.f32 %v1155_v24, %v1057_v6  ;;  %v1059_v40 = vadd.f32 %v1058_v21, %v848_v0  ;;  %v1249_v25 = vadd.f32 %v1248_v44, %v3902_v2  ;;  %v1320_v19 = vmax.f32 %v1318_v54, %v3902_v2 }
 0x2a0   : > { %v1212_v6 = vadd.f32 %v1211_v22, %v3830_v32 }
 0x2a1   : > { %v1229_v58 = vadd.f32 %v1228_v55, %v3910_v9  ;;  %v1300_v63 = vmax.f32 %v1298_v8, %v3910_v9  ;;  %v3919_v14 = vadd.f32 %v1155_v24, %v1059_v40  ;;  %v1271_v24 = vmax.f32 %v3799_v52, %v1270_v38 }
 0x2a2   : > { %v1284_v8 = vmax.f32 %v3818_v42, %v1283_v7  ;;  %v1213_v40 = vrot.slane %v1212_v6, 1 }
 0x2a3   : > { %4440 = vst [vmem:[#allocation14_spill] sm:$0xff] %v3919_v14  ;;  %v1230_v20 = vrot.slane %v1229_v58, 4  ;;  %v1301_v59 = vmax.f32 %v1299_v30, %v1300_v63  ;;  %v1250_v28 = vadd.f32 %v1249_v25, %v3919_v14  ;;  %v1321_v3 = vmax.f32 %v1319_v51, %v3919_v14 }
 0x2a4   : > { %v1272_v54 = vrot.slane %v1271_v24, 1  ;;  %v1201_v25 = vadd.f32 %v1200_v37, %v1199_v43  ;;  %v1285_v63 = vrot.slane %v1284_v8, 1  ;;  %v1214_v14 = vadd.f32 %v1213_v40, %v1212_v6 }
 0x2a5   : > { %v1231_v47 = vadd.f32 %v1230_v20, %v1229_v58  ;;  %v1302_v29 = vrot.slane %v1301_v59, 4  ;;  %v1251_v41 = vrot.slane %v1250_v28, 4  ;;  %v1322_v23 = vmax.f32 %v1320_v19, %v1321_v3 }
 0x2a6   : > { %v3034_v19 = vmov 1983009808   ;;  %v1273_v42 = vmax.f32 %v1271_v24, %v1272_v54  ;;  %v3936_v24 = vpop.permute.xlu1 %1495 }
 0x2a7   : > { %v1232_v21 = vrot.slane %v1231_v47, 2  ;;  %v1303_v0 = vmax.f32 %v1301_v59, %v1302_v29  ;;  %v1252_v44 = vadd.f32 %v1251_v41, %v1250_v28  ;;  %v1323_v55 = vrot.slane %v1322_v23, 4 }
 0x2a8   : > { %v1342_v3 = vunpack.c.l.s4 %v3034_v19  ;;  %v1286_v41 = vmax.f32 %v1284_v8, %v1285_v63  ;;  %v3038_v63 = vmov 28  }
 0x2a9   : > { %v1233_v51 = vadd.f32 %v1232_v21, %v1231_v47  ;;  %v1304_v30 = vrot.slane %v1303_v0, 2  ;;  %v1253_v32 = vrot.slane %v1252_v44, 2  ;;  %v1324_v22 = vmax.f32 %v1322_v23, %v1323_v55 }
 0x2aa   : > { %v1343_v23 = vunpack.c.0.s8 %v1342_v3  ;;  %v3041_v3 = vmov 42  }
 0x2ab   : > { %v1234_v52 = vrot.slane %v1233_v51, 1  ;;  %v1305_v38 = vmax.f32 %v1303_v0, %v1304_v30  ;;  %v1254_v58 = vadd.f32 %v1253_v32, %v1252_v44  ;;  %v1325_v20 = vrot.slane %v1324_v22, 2 }
 0x2ac   : > { %v3934_v6 = vsub.s32 %v1343_v23, %v3469_v10 }
 0x2ad   : > { %v1235_v7 = vadd.f32 %v1234_v52, %v1233_v51  ;;  %v1306_v59 = vrot.slane %v1305_v38, 1  ;;  %v1255_v28 = vrot.slane %v1254_v58, 1  ;;  %v1326_v29 = vmax.f32 %v1324_v22, %v1325_v20  ;;  %v3939_v51 = vpop.permute.xlu1 %1610 }
 0x2ae   : > { %v3040_v20 = vmov 5  }
 0x2af   : > { %v1256_v2 = vadd.f32 %v1255_v28, %v1254_v58  ;;  %v1327_v47 = vrot.slane %v1326_v29, 1  ;;  %v1257_v21 = vadd.f32 %v1235_v7, %v1201_v25  ;;  %v1307_v4 = vmax.f32 %v1305_v38, %v1306_v59 }
 0x2b0   : > { %v3037_v25 = vmov 2   ;;  %v3039_v38 = vmov 35   ;;  %v4442_v7 = vmov 0  }
 0x2b1   : > { %v1258_v43 = vadd.f32 %v1256_v2, %v1214_v14  ;;  %v1259_v37 = vmul.f32 0.0052083335, %v1257_v21  ;;  %v1328_v0 = vmax.f32 %v1326_v29, %v1327_v47  ;;  %v1329_v44 = vmax.f32 %v1273_v42, %v1307_v4  ;;  %v4441_v2 = vld [vmem:[#allocation4_spill] sm:$0xff]  ;;  %v3942_v14 = vpop.permute.xlu1 %1629 }
 0x2b2   : > { %v3036_v4 = vmov 1  }
 0x2b3   : > { %v1260_v55 = vmul.f32 0.0052083335, %v1258_v43  ;;  %v1330_v30 = vmax.f32 %v1286_v41, %v1328_v0  ;;  %v1332_v32 = vsel %vm1331_vm8, %v1259_v37, %v1329_v44  ;;  %v3042_v41 = vmov 10  }
 0x2b4   : > { %2964 = vset.pattern.permute.xlu0 %v3042_v41 }
 0x2b5   : > { %v1333_v40 = vsel %vm1331_vm8, %v1260_v55, %v1330_v30  ;;  %v3945_v22 = vpop.permute.xlu1 %1744 }
 0x2b6   : > { %v1340_v8 = vcombine.low %v1332_v32, %v1333_v40  ;;  %v3043_v32 = vmov 269488144  }
 0x2b7   : > { %v1367_v40 = vunpack.c.l.s4 %v3043_v32 }
 0x2b8   : > { %v1347_v54 = vrot.slane %v1340_v8, %v3934_v6 }
 0x2b9   : > { %v3948_v52 = vpop.permute.xlu1 %1667 }
 0x2ba   : > { %1348 = vrot.lane.b32.xlu1 %v1347_v54, %s3035_s25  ;;  %s4332_s25 = scalar_lea.vmem %s4412_s9, %s2844_s11 }
 0x2bd   : > { %v3952_v58 = vpop.permute.xlu1 %1763 }
 0x2be   : > { %1590 = vperm.xlu1 %2953, %v4441_v2  }
 0x2c1   : > { %v3955_v19 = vpop.permute.xlu1 %1571 }
 0x2c2   : > { %2954 = vset.pattern.permute.xlu1 %v3036_v4 }
 0x2c3   : > { %1378 = vperm.xlu1 %2954, %v4441_v2  }
 0x2c5   : > { %v3958_v42 = vpop.permute.xlu1 %1686 }
 0x2c7   : > { %2956 = vset.pattern.permute.xlu1 %v3037_v25 }
 0x2c8   : > { %1391 = vperm.xlu1 %2956, %v4441_v2  }
 0x2c9   : > { %v3961_v59 = vpop.permute.xlu1 %1896 }
 0x2cc   : > { %2957 = vset.pattern.permute.xlu1 %v3038_v63  ;;  %v1477_v63 = vpop.permute.xlu0 %1476 }
 0x2cd   : > { %1858 = vperm.xlu1 %2957, %v4441_v2   ;;  %v3963_v28 = vpop.permute.xlu1 %2011 }
 0x2d1   : > { %2959 = vset.pattern.permute.xlu1 %v3039_v38  ;;  %v3965_v29 = vpop.permute.xlu1 %1820 }
 0x2d2   : > { %1991 = vperm.xlu1 %2959, %v4441_v2  }
 0x2d5   : > { %v3967_v47 = vpop.permute.xlu1 %1934 }
 0x2d6   : > { %2960 = vset.pattern.permute.xlu1 %v3040_v20 }
 0x2d7   : > { %1430 = vperm.xlu1 %2960, %v4441_v2  }
 0x2d9   : > { %v3969_v21 = vpop.permute.xlu1 %2145 }
 0x2db   : > { %2961 = vset.pattern.permute.xlu1 %v3041_v3 }
 0x2dc   : > { %2125 = vperm.xlu1 %2961, %v4441_v2   ;;  %v1368_v2 = vunpack.c.0.s8 %v1367_v40 }
 0x2dd   : > { %v3971_v23 = vpop.permute.xlu1 %1839 }
 0x2de   : > { %v3986_v25 = vsub.s32 %v1368_v2, %v3469_v10 }
 0x2e0   : > { %2963 = vset.pattern.permute.xlu1 %v4442_v7  ;;  %v1484_v38 = vrot.slane %v1477_v63, %v3986_v25  ;;  %v1503_v20 = vrot.slane %v3936_v24, %v3986_v25  ;;  %v1534_v7 = vpop.permute.xlu0 %1533 }
 0x2e1   : > { %v3973_v43 = vpop.permute.xlu1 %2068  ;;  %v1541_v40 = vrot.slane %v1534_v7, %v3986_v25 }
 0x2e4   : > { %v1553_v2 = vpop.permute.xlu0 %1552 }
 0x2e5   : > { %v3975_v37 = vpop.permute.xlu1 %2164 }
 0x2e9   : > { %v3977_v0 = vpop.permute.xlu1 %2087 }
 0x2ed   : > { %v3979_v44 = vpop.permute.xlu1 %2202 }
 0x2f1   : > { %v3981_v55 = vpop.permute.xlu1 %2221 }
 0x2f5   : > { %v3983_v30 = vpop.permute.xlu1 %2240 }
 0x32c   : > { %v1349_v8 = vpop.permute.xlu1 %1348 }
 0x32d   : > { %v1350_v54 = vrot.slane %v1349_v8, 6 }
 0x32f   : > { %v1352_v4 = vsel %vm1351_vm13, %v1350_v54, %v1349_v8  ;;  %v1618_v8 = vrot.slane %v3939_v51, %v3986_v25  ;;  %v1637_v54 = vrot.slane %v3942_v14, %v3986_v25  ;;  %v1560_v51 = vrot.slane %v1553_v2, %v3986_v25 }
 0x330   : > { %1359 = vst.msk [vmem:[#allocation2] sm:$0x3f] %vm1358_vm14, %v1352_v4  ;;  %v1752_v4 = vrot.slane %v3945_v22, %v3986_v25  ;;  %v1675_v14 = vrot.slane %v3948_v52, %v3986_v25  ;;  %vm2468_vm13 = vcmask 1014784  }
 0x337   : > { %v3991_v3 = vld [vmem:[#allocation2] sm:$0x3f] }
 0x338   : > { %v1486_v41 = vmul.f32 %v1484_v38, %v3991_v3  ;;  %v1505_v32 = vmul.f32 %v1503_v20, %v3991_v3  ;;  %v1620_v10 = vmul.f32 %v1618_v8, %v3991_v3  ;;  %v1543_v24 = vmul.f32 %v1541_v40, %v3991_v3  ;;  %v1878_v20 = vpop.permute.xlu0 %1877 }
 0x339   : > { %v1639_v63 = vmul.f32 %v1637_v54, %v3991_v3  ;;  %v1754_v38 = vmul.f32 %v1752_v4, %v3991_v3  ;;  %v1562_v7 = vmul.f32 %v1560_v51, %v3991_v3  ;;  %v1885_v22 = vrot.slane %v1878_v20, %v3986_v25 }
 0x33a   : > { %1507 = vrot.lane.b32.xlu1 %v1505_v32, %s3044_s26  ;;  %1488 = vrot.lane.b32.xlu0 %v1486_v41, %s3044_s26  ;;  %v1677_v41 = vmul.f32 %v1675_v14, %v3991_v3  ;;  %v1771_v32 = vrot.slane %v3952_v58, %v3986_v25  ;;  %v1579_v8 = vrot.slane %v3955_v19, %v3986_v25 }
 0x33b   : > { %v1887_v52 = vmul.f32 %v1885_v22, %v3991_v3  ;;  %v1904_v19 = vrot.slane %v3961_v59, %v3986_v25  ;;  %v1828_v20 = vrot.slane %v3965_v29, %v3986_v25  ;;  %v1942_v22 = vrot.slane %v3967_v47, %v3986_v25 }
 0x33c   : > { %v1773_v40 = vmul.f32 %v1771_v32, %v3991_v3  ;;  %v1581_v54 = vmul.f32 %v1579_v8, %v3991_v3  ;;  %v2153_v29 = vrot.slane %v3969_v21, %v3986_v25 }
 0x33d   : > { %v1944_v32 = vmul.f32 %v1942_v22, %v3991_v3  ;;  %v2229_v22 = vrot.slane %v3981_v55, %v3986_v25  ;;  %v4109_v55 = vld [vmem:[%s4411_s8] sm:$0x3] }
 0x33e   : > { %1622 = vrot.lane.b32.xlu1 %v1620_v10, %s3045_s27  ;;  %1545 = vrot.lane.b32.xlu0 %v1543_v24, %s3044_s26  ;;  %v1802_v10 = vpop.permute.xlu0 %1801  ;;  %v1694_v24 = vrot.slane %v3958_v42, %v3986_v25  ;;  %v2155_v8 = vmul.f32 %v2153_v29, %v3991_v3 }
 0x33f   : > { %v1809_v58 = vrot.slane %v1802_v10, %v3986_v25  ;;  %v1847_v10 = vrot.slane %v3971_v23, %v3986_v25  ;;  %v2172_v23 = vrot.slane %v3975_v37, %v3986_v25 }
 0x340   : > { %v1696_v2 = vmul.f32 %v1694_v24, %v3991_v3  ;;  %v4065_v24 = vpop.permute.xlu1 %1590 }
 0x341   : > { %v1811_v51 = vmul.f32 %v1809_v58, %v3991_v3  ;;  %v1849_v21 = vmul.f32 %v1847_v10, %v3991_v3 }
 0x342   : > { %1641 = vrot.lane.b32.xlu1 %v1639_v63, %s3045_s27  ;;  %1756 = vrot.lane.b32.xlu0 %v1754_v38, %s3046_s28  ;;  %v1706_v4 = vpop.permute.xlu0 %1705  ;;  %v1906_v63 = vmul.f32 %v1904_v19, %v3991_v3  ;;  %v2019_v38 = vrot.slane %v3963_v28, %v3986_v25 }
 0x343   : > { %v1713_v42 = vrot.slane %v1706_v4, %v3986_v25 }
 0x344   : > { %v2021_v14 = vmul.f32 %v2019_v38, %v3991_v3 }
 0x345   : > { %v1715_v59 = vmul.f32 %v1713_v42, %v3991_v3  ;;  %v4079_v42 = vpop.permute.xlu1 %1378 }
 0x346   : > { %1564 = vrot.lane.b32.xlu1 %v1562_v7, %s3044_s26  ;;  %1679 = vrot.lane.b32.xlu0 %v1677_v41, %s3045_s27  ;;  %v2031_v7 = vpop.permute.xlu0 %2030  ;;  %v1830_v41 = vmul.f32 %v1828_v20, %v3991_v3 }
 0x347   : > { %v2038_v28 = vrot.slane %v2031_v7, %v3986_v25 }
 0x349   : > { %v4091_v20 = vpop.permute.xlu1 %1391 }
 0x34a   : > { %1775 = vrot.lane.b32.xlu1 %v1773_v40, %s3046_s28  ;;  %1889 = vrot.lane.b32.xlu0 %v1887_v52, %s3047_s29  ;;  %v1954_v40 = vpop.permute.xlu0 %1953  ;;  %v2040_v52 = vmul.f32 %v2038_v28, %v3991_v3  ;;  %v2248_v28 = vrot.slane %v3983_v30, %v3986_v25 }
 0x34b   : > { %v1961_v47 = vrot.slane %v1954_v40, %v3986_v25 }
 0x34d   : > { %v1963_v58 = vmul.f32 %v1961_v47, %v3991_v3  ;;  %v3051_v47 = vmov 45  }
 0x34e   : > { %1583 = vrot.lane.b32.xlu1 %v1581_v54, %s3044_s26  ;;  %1698 = vrot.lane.b32.xlu0 %v1696_v2, %s3045_s27  ;;  %v2076_v54 = vrot.slane %v3973_v43, %v3986_v25  ;;  %v1973_v2 = vpop.permute.xlu0 %1972  ;;  %v2095_v43 = vrot.slane %v3977_v0, %v3986_v25 }
 0x34f   : > { %v1980_v19 = vrot.slane %v1973_v2, %v3986_v25 }
 0x350   : > { %v2078_v4 = vmul.f32 %v2076_v54, %v3991_v3  ;;  %v4443_v54 = vmov 48  }
 0x351   : > { %v1982_v37 = vmul.f32 %v1980_v19, %v3991_v3 }
 0x352   : > { %1813 = vrot.lane.b32.xlu1 %v1811_v51, %s3046_s28  ;;  %1908 = vrot.lane.b32.xlu0 %v1906_v63, %s3047_s29  ;;  %v2174_v51 = vmul.f32 %v2172_v23, %v3991_v3  ;;  %v2107_v63 = vpop.permute.xlu0 %2106 }
 0x353   : > { %v2114_v38 = vrot.slane %v2107_v63, %v3986_v25  ;;  %v1598_v63 = vrot.slane %v4065_v24, %v3986_v25 }
 0x355   : > { %v2116_v7 = vmul.f32 %v2114_v38, %v3991_v3 }
 0x356   : > { %2023 = vrot.lane.b32.xlu1 %v2021_v14, %s3048_s12  ;;  %1717 = vrot.lane.b32.xlu0 %v1715_v59, %s3045_s27  ;;  %v2097_v14 = vmul.f32 %v2095_v43, %v3991_v3  ;;  %v2210_v59 = vrot.slane %v3979_v44, %v3986_v25  ;;  %v2231_v44 = vmul.f32 %v2229_v22, %v3991_v3  ;;  %v1457_v30 = vpop.permute.xlu0 %1456 }
 0x357   : > { %v1464_v40 = vrot.slane %v1457_v30, %v3986_v25 }
 0x358   : > { %v2212_v0 = vmul.f32 %v2210_v59, %v3991_v3 }
 0x359   : > { %v1466_v10 = vmul.f32 %v1464_v40, %v3991_v3 }
 0x35a   : > { %1832 = vrot.lane.b32.xlu1 %v1830_v41, %s3046_s28  ;;  %1946 = vrot.lane.b32.xlu0 %v1944_v32, %s3047_s29  ;;  %v2250_v41 = vmul.f32 %v2248_v28, %v3991_v3  ;;  %v1859_v32 = vpop.permute.xlu1 %1858 }
 0x35e   : > { %2042 = vrot.lane.b32.xlu1 %v2040_v52, %s3048_s12  ;;  %2157 = vrot.lane.b32.xlu0 %v2155_v8, %s3049_s13  ;;  %v1992_v29 = vpop.permute.xlu1 %1991  ;;  %v3050_v52 = vmov 17  }
 0x35f   : > { %v1999_v23 = vrot.slane %v1992_v29, %v3986_v25 }
 0x362   : > { %1851 = vrot.lane.b32.xlu1 %v1849_v21, %s3046_s28  ;;  %1965 = vrot.lane.b32.xlu0 %v1963_v58, %s3047_s29  ;;  %v4116_v8 = vpop.permute.xlu1 %1430  ;;  %v1866_v21 = vrot.slane %v1859_v32, %v3986_v25  ;;  %v3052_v58 = vmov 24  }
 0x364   : > { %v1868_v2 = vmul.f32 %v1866_v21, %v3991_v3 }
 0x366   : > { %2080 = vrot.lane.b32.xlu1 %v2078_v4, %s3048_s12  ;;  %2176 = vrot.lane.b32.xlu0 %v2174_v51, %s3049_s13  ;;  %v2126_v19 = vpop.permute.xlu1 %2125  ;;  %v3053_v4 = vmov 31   ;;  %v2001_v51 = vmul.f32 %v1999_v23, %v3991_v3 }
 0x367   : > { %v2133_v43 = vrot.slane %v2126_v19, %v3986_v25  ;;  %v1386_v19 = vrot.slane %v4079_v42, %v3986_v25 }
 0x369   : > { %v2135_v38 = vmul.f32 %v2133_v43, %v3991_v3 }
 0x36a   : > { %1984 = vrot.lane.b32.xlu1 %v1982_v37, %s3047_s29  ;;  %2099 = vrot.lane.b32.xlu0 %v2097_v14, %s3048_s12  ;;  %v3054_v37 = vmov 38   ;;  %v1725_v14 = vpop.permute.xlu0 %1724 }
 0x36b   : > { %v1732_v59 = vrot.slane %v1725_v14, %v3986_v25 }
 0x36d   : > { %v1734_v24 = vmul.f32 %v1732_v59, %v3991_v3 }
 0x36e   : > { %2214 = vrot.lane.b32.xlu1 %v2212_v0, %s3049_s13  ;;  %2118 = vrot.lane.b32.xlu0 %v2116_v7, %s3048_s12  ;;  %v1600_v0 = vmul.f32 %v1598_v63, %v3991_v3  ;;  %v3055_v7 = vmov 3   ;;  %v4140_v22 = vpop.permute.xlu0 %1417 }
 0x372   : > { %2233 = vrot.lane.b32.xlu1 %v2231_v44, %s3049_s13  ;;  %2252 = vrot.lane.b32.xlu0 %v2250_v41, %s3049_s13  ;;  %v4142_v28 = vpop.permute.xlu0 %1443 }
 0x376   : > { %1364 = vperm.xlu1 %2963, %v4109_v55   ;;  %1514 = vperm.xlu0 %2964, %v4109_v55  }
 0x37a   : > { %2965 = vset.pattern.permute.xlu1 %v3050_v52  ;;  %2969 = vset.pattern.permute.xlu0 %v3051_v47 }
 0x37b   : > { %1648 = vperm.xlu1 %2965, %v4109_v55   ;;  %2183 = vperm.xlu0 %2969, %v4109_v55  }
 0x37f   : > { %2966 = vset.pattern.permute.xlu1 %v3052_v58  ;;  %1468 = vrot.lane.b32.xlu0 %v1466_v10, %s3044_s26 }
 0x380   : > { %1782 = vperm.xlu1 %2966, %v4109_v55   ;;  %2971 = vset.pattern.permute.xlu0 %v4443_v54 }
 0x383   : > { %1870 = vrot.lane.b32.xlu0 %v1868_v2, %s3047_s29 }
 0x384   : > { %2967 = vset.pattern.permute.xlu1 %v3053_v4 }
 0x385   : > { %1915 = vperm.xlu1 %2967, %v4109_v55  }
 0x387   : > { %2003 = vrot.lane.b32.xlu0 %v2001_v51, %s3048_s12 }
 0x389   : > { %2968 = vset.pattern.permute.xlu1 %v3054_v37 }
 0x38a   : > { %2049 = vperm.xlu1 %2968, %v4109_v55  }
 0x38b   : > { %2137 = vrot.lane.b32.xlu0 %v2135_v38, %s3049_s13  ;;  %v1388_v38 = vmul.f32 %v1386_v19, %v3991_v3 }
 0x38e   : > { %1602 = vrot.lane.b32.xlu1 %v1600_v0, %s3045_s27 }
 0x38f   : > { %2970 = vset.pattern.permute.xlu1 %v3055_v7 }
 0x392   : > { %1736 = vrot.lane.b32.xlu1 %v1734_v24, %s3046_s28 }
 0x3ac   : > { %v1508_v44 = vpop.permute.xlu1 %1507  ;;  %v1489_v41 = vpop.permute.xlu0 %1488 }
 0x3ad   : > { %v1490_v2 = vrot.slane %v1489_v41, 2  ;;  %v1509_v24 = vrot.slane %v1508_v44, 2 }
 0x3af   : > { %v1491_v43 = vsel %vm1471_vm15, %v1489_v41, %v1490_v2  ;;  %v1399_v41 = vrot.slane %v4091_v20, %v3986_v25 }
 0x3b0   : > { %v1623_v32 = vpop.permute.xlu1 %1622  ;;  %v4144_v29 = vpop.permute.xlu0 %1545  ;;  %v1493_v7 = vadd.f32 %v1491_v43, %v1388_v38 }
 0x3b1   : > { %v1624_v51 = vrot.slane %v1623_v32, 2  ;;  %v1401_v38 = vmul.f32 %v1399_v41, %v3991_v3 }
 0x3b3   : > { %v1625_v59 = vsel %vm1605_vm0, %v1623_v32, %v1624_v51  ;;  %v1510_v32 = vsel %vm1471_vm15, %v1508_v44, %v1509_v24  ;;  %v1438_v44 = vrot.slane %v4116_v8, %v3986_v25 }
 0x3b4   : > { %v1642_v30 = vpop.permute.xlu1 %1641  ;;  %v1757_v40 = vpop.permute.xlu0 %1756  ;;  %v1627_v2 = vadd.f32 %v1625_v59, %v1493_v7  ;;  %v1451_v7 = vrot.slane %v4142_v28, %v3986_v25 }
 0x3b5   : > { %v1758_v63 = vrot.slane %v1757_v40, 2  ;;  %v1643_v19 = vrot.slane %v1642_v30, 2 }
 0x3b7   : > { %v1759_v42 = vsel %vm1739_vm1, %v1757_v40, %v1758_v63  ;;  %v1425_v63 = vrot.slane %v4140_v22, %v3986_v25 }
 0x3b8   : > { %v4146_v52 = vpop.permute.xlu1 %1564  ;;  %v4148_v47 = vpop.permute.xlu0 %1679  ;;  %v1761_v1 = vadd.f32 %v1759_v42, %v1627_v2 }
 0x3b9   : > { %v1566_v22 = vrot.slane %v4146_v52, 2  ;;  %v1427_v8 = vmul.f32 %v1425_v63, %v3991_v3 }
 0x3bb   : > { %v1567_v63 = vsel %vm1471_vm15, %v4146_v52, %v1566_v22 }
 0x3bc   : > { %v1776_v10 = vpop.permute.xlu1 %1775  ;;  %v1890_v21 = vpop.permute.xlu0 %1889 }
 0x3bd   : > { %v1891_v0 = vrot.slane %v1890_v21, 2  ;;  %v1777_v51 = vrot.slane %v1776_v10, 2 }
 0x3bf   : > { %v1892_v46 = vsel %vm851_vm4, %v1890_v21, %v1891_v0  ;;  %v1644_v21 = vsel %vm1605_vm0, %v1642_v30, %v1643_v19  ;;  %v1681_v30 = vrot.slane %v4148_v47, 2 }
 0x3c0   : > { %v4150_v58 = vpop.permute.xlu1 %1583  ;;  %v4152_v54 = vpop.permute.xlu0 %1698  ;;  %v1894_v20 = vadd.f32 %v1892_v46, %v1761_v1  ;;  %v1778_v1 = vsel %vm1739_vm1, %v1776_v10, %v1777_v51 }
 0x3c4   : > { %v4154_v23 = vpop.permute.xlu1 %1813  ;;  %v1909_v4 = vpop.permute.xlu0 %1908 }
 0x3c5   : > { %v1910_v0 = vrot.slane %v1909_v4, 2  ;;  %v1815_v51 = vrot.slane %v4154_v23, 2 }
 0x3c8   : > { %v2024_v37 = vpop.permute.xlu1 %2023  ;;  %v4160_v14 = vpop.permute.xlu0 %1717 }
 0x3c9   : > { %v2025_v33 = vrot.slane %v2024_v37, 2 }
 0x3cb   : > { %v2026_v43 = vsel %vm2006_vm2, %v2024_v37, %v2025_v33  ;;  %v1512_v33 = vadd.f32 %v1510_v32, %v1401_v38  ;;  %v1547_v37 = vrot.slane %v4144_v29, 2  ;;  %v1585_v32 = vrot.slane %v4150_v58, 2 }
 0x3cc   : > { %v4164_v34 = vpop.permute.xlu1 %1832  ;;  %v4168_v45 = vpop.permute.xlu0 %1946  ;;  %v2028_v24 = vadd.f32 %v2026_v43, %v1894_v20  ;;  %v1911_v43 = vsel %vm851_vm4, %v1909_v4, %v1910_v0  ;;  %v1700_v0 = vrot.slane %v4152_v54, 2 }
 0x3cd   : > { %v1646_v28 = vadd.f32 %v1644_v21, %v1512_v33  ;;  %v1548_v38 = vsel %vm1471_vm15, %v4144_v29, %v1547_v37  ;;  %v1440_v21 = vmul.f32 %v1438_v44, %v3991_v3  ;;  %v1682_v29 = vsel %vm1605_vm0, %v4148_v47, %v1681_v30 }
 0x3ce   : > { %v1948_v37 = vrot.slane %v4168_v45, 2  ;;  %v1586_v52 = vsel %vm1471_vm15, %v4150_v58, %v1585_v32  ;;  %v1816_v47 = vsel %vm1739_vm1, %v4154_v23, %v1815_v51  ;;  %v1834_v22 = vrot.slane %v4164_v34, 2 }
 0x3cf   : > { %v1780_v10 = vadd.f32 %v1778_v1, %v1646_v28  ;;  %v1569_v28 = vadd.f32 %v1567_v63, %v1440_v21 }
 0x3d0   : > { %v2043_v40 = vpop.permute.xlu1 %2042  ;;  %v2158_v59 = vpop.permute.xlu0 %2157  ;;  %v1949_v58 = vsel %vm851_vm4, %v4168_v45, %v1948_v37  ;;  %v1835_v21 = vsel %vm1739_vm1, %v4164_v34, %v1834_v22 }
 0x3d1   : > { %v2159_v42 = vrot.slane %v2158_v59, 2  ;;  %v2044_v41 = vrot.slane %v2043_v40, 2  ;;  %v1913_v33 = vadd.f32 %v1911_v43, %v1780_v10 }
 0x3d3   : > { %v2160_v46 = vsel %vm2140_vm3, %v2158_v59, %v2159_v42  ;;  %v1453_v59 = vmul.f32 %v1451_v7, %v3991_v3  ;;  %v2045_v42 = vsel %vm2006_vm2, %v2043_v40, %v2044_v41  ;;  %v1550_v7 = vadd.f32 %v1548_v38, %v1427_v8 }
 0x3d4   : > { %v1852_v2 = vpop.permute.xlu1 %1851  ;;  %v4186_v19 = vadd.f32 %v2160_v46, %v2028_v24  ;;  %v1966_v17 = vpop.permute.xlu0 %1965  ;;  %v1719_v40 = vrot.slane %v4160_v14, 2  ;;  %v2047_v1 = vadd.f32 %v2045_v42, %v1913_v33  ;;  %v1701_v8 = vsel %vm1605_vm0, %v4152_v54, %v1700_v0 }
 0x3d5   : > { %v1684_v41 = vadd.f32 %v1682_v29, %v1550_v7  ;;  %v1853_v30 = vrot.slane %v1852_v2, 2  ;;  %v1967_v32 = vrot.slane %v1966_v17, 2  ;;  %v1588_v23 = vadd.f32 %v1586_v52, %v1453_v59 }
 0x3d6   : > { %v4196_v20 = vrot.slane %v4186_v19, %v3934_v6  ;;  %v1720_v42 = vsel %vm1605_vm0, %v4160_v14, %v1719_v40  ;;  %v1703_v0 = vadd.f32 %v1701_v8, %v1569_v28 }
 0x3d7   : > { %v1818_v51 = vadd.f32 %v1816_v47, %v1684_v41  ;;  %v1854_v45 = vsel %vm1739_vm1, %v1852_v2, %v1853_v30  ;;  %v1722_v7 = vadd.f32 %v1720_v42, %v1588_v23  ;;  %v1968_v59 = vsel %vm851_vm4, %v1966_v17, %v1967_v32 }
 0x3d8   : > { %v2081_v4 = vpop.permute.xlu1 %2080  ;;  %v2177_v24 = vpop.permute.xlu0 %2176  ;;  %2350 = vrot.lane.b32.xlu1 %v4196_v20, %s3056_s16  ;;  %v1837_v40 = vadd.f32 %v1835_v21, %v1703_v0  ;;  %v2334_v21 = vcombine.high %v4186_v19, %v4186_v19 }
 0x3d9   : > { %v2178_v44 = vrot.slane %v2177_v24, 2  ;;  %v2082_v46 = vrot.slane %v2081_v4, 2 }
 0x3da   : > { %v1970_v2 = vadd.f32 %v1968_v59, %v1837_v40 }
 0x3db   : > { %v2179_v43 = vsel %vm2140_vm3, %v2177_v24, %v2178_v44  ;;  %v2083_v33 = vsel %vm2006_vm2, %v2081_v4, %v2082_v46  ;;  %v1951_v24 = vadd.f32 %v1949_v58, %v1818_v51  ;;  %v1856_v4 = vadd.f32 %v1854_v45, %v1722_v7 }
 0x3dc   : > { %v1985_v10 = vpop.permute.xlu1 %1984  ;;  %v2181_v38 = vadd.f32 %v2179_v43, %v2047_v1  ;;  %v2100_v61 = vpop.permute.xlu0 %2099 }
 0x3dd   : > { %v1986_v29 = vrot.slane %v1985_v10, 2  ;;  %v2101_v54 = vrot.slane %v2100_v61, 2  ;;  %v2085_v34 = vadd.f32 %v2083_v33, %v1951_v24  ;;  %v2348_v24 = vrot.slane %v2334_v21, %v3934_v6 }
 0x3de   : > { %v2397_v63 = vrot.slane %v2181_v38, %v3934_v6  ;;  %v2390_v0 = vcombine.high %v2181_v38, %v2181_v38 }
 0x3df   : > { %v1987_v44 = vsel %vm851_vm4, %v1985_v10, %v1986_v29  ;;  %v2102_v22 = vsel %vm2006_vm2, %v2100_v61, %v2101_v54  ;;  %v2349_v54 = vcombine.high %v4196_v20, %v4196_v20 }
 0x3e0   : > { %v2215_v37 = vpop.permute.xlu1 %2214  ;;  %v2119_v52 = vpop.permute.xlu0 %2118  ;;  %2406 = vrot.lane.b32.xlu1 %v2397_v63, %s3057_s17  ;;  %v1989_v28 = vadd.f32 %v1987_v44, %v1856_v4  ;;  %v2104_v8 = vadd.f32 %v2102_v22, %v1970_v2  ;;  %v2404_v19 = vrot.slane %v2390_v0, %v3934_v6  ;;  %v2405_v7 = vcombine.high %v2397_v63, %v2397_v63 }
 0x3e1   : > { %v2216_v14 = vrot.slane %v2215_v37, 2  ;;  %v2120_v47 = vrot.slane %v2119_v52, 2 }
 0x3e3   : > { %v2217_v1 = vsel %vm2140_vm3, %v2215_v37, %v2216_v14  ;;  %v2121_v46 = vsel %vm2006_vm2, %v2119_v52, %v2120_v47 }
 0x3e4   : > { %v2219_v41 = vadd.f32 %v2217_v1, %v2085_v34  ;;  %v2234_v17 = vpop.permute.xlu1 %2233  ;;  %v2253_v30 = vpop.permute.xlu0 %2252  ;;  %v2123_v23 = vadd.f32 %v2121_v46, %v1989_v28 }
 0x3e5   : > { %v2235_v43 = vrot.slane %v2234_v17, 2  ;;  %v2254_v32 = vrot.slane %v2253_v30, 2 }
 0x3e6   : > { %v2453_v58 = vrot.slane %v2219_v41, %v3934_v6  ;;  %v2446_v59 = vcombine.high %v2219_v41, %v2219_v41 }
 0x3e7   : > { %v2236_v10 = vsel %vm2140_vm3, %v2234_v17, %v2235_v43  ;;  %v2255_v51 = vsel %vm2140_vm3, %v2253_v30, %v2254_v32 }
 0x3e8   : > { %v2238_v61 = vadd.f32 %v2236_v10, %v2104_v8  ;;  %2462 = vrot.lane.b32.xlu0 %v2453_v58, %s3058_s18  ;;  %v2257_v42 = vadd.f32 %v2255_v51, %v2123_v23  ;;  %v2461_v52 = vcombine.high %v2453_v58, %v2453_v58  ;;  %v2460_v38 = vrot.slane %v2446_v59, %v3934_v6 }
 0x3ea   : > { %v2509_v29 = vrot.slane %v2238_v61, %v3934_v6  ;;  %v2565_v33 = vrot.slane %v2257_v42, %v3934_v6  ;;  %v2502_v14 = vcombine.high %v2238_v61, %v2238_v61  ;;  %v2558_v44 = vcombine.high %v2257_v42, %v2257_v42  ;;  %v1361_v42 = vld [vmem:[#allocation2] sm:$0xf] }
 0x3ec   : > { %2518 = vrot.lane.b32.xlu1 %v2509_v29, %s3059_s19  ;;  %2574 = vrot.lane.b32.xlu0 %v2565_v33, %s3060_s20  ;;  %v2516_v34 = vrot.slane %v2502_v14, %v3934_v6  ;;  %v2517_v47 = vcombine.high %v2509_v29, %v2509_v29  ;;  %v2573_v22 = vcombine.high %v2565_v33, %v2565_v33 }
 0x3ed   : > { %v2572_v1 = vrot.slane %v2558_v44, %v3934_v6  ;;  %v4444_v44 = vld [vmem:[#allocation3_spill] sm:$0xff] }
 0x3f0   : > { %2352 = vrot.lane.b32.xlu1 %v2349_v54, %s3056_s16  ;;  %2354 = vrot.lane.b32.xlu0 %v2348_v24, %s3056_s16 }
 0x3f1   : > { %v1365_v45 = vpop.permute.xlu1 %1364  ;;  %v1515_v37 = vpop.permute.xlu0 %1514 }
 0x3f2   : > { %v1522_v2 = vrot.slane %v1515_v37, %v3986_v25  ;;  %v1372_v23 = vrot.slane %v1365_v45, %v3986_v25 }
 0x3f4   : > { %2410 = vrot.lane.b32.xlu1 %v2404_v19, %s3057_s17  ;;  %2408 = vrot.lane.b32.xlu0 %v2405_v7, %s3057_s17  ;;  %v1524_v17 = vmul.f32 %v1522_v2, %v3991_v3  ;;  %v1374_v0 = vmul.f32 %v1372_v23, %v1361_v42 }
 0x3f6   : > { %v1649_v20 = vpop.permute.xlu1 %1648  ;;  %v2184_v40 = vpop.permute.xlu0 %2183 }
 0x3f7   : > { %v1656_v41 = vrot.slane %v1649_v20, %v3986_v25  ;;  %v2191_v29 = vrot.slane %v2184_v40, %v3986_v25 }
 0x3f8   : > { %2464 = vrot.lane.b32.xlu1 %v2461_v52, %s3058_s18  ;;  %2466 = vrot.lane.b32.xlu0 %v2460_v38, %s3058_s18 }
 0x3f9   : > { %v1658_v8 = vmul.f32 %v1656_v41, %v3991_v3  ;;  %v2193_v7 = vmul.f32 %v2191_v29, %v3991_v3 }
 0x3fa   : > { %v1469_v63 = vpop.permute.xlu0 %1468 }
 0x3fb   : > { %v1783_v4 = vpop.permute.xlu1 %1782  ;;  %v1470_v58 = vrot.slane %v1469_v63, 2 }
 0x3fc   : > { %2522 = vrot.lane.b32.xlu1 %v2516_v34, %s3059_s19  ;;  %2520 = vrot.lane.b32.xlu0 %v2517_v47, %s3059_s19  ;;  %v1790_v28 = vrot.slane %v1783_v4, %v3986_v25  ;;  %v2258_v47 = vadd.s32 128, %v4444_v44 }
 0x3fd   : > { %v1472_v21 = vsel %vm1471_vm15, %v1469_v63, %v1470_v58 }
 0x3fe   : > { %v1871_v30 = vpop.permute.xlu0 %1870  ;;  %v1792_v10 = vmul.f32 %v1790_v28, %v3991_v3  ;;  %v1474_v19 = vadd.f32 %v1472_v21, %v1374_v0  ;;  %v4283_v41 = vand.u32 15, %v2258_v47 }
 0x3ff   : > { %v1872_v59 = vrot.slane %v1871_v30, 2 }
 0x400   : > { %2576 = vrot.lane.b32.xlu1 %v2573_v22, %s3060_s20  ;;  %v1916_v46 = vpop.permute.xlu1 %1915  ;;  %2578 = vrot.lane.b32.xlu0 %v2572_v1, %s3060_s20  ;;  %vm2284_vm6 = vcmp.ge.s32.totalorder %v4283_v41, 3  ;;  %vm2324_vm9 = vcmp.ge.s32.totalorder %v4283_v41, 2  ;;  %vm2380_vm12 = vcmp.ge.s32.totalorder %v4283_v41, 1 }
 0x401   : > { %v1923_v32 = vrot.slane %v1916_v46, %v3986_v25  ;;  %v1873_v4 = vsel %vm851_vm4, %v1871_v30, %v1872_v59  ;;  %v4281_v46 = vand.u32 15, %v4444_v44 }
 0x402   : > { %v2004_v61 = vpop.permute.xlu0 %2003 }
 0x403   : > { %v1925_v33 = vmul.f32 %v1923_v32, %v3991_v3  ;;  %v2005_v38 = vrot.slane %v2004_v61, 2  ;;  %vm2283_vm5 = vcmp.ge.s32.totalorder %v4281_v46, 3  ;;  %vm2323_vm8 = vcmp.ge.s32.totalorder %v4281_v46, 2 }
 0x404   : > { %1404 = vperm.xlu1 %2970, %v4109_v55   ;;  %1526 = vrot.lane.b32.xlu0 %v1524_v17, %s3044_s26  ;;  %vm2379_vm11 = vcmp.ge.s32.totalorder %v4281_v46, 1  ;;  %vm2437_vm14 = vcmp.lt.s32.totalorder %v4281_v46, 15 }
 0x405   : > { %v2050_v43 = vpop.permute.xlu1 %2049  ;;  %v2007_v1 = vsel %vm2006_vm2, %v2004_v61, %v2005_v38 }
 0x406   : > { %v2057_v51 = vrot.slane %v2050_v43, %v3986_v25  ;;  %v2138_v14 = vpop.permute.xlu0 %2137 }
 0x407   : > { %v2139_v63 = vrot.slane %v2138_v14, 2 }
 0x408   : > { %1660 = vrot.lane.b32.xlu1 %v1658_v8, %s3045_s27  ;;  %1794 = vrot.lane.b32.xlu0 %v1792_v10, %s3046_s28  ;;  %v2059_v24 = vmul.f32 %v2057_v51, %v3991_v3 }
 0x409   : > { %v1603_v55 = vpop.permute.xlu1 %1602  ;;  %v2141_v17 = vsel %vm2140_vm3, %v2138_v14, %v2139_v63 }
 0x40a   : > { %v1604_v54 = vrot.slane %v1603_v55, 2 }
 0x40c   : > { %v1606_v45 = vsel %vm1605_vm0, %v1603_v55, %v1604_v54  ;;  %1927 = vrot.lane.b32.xlu1 %v1925_v33, %s3047_s29  ;;  %2061 = vrot.lane.b32.xlu0 %v2059_v24, %s3048_s12 }
 0x40d   : > { %v1737_v37 = vpop.permute.xlu1 %1736  ;;  %v1608_v20 = vadd.f32 %v1606_v45, %v1474_v19 }
 0x40e   : > { %v1738_v52 = vrot.slane %v1737_v37, 2 }
 0x410   : > { %v1740_v40 = vsel %vm1739_vm1, %v1737_v37, %v1738_v52  ;;  %2195 = vrot.lane.b32.xlu1 %v2193_v7, %s3049_s13 }
 0x411   : > { %v1742_v34 = vadd.f32 %v1740_v40, %v1608_v20 }
 0x413   : > { %v1875_v22 = vadd.f32 %v1873_v4, %v1742_v34 }
 0x415   : > { %v2009_v2 = vadd.f32 %v2007_v1, %v1875_v22 }
 0x417   : > { %v2143_v28 = vadd.f32 %v2141_v17, %v2009_v2 }
 0x419   : > { %v2300_v43 = vrot.slane %v2143_v28, %v3934_v6 }
 0x41b   : > { %v2301_v30 = vcombine.high %v2300_v43, %v2300_v43  ;;  %v2304_v8 = vsel %vm2283_vm5, %v2300_v43, 0.0  ;;  %vm2438_vm5 = vcmp.lt.s32.totalorder %v4283_v41, 15 }
 0x41d   : > { %v2305_v58 = vsel %vm2284_vm6, %v2301_v30, 0.0  ;;  %vm2524_vm6 = vcmask 1006592  }
 0x41e   : > { %v2308_v32 = vcombine.low %v2304_v8, %v2305_v58 }
 0x420   : > { %v2315_v23 = vrot.slane %v2308_v32, %v3934_v6 }
 0x422   : > { %2316 = vrot.lane.b32.xlu0 %v2315_v23, %s3061_s21 }
 0x44a   : > { %v2351_v10 = vpop.permute.xlu1 %2350 }
 0x452   : > { %v2407_v51 = vpop.permute.xlu1 %2406 }
 0x45a   : > { %v2463_v61 = vpop.permute.xlu0 %2462 }
 0x45e   : > { %v2519_v55 = vpop.permute.xlu1 %2518  ;;  %v2575_v42 = vpop.permute.xlu0 %2574 }
 0x462   : > { %v2353_v29 = vpop.permute.xlu1 %2352  ;;  %v2355_v21 = vpop.permute.xlu0 %2354 }
 0x463   : > { %v2357_v33 = vsel %vm2356_vm7, %v2351_v10, %v2353_v29  ;;  %v2358_v54 = vsel %vm2356_vm7, %v2353_v29, %v2355_v21  ;;  %vm2493_vm7 = vcmp.lt.s32.totalorder %v4281_v46, 14 }
 0x464   : > { %v2361_v0 = vsel %vm2323_vm8, %v2357_v33, 0.0  ;;  %v2362_v24 = vsel %vm2324_vm9, %v2358_v54, 0.0  ;;  %vm2494_vm8 = vcmp.lt.s32.totalorder %v4283_v41, 14  ;;  %vm2580_vm9 = vcmask 998400  }
 0x465   : > { %v2365_v45 = vcombine.low %v2361_v0, %v2362_v24 }
 0x466   : > { %v2411_v19 = vpop.permute.xlu1 %2410  ;;  %v2409_v37 = vpop.permute.xlu0 %2408 }
 0x467   : > { %v2372_v7 = vrot.slane %v2365_v45, %v3934_v6  ;;  %v2413_v59 = vsel %vm2412_vm10, %v2407_v51, %v2409_v37  ;;  %v2414_v52 = vsel %vm2412_vm10, %v2409_v37, %v2411_v19  ;;  %vm2549_vm10 = vcmp.lt.s32.totalorder %v4281_v46, 13 }
 0x468   : > { %v2417_v14 = vsel %vm2379_vm11, %v2413_v59, 0.0  ;;  %v2418_v20 = vsel %vm2380_vm12, %v2414_v52, 0.0  ;;  %vm2550_vm11 = vcmp.lt.s32.totalorder %v4283_v41, 13 }
 0x469   : > { %v2421_v38 = vcombine.low %v2417_v14, %v2418_v20  ;;  %2373 = vrot.lane.b32.xlu1 %v2372_v7, %s3061_s21 }
 0x46a   : > { %v2465_v40 = vpop.permute.xlu1 %2464  ;;  %v2467_v34 = vpop.permute.xlu0 %2466 }
 0x46b   : > { %v2469_v44 = vsel %vm2468_vm13, %v2463_v61, %v2465_v40  ;;  %v2428_v47 = vrot.slane %v2421_v38, %v3934_v6  ;;  %v2470_v4 = vsel %vm2468_vm13, %v2465_v40, %v2467_v34 }
 0x46c   : > { %v2473_v63 = vsel %vm2437_vm14, %v2469_v44, 0.0  ;;  %v2474_v22 = vsel %vm2438_vm5, %v2470_v4, 0.0 }
 0x46d   : > { %v2477_v1 = vcombine.low %v2473_v63, %v2474_v22  ;;  %2429 = vrot.lane.b32.xlu0 %v2428_v47, %s3061_s21 }
 0x46e   : > { %v2523_v2 = vpop.permute.xlu1 %2522  ;;  %v2521_v17 = vpop.permute.xlu0 %2520 }
 0x46f   : > { %v2484_v28 = vrot.slane %v2477_v1, %v3934_v6  ;;  %v2525_v43 = vsel %vm2524_vm6, %v2519_v55, %v2521_v17  ;;  %v2526_v30 = vsel %vm2524_vm6, %v2521_v17, %v2523_v2 }
 0x470   : > { %v2529_v8 = vsel %vm2493_vm7, %v2525_v43, 0.0  ;;  %v2530_v58 = vsel %vm2494_vm8, %v2526_v30, 0.0 }
 0x471   : > { %v2533_v32 = vcombine.low %v2529_v8, %v2530_v58  ;;  %2485 = vrot.lane.b32.xlu1 %v2484_v28, %s3061_s21 }
 0x472   : > { %v2577_v23 = vpop.permute.xlu1 %2576  ;;  %v2579_v10 = vpop.permute.xlu0 %2578 }
 0x473   : > { %v2581_v51 = vsel %vm2580_vm9, %v2575_v42, %v2577_v23  ;;  %v2540_v61 = vrot.slane %v2533_v32, %v3934_v6  ;;  %v2582_v29 = vsel %vm2580_vm9, %v2577_v23, %v2579_v10 }
 0x474   : > { %v2585_v21 = vsel %vm2549_vm10, %v2581_v51, 0.0  ;;  %v2586_v33 = vsel %vm2550_vm11, %v2582_v29, 0.0 }
 0x475   : > { %v2589_v55 = vcombine.low %v2585_v21, %v2586_v33  ;;  %2541 = vrot.lane.b32.xlu0 %v2540_v61, %s3061_s21 }
 0x476   : > { %v1527_v0 = vpop.permute.xlu0 %1526 }
 0x477   : > { %v2596_v54 = vrot.slane %v2589_v55, %v3934_v6  ;;  %v1528_v45 = vrot.slane %v1527_v0, 2 }
 0x479   : > { %2597 = vrot.lane.b32.xlu1 %v2596_v54, %s3061_s21  ;;  %v1529_v37 = vsel %vm1471_vm15, %v1527_v0, %v1528_v45  ;;  %vm2319_vm15 = vcmask 23552  }
 0x47a   : > { %v1795_v7 = vpop.permute.xlu0 %1794 }
 0x47b   : > { %v1796_v20 = vrot.slane %v1795_v7, 2 }
 0x47d   : > { %v1797_v34 = vsel %vm1739_vm1, %v1795_v7, %v1796_v20  ;;  %vm2639_vm1 = vcmask 17408  }
 0x47e   : > { %v2062_v44 = vpop.permute.xlu0 %2061 }
 0x47f   : > { %v1405_v46 = vpop.permute.xlu1 %1404  ;;  %v2063_v63 = vrot.slane %v2062_v44, 2 }
 0x480   : > { %v1412_v24 = vrot.slane %v1405_v46, %v3986_v25 }
 0x481   : > { %v2064_v17 = vsel %vm2006_vm2, %v2062_v44, %v2063_v63  ;;  %vm2674_vm2 = vcmask 1022976  }
 0x482   : > { %v1414_v42 = vmul.f32 %v1412_v24, %v3991_v3 }
 0x483   : > { %v1661_v41 = vpop.permute.xlu1 %1660 }
 0x484   : > { %v1662_v19 = vrot.slane %v1661_v41, 2  ;;  %v1531_v59 = vadd.f32 %v1529_v37, %v1414_v42 }
 0x486   : > { %v1663_v52 = vsel %vm1605_vm0, %v1661_v41, %v1662_v19  ;;  %vm2631_vm0 = vcmask 1041408  }
 0x487   : > { %v1928_v14 = vpop.permute.xlu1 %1927  ;;  %v1665_v38 = vadd.f32 %v1663_v52, %v1531_v59 }
 0x488   : > { %v1929_v40 = vrot.slane %v1928_v14, 2 }
 0x489   : > { %v1799_v47 = vadd.f32 %v1797_v34, %v1665_v38 }
 0x48a   : > { %v1930_v25 = vsel %vm851_vm4, %v1928_v14, %v1929_v40  ;;  %vm2623_vm4 = vcmask 1041432  }
 0x48b   : > { %v2196_v4 = vpop.permute.xlu1 %2195  ;;  %v1932_v3 = vadd.f32 %v1930_v25, %v1799_v47 }
 0x48c   : > { %v2197_v1 = vrot.slane %v2196_v4, 2 }
 0x48d   : > { %v2066_v43 = vadd.f32 %v2064_v17, %v1932_v3 }
 0x48e   : > { %v2198_v8 = vsel %vm2140_vm3, %v2196_v4, %v2197_v1 }
 0x48f   : > { %v2200_v10 = vadd.f32 %v2198_v8, %v2066_v43 }
 0x494   : > { %v2317_v22 = vpop.permute.xlu0 %2316 }
 0x495   : > { %v2318_v28 = vrot.slane %v2317_v22, 6 }
 0x497   : > { %v2320_v32 = vsel %vm2319_vm15, %v2318_v28, %v2317_v22 }
 0x498   : > { %v2322_v21 = vadd.f32 %v2320_v32, %v2200_v10 }
 0x4db   : > { %v2374_v2 = vpop.permute.xlu1 %2373 }
 0x4dc   : > { %v2375_v58 = vrot.slane %v2374_v2, 6 }
 0x4de   : > { %v2376_v61 = vsel %vm2319_vm15, %v2375_v58, %v2374_v2 }
 0x4df   : > { %v2430_v30 = vpop.permute.xlu0 %2429  ;;  %v2378_v55 = vadd.f32 %v2376_v61, %v2322_v21 }
 0x4e0   : > { %v2431_v23 = vrot.slane %v2430_v30, 6 }
 0x4e2   : > { %v2432_v33 = vsel %vm2319_vm15, %v2431_v23, %v2430_v30 }
 0x4e3   : > { %v2486_v51 = vpop.permute.xlu1 %2485  ;;  %v2434_v24 = vadd.f32 %v2432_v33, %v2378_v55 }
 0x4e4   : > { %v2487_v29 = vrot.slane %v2486_v51, 6 }
 0x4e6   : > { %v2488_v46 = vsel %vm2319_vm15, %v2487_v29, %v2486_v51 }
 0x4e7   : > { %v2542_v54 = vpop.permute.xlu0 %2541  ;;  %v2490_v45 = vadd.f32 %v2488_v46, %v2434_v24 }
 0x4e8   : > { %v2543_v0 = vrot.slane %v2542_v54, 6 }
 0x4ea   : > { %v2544_v41 = vsel %vm2319_vm15, %v2543_v0, %v2542_v54 }
 0x4eb   : > { %v2598_v42 = vpop.permute.xlu1 %2597  ;;  %v2546_v37 = vadd.f32 %v2544_v41, %v2490_v45 }
 0x4ec   : > { %v2599_v19 = vrot.slane %v2598_v42, 6 }
 0x4ee   : > { %v2600_v7 = vsel %vm2319_vm15, %v2599_v19, %v2598_v42 }
 0x4ef   : > { %v2602_v59 = vadd.f32 %v2600_v7, %v2546_v37 }
 0x4f1   : > { %v2604_v52 = vcombine.high %v2602_v59, %v2602_v59  ;;  %v2611_v14 = vrot.slane %v2602_v59, %v3934_v6 }
 0x4f3   : > { %v2618_v20 = vrot.slane %v2604_v52, %v3934_v6  ;;  %v2619_v38 = vcombine.high %v2611_v14, %v2611_v14  ;;  %v2624_v40 = vsel %vm2623_vm4, %v2611_v14, 0.0 }
 0x4f4   : > { %v2625_v34 = vrot.slane %v2624_v40, 4 }
 0x4f5   : > { %v2632_v44 = vsel %vm2631_vm0, %v2619_v38, 0.0  ;;  %v2640_v47 = vsel %vm2639_vm1, %v2618_v20, 0.0 }
 0x4f6   : > { %v2626_v25 = vadd.f32 %v2625_v34, %v2624_v40  ;;  %v2633_v4 = vrot.slane %v2632_v44, 4  ;;  %v2641_v63 = vrot.slane %v2640_v47, 4 }
 0x4f8   : > { %v2627_v3 = vrot.slane %v2626_v25, 2  ;;  %v2634_v22 = vadd.f32 %v2633_v4, %v2632_v44  ;;  %v2642_v1 = vadd.f32 %v2641_v63, %v2640_v47  ;;  %v4447_v63 = vld [vmem:[#allocation7_spill] sm:$0xff] }
 0x4fa   : > { %v2628_v2 = vadd.f32 %v2627_v3, %v2626_v25  ;;  %v2635_v17 = vrot.slane %v2634_v22, 2  ;;  %v2643_v28 = vrot.slane %v2642_v1, 2  ;;  %v4446_v25 = vld [vmem:[#allocation6_spill] sm:$0xff]  ;;  %v4448_v3 = vld [vmem:[#allocation8_spill] sm:$0xff] }
 0x4fc   : > { %v2629_v43 = vrot.slane %v2628_v2, 1  ;;  %v2636_v30 = vadd.f32 %v2635_v17, %v2634_v22  ;;  %v2644_v8 = vadd.f32 %v2643_v28, %v2642_v1  ;;  %v4450_v22 = vld [vmem:[#allocation10_spill] sm:$0xff]  ;;  %v4453_v28 = vld [vmem:[#allocation13_spill] sm:$0xff] }
 0x4fe   : > { %v2630_v58 = vadd.f32 %v2629_v43, %v2628_v2  ;;  %v2637_v32 = vrot.slane %v2636_v30, 1  ;;  %v2645_v6 = vrot.slane %v2644_v8, 1  ;;  %v4452_v2 = vld [vmem:[#allocation12_spill] sm:$0xff] }
 0x500   : > { %v2638_v23 = vadd.f32 %v2637_v32, %v2636_v30  ;;  %v2646_v10 = vadd.f32 %v2645_v6, %v2644_v8  ;;  %v2838_v51 = vmul.f32 -1.442695, %v2630_v58  ;;  %v4454_v30 = vld [vmem:[#allocation14_spill] sm:$0xff] }
 0x502   : > { %2976 = vpow2.f32 %v2838_v51  ;;  %v2839_v61 = vmul.f32 -1.442695, %v2638_v23  ;;  %v2840_v29 = vmul.f32 -1.442695, %v2646_v10 }
 0x504   : > { %2978 = vpow2.f32 %v2839_v61 }
 0x505   : > { %2980 = vpow2.f32 %v2840_v29 }
 0x50f   : > { %v2977_v21 = vpop.eup %2976 }
 0x510   : > { %v2656_v33 = vadd.f32 1.0, %v2977_v21 }
 0x511   : > { %v2979_v55 = vpop.eup %2978 }
 0x512   : > { %v2981_v54 = vpop.eup %2980  ;;  %v2657_v46 = vadd.f32 1.0, %v2979_v55  ;;  %2982 = vrcp.f32 %v2656_v33 }
 0x513   : > { %v2658_v0 = vadd.f32 1.0, %v2981_v54 }
 0x514   : > { %2984 = vrcp.f32 %v2657_v46 }
 0x515   : > { %2986 = vrcp.f32 %v2658_v0 }
 0x51f   : > { %v2983_v24 = vpop.eup %2982 }
 0x520   : > { %2668 = vrot.lane.b32.xlu0 %v2983_v24, %s3062_s22 }
 0x521   : > { %v2985_v41 = vpop.eup %2984 }
 0x522   : > { %2670 = vrot.lane.b32.xlu1 %v2985_v41, %s3062_s22  ;;  %v2987_v45 = vpop.eup %2986 }
 0x524   : > { %2672 = vrot.lane.b32.xlu0 %v2987_v45, %s3062_s22 }
 0x592   : > { %v2669_v42 = vpop.permute.xlu0 %2668 }
 0x594   : > { %v2671_v19 = vpop.permute.xlu1 %2670 }
 0x595   : > { %v2675_v37 = vsel %vm2674_vm2, %v2669_v42, %v2671_v19 }
 0x596   : > { %v2679_v7 = vmul.f32 %v2675_v37, %v3763_v26  ;;  %v2681_v59 = vmul.f32 %v2675_v37, %v3757_v12  ;;  %v2683_v52 = vmul.f32 %v2675_v37, %v3765_v27  ;;  %v2685_v14 = vmul.f32 %v2675_v37, %v3773_v15  ;;  %v2673_v44 = vpop.permute.xlu0 %2672 }
 0x597   : > { %v2687_v20 = vmul.f32 %v2675_v37, %v3785_v48  ;;  %v2689_v38 = vmul.f32 %v2675_v37, %v3795_v39  ;;  %v2691_v40 = vmul.f32 %v2675_v37, %v3807_v49  ;;  %v2693_v34 = vmul.f32 %v2675_v37, %v3821_v13 }
 0x598   : > { %v2695_v26 = vmul.f32 %v2675_v37, %v3833_v5  ;;  %v2697_v12 = vmul.f32 %v2675_v37, %v3844_v53  ;;  %v2699_v27 = vmul.f32 %v2675_v37, %v3856_v56  ;;  %v2701_v15 = vmul.f32 %v2675_v37, %v3866_v16  ;;  %2711 = vst [vmem:[%s4332_s25] sm:$0xff] %v2679_v7 }
 0x599   : > { %2713 = vst [vmem:[%s4332_s25 + $0x10] sm:$0xff] %v2681_v59  ;;  %2715 = vst [vmem:[%s4332_s25 + $0x20] sm:$0xff] %v2683_v52  ;;  %v2703_v48 = vmul.f32 %v2675_v37, %v3876_v60  ;;  %v2705_v39 = vmul.f32 %v2675_v37, %v3885_v11  ;;  %v2707_v49 = vmul.f32 %v2675_v37, %v3894_v36 }
 0x59a   : > { %2717 = vst [vmem:[%s4332_s25 + $0x30] sm:$0xff] %v2685_v14  ;;  %v2709_v13 = vmul.f32 %v2675_v37, %v3910_v9  ;;  %2719 = vst [vmem:[%s4332_s25 + $0x40] sm:$0xff] %v2687_v20  ;;  %v2676_v5 = vsel %vm2674_vm2, %v2671_v19, %v2673_v44  ;;  %v4445_v9 = vld [vmem:[#allocation5_spill] sm:$0xff] }
 0x59b   : > { %2721 = vst [vmem:[%s4332_s25 + $0x50] sm:$0xff] %v2689_v38  ;;  %2723 = vst [vmem:[%s4332_s25 + $0x60] sm:$0xff] %v2691_v40  ;;  %v2680_v53 = vmul.f32 %v2676_v5, %v3767_v62  ;;  %v2682_v56 = vmul.f32 %v2676_v5, %v3759_v31  ;;  %v2684_v16 = vmul.f32 %v2676_v5, %v3769_v50  ;;  %v4449_v50 = vld [vmem:[#allocation9_spill] sm:$0xff] }
 0x59c   : > { %2725 = vst [vmem:[%s4332_s25 + $0x70] sm:$0xff] %v2693_v34  ;;  %2727 = vst [vmem:[%s4332_s25 + $0x80] sm:$0xff] %v2695_v26  ;;  %v2686_v60 = vmul.f32 %v2676_v5, %v3779_v35  ;;  %v2688_v11 = vmul.f32 %v2676_v5, %v3790_v57  ;;  %v2690_v36 = vmul.f32 %v2676_v5, %v3802_v18  ;;  %v4451_v18 = vld [vmem:[#allocation11_spill] sm:$0xff] }
 0x59d   : > { %2729 = vst [vmem:[%s4332_s25 + $0x90] sm:$0xff] %v2697_v12  ;;  %2731 = vst [vmem:[%s4332_s25 + $0xa0] sm:$0xff] %v2699_v27  ;;  %v2692_v47 = vmul.f32 %v2676_v5, %v4445_v9  ;;  %v2694_v4 = vmul.f32 %v2676_v5, %v4446_v25  ;;  %v2696_v62 = vmul.f32 %v2676_v5, %v4447_v63 }
 0x59e   : > { %2733 = vst [vmem:[%s4332_s25 + $0xb0] sm:$0xff] %v2701_v15  ;;  %2735 = vst [vmem:[%s4332_s25 + $0xc0] sm:$0xff] %v2703_v48  ;;  %v2698_v31 = vmul.f32 %v2676_v5, %v4448_v3  ;;  %v2700_v35 = vmul.f32 %v2676_v5, %v4449_v50  ;;  %v2702_v57 = vmul.f32 %v2676_v5, %v4450_v22 }
 0x59f   : > { %2737 = vst [vmem:[%s4332_s25 + $0xd0] sm:$0xff] %v2705_v39  ;;  %2739 = vst [vmem:[%s4332_s25 + $0xe0] sm:$0xff] %v2707_v49  ;;  %v2704_v1 = vmul.f32 %v2676_v5, %v4451_v18  ;;  %v2706_v17 = vmul.f32 %v2676_v5, %v4452_v2  ;;  %v2708_v43 = vmul.f32 %v2676_v5, %v4453_v28 }
 0x5a0   : > { %2741 = vst [vmem:[%s4332_s25 + $0xf0] sm:$0xff] %v2709_v13  ;;  %2712 = vst [vmem:[%s4332_s25 + $0x8] sm:$0xff] %v2680_v53  ;;  %v2710_v8 = vmul.f32 %v2676_v5, %v4454_v30 }
 0x5a1   : > { %2714 = vst [vmem:[%s4332_s25 + $0x18] sm:$0xff] %v2682_v56  ;;  %2716 = vst [vmem:[%s4332_s25 + $0x28] sm:$0xff] %v2684_v16 }
 0x5a2   : > { %2718 = vst [vmem:[%s4332_s25 + $0x38] sm:$0xff] %v2686_v60  ;;  %2720 = vst [vmem:[%s4332_s25 + $0x48] sm:$0xff] %v2688_v11 }
 0x5a3   : > { %2722 = vst [vmem:[%s4332_s25 + $0x58] sm:$0xff] %v2690_v36  ;;  %2724 = vst [vmem:[%s4332_s25 + $0x68] sm:$0xff] %v2692_v47 }
 0x5a4   : > { %2726 = vst [vmem:[%s4332_s25 + $0x78] sm:$0xff] %v2694_v4  ;;  %2728 = vst [vmem:[%s4332_s25 + $0x88] sm:$0xff] %v2696_v62 }
 0x5a5   : > { %2730 = vst [vmem:[%s4332_s25 + $0x98] sm:$0xff] %v2698_v31  ;;  %2732 = vst [vmem:[%s4332_s25 + $0xa8] sm:$0xff] %v2700_v35 }
 0x5a6   : > { %2734 = vst [vmem:[%s4332_s25 + $0xb8] sm:$0xff] %v2702_v57  ;;  %2736 = vst [vmem:[%s4332_s25 + $0xc8] sm:$0xff] %v2704_v1 }
 0x5a7   : > { %2738 = vst [vmem:[%s4332_s25 + $0xd8] sm:$0xff] %v2706_v17  ;;  %2740 = vst [vmem:[%s4332_s25 + $0xe8] sm:$0xff] %v2708_v43 }
 0x5a8   : > { %2742 = vst [vmem:[%s4332_s25 + $0xf8] sm:$0xff] %v2710_v8 }
 0x5a9 PF: > { %s19_s30 = sadd.s32 1, %s2995_s30  }
 0x5aa   : > { %p16_p4 = scmp.ge.s32.totalorder %s19_s30, 4  }
 0x5ac   :  { %18 = sbr.rel (!%p16_p4) target bundleno = 1 (0x1), region = 89 }

</bundles_post_ra>
